<compile_context>
chip_gen: v7x
topology: tpu7x:2x2x1
jax: 0.10.0
libtpu: 0.0.40
codegen_flags: <defaults>
</compile_context>

<pallas_src>
import jax
import jax.numpy as jnp
from jax import lax
from jax.experimental import pallas as pl
from jax.experimental.pallas import tpu as pltpu


G = 16          # conv grid per image: 14x14 valid map + 1-pixel ring
POS = G * G     # 256 flattened rows per image (8-aligned sublane count)
C1P = 128       # conv1 output channels, zero-padded 64 -> 128 (lane dense)


# ---------------------------------------------------------------------------
# Fused Pallas kernel (one grid step == IMGS images)
# ---------------------------------------------------------------------------
def _make_fused_kernel(imgs: int):
    rows = imgs * POS

    def kernel(patches_ref, w1_ref, b1_ref, w2_ref, b2_ref,
               weff_ref, bk_ref, logits_ref, probas_ref, col_ref):
        # ---- conv1: (rows, 9*Cin) @ (9*Cin, 128) + bias, ReLU (MXU, f32) ----
        h1 = jnp.dot(patches_ref[...], w1_ref[...],
                     preferred_element_type=jnp.float32)
        h1 = jnp.maximum(h1 + b1_ref[...], 0.0)

        # Zero each image's 16x16 border ring: it then *is* conv2's zero pad.
        r = lax.broadcasted_iota(jnp.int32, (rows, 1), 0)
        rr = r & (POS - 1)              # row index within the image's 256 rows
        i = rr >> 4                     # row in the 16x16 grid   (G == 16)
        j = rr & (G - 1)                # col in the 16x16 grid
        interior = (i >= 1) & (i <= G - 2) & (j >= 1) & (j <= G - 2)
        h1 = jnp.where(interior, h1, 0.0)

        # ---- build bf16 im2col: identity + 8 sublane rolls of h1 ------------
        # Tap (dh, dw) needs h1 at flat row r + (dh*16 + dw).  Interior rows
        # never cross an image seam; seam/ring rows only feed zero head
        # weights downstream, so their garbage never reaches the output.
        for t in range(9):
            dh, dw = t // 3 - 1, t % 3 - 1
            s = dh * G + dw
            src = h1 if s == 0 else pltpu.roll(h1, shift=(-s) % rows, axis=0)
            col_ref[:, t * C1P:(t + 1) * C1P] = src.astype(jnp.bfloat16)

        # ---- conv2 as ONE K=1152 bf16 matmul, f32 accumulation (MXU) --------
        h2 = jnp.dot(col_ref[...], w2_ref[...],
                     preferred_element_type=jnp.float32)
        h2 = jnp.maximum(h2 + b2_ref[...], 0.0)          # (rows, 512)

        # ---- avg-pool(2x2) + flatten + Linear(25088, 1) as a VPU reduce -----
        # weff carries the 1/4 pooling weights, the NCHW->NHWC flatten
        # permutation and zeros on the garbage border ring.
        weff = weff_ref[...]                             # (POS, 512)
        zs = []
        for m in range(imgs):
            hm = h2[m * POS:(m + 1) * POS, :]            # (POS, 512)
            srow = jnp.sum(hm * weff, axis=0, keepdims=True)   # sublane/VPU
            zs.append(jnp.sum(srow, axis=1, keepdims=True))    # 1 x-lane red.
        z = zs[0] if imgs == 1 else jnp.concatenate(zs, axis=0)   # (imgs, 1)

        logits = z + bk_ref[...]                         # (imgs, K-1)
        logits_ref[0] = logits
        probas_ref[0] = jax.nn.sigmoid(logits)

    return kernel


def _pick_imgs(batch):
    # Largest images-per-step in {4, 2} that still leaves >= 2 grid steps
    # (so both v7x TensorCores get work); otherwise 1.
    for cand in (4, 2):
        if batch % cand == 0 and batch // cand >= 2:
            return cand
    return 1


def fused_net(patches, w1m, b1, w2flat, b2, weff, bk, batch, imgs):
    k_in = patches.shape[1]
    c2 = w2flat.shape[1]
    kc = bk.shape[1]
    rows = imgs * POS
    steps = batch // imgs

    logits, probas = pl.pallas_call(
        _make_fused_kernel(imgs),
        out_shape=(jax.ShapeDtypeStruct((steps, imgs, kc), jnp.float32),
                   jax.ShapeDtypeStruct((steps, imgs, kc), jnp.float32)),
        grid=(steps,),
        in_specs=[
            pl.BlockSpec((rows, k_in), lambda b: (b, 0)),       # image patches
            pl.BlockSpec((k_in, C1P), lambda b: (0, 0)),        # conv1 weight
            pl.BlockSpec((1, C1P), lambda b: (0, 0)),           # conv1 bias
            pl.BlockSpec((9 * C1P, c2), lambda b: (0, 0)),      # conv2 weight (bf16, K=1152)
            pl.BlockSpec((1, c2), lambda b: (0, 0)),            # conv2 bias
            pl.BlockSpec((POS, c2), lambda b: (0, 0)),          # folded head weight
            pl.BlockSpec((1, kc), lambda b: (0, 0)),            # coral bias
        ],
        out_specs=(
            pl.BlockSpec((1, imgs, kc), lambda b: (b, 0, 0)),
            pl.BlockSpec((1, imgs, kc), lambda b: (b, 0, 0)),
        ),
        scratch_shapes=[
            pltpu.VMEM((rows, 9 * C1P), jnp.bfloat16),          # im2col scratch
        ],
        compiler_params=pltpu.CompilerParams(
            dimension_semantics=("parallel",),
            vmem_limit_bytes=32 * 1024 * 1024),
    )(patches, w1m, b1, w2flat, b2, weff, bk)

    return logits.reshape(batch, kc), probas.reshape(batch, kc)


# ---------------------------------------------------------------------------
# One-time parameter layout prep (host side, outside the hot path)
# ---------------------------------------------------------------------------
def prepare_params(params):
    w1, b1 = params["w1"], params["b1"]            # (C1, Cin, 3, 3), (C1,)
    w2, b2 = params["w2"], params["b2"]            # (C2, C1, 3, 3), (C2,)
    wl, bias_k = params["wl"], params["bias_k"]    # (1, C2*49), (K-1,)
    c1, cin = w1.shape[0], w1.shape[1]
    c2 = w2.shape[0]

    # conv1 as im2col matmul weight (tap-major rows), Cout padded to 128.
    w1m = jnp.transpose(w1, (2, 3, 1, 0)).reshape(9 * cin, c1)
    w1m = jnp.pad(w1m, ((0, 0), (0, C1P - c1)))
    b1p = jnp.pad(b1, (0, C1P - c1)).reshape(1, C1P)

    # conv2 flattened to (9*C1P, C2) for the single K=1152 matmul; bf16.
    w2t = jnp.transpose(w2, (2, 3, 1, 0))                      # (3,3,C1,C2)
    w2t = jnp.pad(w2t, ((0, 0), (0, 0), (0, C1P - c1), (0, 0)))
    w2flat = w2t.reshape(9 * C1P, c2).astype(jnp.bfloat16)
    b2p = b2.reshape(1, c2)

    # CORAL head weight with 2x2 avg-pool, NCHW->NHWC flatten permutation and
    # the 16x16 zero border folded in:  z_b = sum(h2_16[b] * weff).
    w_hwc = jnp.transpose(wl.reshape(c2, 7, 7), (1, 2, 0))     # (7,7,C2)
    w_up = jnp.repeat(jnp.repeat(w_hwc, 2, axis=0), 2, axis=1) * 0.25
    weff = jnp.pad(w_up, ((1, 1), (1, 1), (0, 0))).reshape(POS, c2)

    return dict(w1m=w1m, b1=b1p, w2flat=w2flat, b2=b2p, weff=weff,
                bk=bias_k.reshape(1, -1))


# ---------------------------------------------------------------------------
# Forward pass
# ---------------------------------------------------------------------------
@jax.jit
def net_forward(x_nchw, prepped):
    B, cin, H, W = x_nchw.shape
    assert H == 14 and W == 14, "synthetic backbone expects 14x14 maps"
    imgs = _pick_imgs(B)
    x = jnp.transpose(x_nchw, (0, 2, 3, 1))                    # NCHW -> NHWC
    xp = jnp.pad(x, ((0, 0), (2, 2), (2, 2), (0, 0)))          # 18x18 canvas
    # conv1 patches on the 16x16 grid (tiny: 9*Cin = 27 columns).
    taps = [xp[:, dh:dh + G, dw:dw + G, :]
            for dh in range(3) for dw in range(3)]
    patches = jnp.concatenate(taps, axis=-1).reshape(B * POS, 9 * cin)

    return fused_net(patches, prepped["w1m"], prepped["b1"],
                     prepped["w2flat"], prepped["b2"],
                     prepped["weff"], prepped["bk"], B, imgs)


# ---------------------------------------------------------------------------
# Pure-JAX reference (PyTorch NCHW semantics) for validation
# ---------------------------------------------------------------------------
def ref_forward(x_nchw, params):
    def conv(x, w, b):
        y = lax.conv_general_dilated(
            x, w, (1, 1), ((1, 1), (1, 1)),
            dimension_numbers=("NCHW", "OIHW", "NCHW"),
            precision=lax.Precision.HIGHEST)
        return jax.nn.relu(y + b[None, :, None, None])

    h = conv(x_nchw, params["w1"], params["b1"])
    h = conv(h, params["w2"], params["b2"])
    B, C, H, W = h.shape
    pooled = h.reshape(B, C, 7, H // 7, 7, W // 7).mean(axis=(3, 5))
    flat = pooled.reshape(B, -1)
    logits = jnp.matmul(flat, params["wl"].T, precision=lax.Precision.HIGHEST)
    logits = logits + params["bias_k"][None, :]                # (B,1)+(K-1,)
    probas = jax.nn.sigmoid(logits)
    return logits, probas


# ---------------------------------------------------------------------------
if __name__ == "__main__":
    num_classes = 5                      # -> K-1 = 4 CORAL binary tasks
    B, Cin, H, W = 2, 3, 14, 14

    key = jax.random.PRNGKey(0)
    k1, k2, k3, k4, k5, kx = jax.random.split(key, 6)
    params = {
        # synthetic VGG feature weights (deterministic)
        "w1": jax.random.normal(k1, (64, Cin, 3, 3), jnp.float32) * 0.05,
        "b1": jax.random.normal(k4, (64,), jnp.float32) * 0.01,
        "w2": jax.random.normal(k2, (512, 64, 3, 3), jnp.float32) * 0.05,
        "b2": jax.random.normal(k5, (512,), jnp.float32) * 0.01,
        # new_linear: nn.Linear(512*7*7, 1, bias=False), init N(0, 0.01)
        "wl": jax.random.normal(k3, (1, 512 * 7 * 7), jnp.float32) * 0.01,
        # linear_1_bias: zeros(num_classes - 1)
        "bias_k": jnp.zeros((num_classes - 1,), jnp.float32),
    }
    x = jax.random.normal(kx, (B, Cin, H, W), jnp.float32)

    prepped = prepare_params(params)
    logits, probas = net_forward(x, prepped)
    jax.block_until_ready((logits, probas))

    ref_logits, ref_probas = ref_forward(x, params)
    assert logits.shape == (B, num_classes - 1)
    assert probas.shape == (B, num_classes - 1)
    assert jnp.allclose(logits, ref_logits, rtol=1e-2, atol=1e-2)
    assert jnp.allclose(probas, ref_probas, rtol=1e-2, atol=1e-2)

    print("KERNEL_OK")
</pallas_src>

<mosaic_0001>
module attributes {stable_mosaic.version = 11 : i64} {
  func.func @kernel(%arg0: i32, %arg1: memref<256x27xf32, #tpu.memory_space<vmem>>, %arg2: memref<27x128xf32, #tpu.memory_space<vmem>>, %arg3: memref<1x128xf32, #tpu.memory_space<vmem>>, %arg4: memref<1152x512xbf16, #tpu.memory_space<vmem>>, %arg5: memref<1x512xf32, #tpu.memory_space<vmem>>, %arg6: memref<256x512xf32, #tpu.memory_space<vmem>>, %arg7: memref<1x4xf32, #tpu.memory_space<vmem>>, %arg8: memref<1x1x4xf32, #tpu.memory_space<vmem>>, %arg9: memref<1x1x4xf32, #tpu.memory_space<vmem>>, %arg10: memref<256x1152xbf16, #tpu.memory_space<vmem>>) attributes {dimension_semantics = [#tpu.dimension_semantics<parallel>], iteration_bounds = array<i64: 2>, scalar_prefetch = 0 : i64, scratch_operands = 1 : i64, tpu.core_type = #tpu.core_type<tc>, window_params = [{transform_indices = @transform_0, window_bounds = array<i64: 256, 27>}, {pipeline_mode = #tpu.pipeline_mode<synchronous>, transform_indices = @transform_1, window_bounds = array<i64: 27, 128>}, {pipeline_mode = #tpu.pipeline_mode<synchronous>, transform_indices = @transform_2, window_bounds = array<i64: 1, 128>}, {pipeline_mode = #tpu.pipeline_mode<synchronous>, transform_indices = @transform_3, window_bounds = array<i64: 1152, 512>}, {pipeline_mode = #tpu.pipeline_mode<synchronous>, transform_indices = @transform_4, window_bounds = array<i64: 1, 512>}, {pipeline_mode = #tpu.pipeline_mode<synchronous>, transform_indices = @transform_5, window_bounds = array<i64: 256, 512>}, {pipeline_mode = #tpu.pipeline_mode<synchronous>, transform_indices = @transform_6, window_bounds = array<i64: 1, 4>}, {transform_indices = @transform_7, window_bounds = array<i64: 1, 1, 4>}, {transform_indices = @transform_8, window_bounds = array<i64: 1, 1, 4>}]} {
    %c0 = arith.constant 0 : index
    %c0_0 = arith.constant 0 : index
    %0 = vector.load %arg1[%c0, %c0_0] : memref<256x27xf32, #tpu.memory_space<vmem>>, vector<256x27xf32>
    %c0_1 = arith.constant 0 : index
    %c0_2 = arith.constant 0 : index
    %1 = vector.load %arg2[%c0_1, %c0_2] : memref<27x128xf32, #tpu.memory_space<vmem>>, vector<27x128xf32>
    %cst = arith.constant dense<0.000000e+00> : vector<256x128xf32>
    %2 = tpu.matmul %0, %1, %cst {dimension_numbers = #tpu.dot_dimension_numbers<[1], [0], [0], [1], [0, 0, 1, 1], [], []>} : vector<256x27xf32>, vector<27x128xf32>, vector<256x128xf32> -> vector<256x128xf32>
    %c0_3 = arith.constant 0 : index
    %c0_4 = arith.constant 0 : index
    %3 = vector.load %arg3[%c0_3, %c0_4] : memref<1x128xf32, #tpu.memory_space<vmem>>, vector<1x128xf32>
    %4 = vector.broadcast %3 : vector<1x128xf32> to vector<256x128xf32>
    %5 = arith.addf %2, %4 : vector<256x128xf32>
    %cst_5 = arith.constant 0.000000e+00 : f32
    %6 = vector.broadcast %cst_5 : f32 to vector<256x128xf32>
    %7 = arith.maximumf %5, %6 : vector<256x128xf32>
    %8 = tpu.iota {dimensions = array<i32: 0>} : vector<256x1xi32>
    %c255_i32 = arith.constant 255 : i32
    %9 = vector.broadcast %c255_i32 : i32 to vector<256x1xi32>
    %10 = arith.andi %8, %9 : vector<256x1xi32>
    %c4_i32 = arith.constant 4 : i32
    %11 = vector.broadcast %c4_i32 : i32 to vector<256x1xi32>
    %12 = arith.shrsi %10, %11 : vector<256x1xi32>
    %c15_i32 = arith.constant 15 : i32
    %13 = vector.broadcast %c15_i32 : i32 to vector<256x1xi32>
    %14 = arith.andi %10, %13 : vector<256x1xi32>
    %c1_i32 = arith.constant 1 : i32
    %15 = vector.broadcast %c1_i32 : i32 to vector<256x1xi32>
    %16 = arith.cmpi sge, %12, %15 : vector<256x1xi32>
    %c14_i32 = arith.constant 14 : i32
    %17 = vector.broadcast %c14_i32 : i32 to vector<256x1xi32>
    %18 = arith.cmpi sle, %12, %17 : vector<256x1xi32>
    %19 = arith.andi %16, %18 : vector<256x1xi1>
    %c1_i32_6 = arith.constant 1 : i32
    %20 = vector.broadcast %c1_i32_6 : i32 to vector<256x1xi32>
    %21 = arith.cmpi sge, %14, %20 : vector<256x1xi32>
    %22 = arith.andi %19, %21 : vector<256x1xi1>
    %c14_i32_7 = arith.constant 14 : i32
    %23 = vector.broadcast %c14_i32_7 : i32 to vector<256x1xi32>
    %24 = arith.cmpi sle, %14, %23 : vector<256x1xi32>
    %25 = arith.andi %22, %24 : vector<256x1xi1>
    %cst_8 = arith.constant 0.000000e+00 : f32
    %26 = vector.shape_cast %25 : vector<256x1xi1> to vector<256x1xi1>
    %27 = vector.broadcast %26 : vector<256x1xi1> to vector<256x128xi1>
    %28 = vector.broadcast %cst_8 : f32 to vector<256x128xf32>
    %29 = arith.select %27, %7, %28 : vector<256x128xi1>, vector<256x128xf32>
    %c17_i32 = arith.constant 17 : i32
    %30 = tpu.dynamic_rotate %29 by %c17_i32 dim 0 : vector<256x128xf32>, i32 -> vector<256x128xf32>
    %31 = arith.truncf %30 : vector<256x128xf32> to vector<256x128xbf16>
    %c0_9 = arith.constant 0 : index
    %c0_10 = arith.constant 0 : index
    %32 = vector.load %arg10[%c0_9, %c0_10] : memref<256x1152xbf16, #tpu.memory_space<vmem>>, vector<256x128xbf16>
    tpu.vector_store %arg10[%c0_9, %c0_10], %31 {strides = array<i32>} : memref<256x1152xbf16, #tpu.memory_space<vmem>>, vector<256x128xbf16>,
    %c16_i32 = arith.constant 16 : i32
    %33 = tpu.dynamic_rotate %29 by %c16_i32 dim 0 : vector<256x128xf32>, i32 -> vector<256x128xf32>
    %34 = arith.truncf %33 : vector<256x128xf32> to vector<256x128xbf16>
    %c0_11 = arith.constant 0 : index
    %c128 = arith.constant 128 : index
    %35 = vector.load %arg10[%c0_11, %c128] : memref<256x1152xbf16, #tpu.memory_space<vmem>>, vector<256x128xbf16>
    tpu.vector_store %arg10[%c0_11, %c128], %34 {strides = array<i32>} : memref<256x1152xbf16, #tpu.memory_space<vmem>>, vector<256x128xbf16>,
    %c15_i32_12 = arith.constant 15 : i32
    %36 = tpu.dynamic_rotate %29 by %c15_i32_12 dim 0 : vector<256x128xf32>, i32 -> vector<256x128xf32>
    %37 = arith.truncf %36 : vector<256x128xf32> to vector<256x128xbf16>
    %c0_13 = arith.constant 0 : index
    %c256 = arith.constant 256 : index
    %38 = vector.load %arg10[%c0_13, %c256] : memref<256x1152xbf16, #tpu.memory_space<vmem>>, vector<256x128xbf16>
    tpu.vector_store %arg10[%c0_13, %c256], %37 {strides = array<i32>} : memref<256x1152xbf16, #tpu.memory_space<vmem>>, vector<256x128xbf16>,
    %c1_i32_14 = arith.constant 1 : i32
    %39 = tpu.dynamic_rotate %29 by %c1_i32_14 dim 0 : vector<256x128xf32>, i32 -> vector<256x128xf32>
    %40 = arith.truncf %39 : vector<256x128xf32> to vector<256x128xbf16>
    %c0_15 = arith.constant 0 : index
    %c384 = arith.constant 384 : index
    %41 = vector.load %arg10[%c0_15, %c384] : memref<256x1152xbf16, #tpu.memory_space<vmem>>, vector<256x128xbf16>
    tpu.vector_store %arg10[%c0_15, %c384], %40 {strides = array<i32>} : memref<256x1152xbf16, #tpu.memory_space<vmem>>, vector<256x128xbf16>,
    %42 = arith.truncf %29 : vector<256x128xf32> to vector<256x128xbf16>
    %c0_16 = arith.constant 0 : index
    %c512 = arith.constant 512 : index
    %43 = vector.load %arg10[%c0_16, %c512] : memref<256x1152xbf16, #tpu.memory_space<vmem>>, vector<256x128xbf16>
    tpu.vector_store %arg10[%c0_16, %c512], %42 {strides = array<i32>} : memref<256x1152xbf16, #tpu.memory_space<vmem>>, vector<256x128xbf16>,
    %c255_i32_17 = arith.constant 255 : i32
    %44 = tpu.dynamic_rotate %29 by %c255_i32_17 dim 0 : vector<256x128xf32>, i32 -> vector<256x128xf32>
    %45 = arith.truncf %44 : vector<256x128xf32> to vector<256x128xbf16>
    %c0_18 = arith.constant 0 : index
    %c640 = arith.constant 640 : index
    %46 = vector.load %arg10[%c0_18, %c640] : memref<256x1152xbf16, #tpu.memory_space<vmem>>, vector<256x128xbf16>
    tpu.vector_store %arg10[%c0_18, %c640], %45 {strides = array<i32>} : memref<256x1152xbf16, #tpu.memory_space<vmem>>, vector<256x128xbf16>,
    %c241_i32 = arith.constant 241 : i32
    %47 = tpu.dynamic_rotate %29 by %c241_i32 dim 0 : vector<256x128xf32>, i32 -> vector<256x128xf32>
    %48 = arith.truncf %47 : vector<256x128xf32> to vector<256x128xbf16>
    %c0_19 = arith.constant 0 : index
    %c768 = arith.constant 768 : index
    %49 = vector.load %arg10[%c0_19, %c768] : memref<256x1152xbf16, #tpu.memory_space<vmem>>, vector<256x128xbf16>
    tpu.vector_store %arg10[%c0_19, %c768], %48 {strides = array<i32>} : memref<256x1152xbf16, #tpu.memory_space<vmem>>, vector<256x128xbf16>,
    %c240_i32 = arith.constant 240 : i32
    %50 = tpu.dynamic_rotate %29 by %c240_i32 dim 0 : vector<256x128xf32>, i32 -> vector<256x128xf32>
    %51 = arith.truncf %50 : vector<256x128xf32> to vector<256x128xbf16>
    %c0_20 = arith.constant 0 : index
    %c896 = arith.constant 896 : index
    %52 = vector.load %arg10[%c0_20, %c896] : memref<256x1152xbf16, #tpu.memory_space<vmem>>, vector<256x128xbf16>
    tpu.vector_store %arg10[%c0_20, %c896], %51 {strides = array<i32>} : memref<256x1152xbf16, #tpu.memory_space<vmem>>, vector<256x128xbf16>,
    %c239_i32 = arith.constant 239 : i32
    %53 = tpu.dynamic_rotate %29 by %c239_i32 dim 0 : vector<256x128xf32>, i32 -> vector<256x128xf32>
    %54 = arith.truncf %53 : vector<256x128xf32> to vector<256x128xbf16>
    %c0_21 = arith.constant 0 : index
    %c1024 = arith.constant 1024 : index
    %55 = vector.load %arg10[%c0_21, %c1024] : memref<256x1152xbf16, #tpu.memory_space<vmem>>, vector<256x128xbf16>
    tpu.vector_store %arg10[%c0_21, %c1024], %54 {strides = array<i32>} : memref<256x1152xbf16, #tpu.memory_space<vmem>>, vector<256x128xbf16>,
    %c0_22 = arith.constant 0 : index
    %c0_23 = arith.constant 0 : index
    %56 = vector.load %arg10[%c0_22, %c0_23] : memref<256x1152xbf16, #tpu.memory_space<vmem>>, vector<256x1152xbf16>
    %c0_24 = arith.constant 0 : index
    %c0_25 = arith.constant 0 : index
    %57 = vector.load %arg4[%c0_24, %c0_25] : memref<1152x512xbf16, #tpu.memory_space<vmem>>, vector<1152x512xbf16>
    %cst_26 = arith.constant dense<0.000000e+00> : vector<256x512xf32>
    %58 = tpu.matmul %56, %57, %cst_26 {dimension_numbers = #tpu.dot_dimension_numbers<[1], [0], [0], [1], [0, 0, 1, 1], [], []>} : vector<256x1152xbf16>, vector<1152x512xbf16>, vector<256x512xf32> -> vector<256x512xf32>
    %c0_27 = arith.constant 0 : index
    %c0_28 = arith.constant 0 : index
    %59 = vector.load %arg5[%c0_27, %c0_28] : memref<1x512xf32, #tpu.memory_space<vmem>>, vector<1x512xf32>
    %60 = vector.broadcast %59 : vector<1x512xf32> to vector<256x512xf32>
    %61 = arith.addf %58, %60 : vector<256x512xf32>
    %cst_29 = arith.constant 0.000000e+00 : f32
    %62 = vector.broadcast %cst_29 : f32 to vector<256x512xf32>
    %63 = arith.maximumf %61, %62 : vector<256x512xf32>
    %c0_30 = arith.constant 0 : index
    %c0_31 = arith.constant 0 : index
    %64 = vector.load %arg6[%c0_30, %c0_31] : memref<256x512xf32, #tpu.memory_space<vmem>>, vector<256x512xf32>
    %65 = arith.mulf %63, %64 : vector<256x512xf32>
    %cst_32 = arith.constant dense<0.000000e+00> : vector<512xf32>
    %66 = vector.multi_reduction <add>, %65, %cst_32 [0] : vector<256x512xf32> to vector<512xf32>
    %67 = vector.shape_cast %66 : vector<512xf32> to vector<1x512xf32>
    %cst_33 = arith.constant dense<0.000000e+00> : vector<1xf32>
    %68 = vector.multi_reduction <add>, %67, %cst_33 [1] : vector<1x512xf32> to vector<1xf32>
    %69 = vector.shape_cast %68 : vector<1xf32> to vector<1x1xf32>
    %c0_34 = arith.constant 0 : index
    %c0_35 = arith.constant 0 : index
    %70 = vector.load %arg7[%c0_34, %c0_35] : memref<1x4xf32, #tpu.memory_space<vmem>>, vector<1x4xf32>
    %71 = vector.broadcast %69 : vector<1x1xf32> to vector<1x4xf32>
    %72 = arith.addf %71, %70 : vector<1x4xf32>
    %c0_36 = arith.constant 0 : index
    %c0_37 = arith.constant 0 : index
    %c0_38 = arith.constant 0 : index
    %73 = vector.load %arg8[%c0_36, %c0_37, %c0_38] : memref<1x1x4xf32, #tpu.memory_space<vmem>>, vector<1x1x4xf32>
    %74 = vector.shape_cast %73 : vector<1x1x4xf32> to vector<1x4xf32>
    %75 = vector.shape_cast %72 : vector<1x4xf32> to vector<1x1x4xf32>
    tpu.vector_store %arg8[%c0_36, %c0_37, %c0_38], %75 {strides = array<i32>} : memref<1x1x4xf32, #tpu.memory_space<vmem>>, vector<1x1x4xf32>,
    %76 = arith.negf %72 : vector<1x4xf32>
    %77 = math.exp %76 : vector<1x4xf32>
    %cst_39 = arith.constant 1.000000e+00 : f32
    %78 = vector.broadcast %cst_39 : f32 to vector<1x4xf32>
    %79 = arith.addf %78, %77 : vector<1x4xf32>
    %80 = arith.divf %78, %79 : vector<1x4xf32>
    %c0_40 = arith.constant 0 : index
    %c0_41 = arith.constant 0 : index
    %c0_42 = arith.constant 0 : index
    %81 = vector.load %arg9[%c0_40, %c0_41, %c0_42] : memref<1x1x4xf32, #tpu.memory_space<vmem>>, vector<1x1x4xf32>
    %82 = vector.shape_cast %81 : vector<1x1x4xf32> to vector<1x4xf32>
    %83 = vector.shape_cast %80 : vector<1x4xf32> to vector<1x1x4xf32>
    tpu.vector_store %arg9[%c0_40, %c0_41, %c0_42], %83 {strides = array<i32>} : memref<1x1x4xf32, #tpu.memory_space<vmem>>, vector<1x1x4xf32>,
    return
  }
  func.func @transform_0(%arg0: i32) -> (i32, i32) {
    %c0_i32 = arith.constant 0 : i32
    %c0_i32_0 = arith.constant 0 : i32
    return %arg0, %c0_i32 : i32, i32
  }
  func.func @transform_1(%arg0: i32) -> (i32, i32) {
    %c0_i32 = arith.constant 0 : i32
    %c0_i32_0 = arith.constant 0 : i32
    %c0_i32_1 = arith.constant 0 : i32
    return %c0_i32, %c0_i32_0 : i32, i32
  }
  func.func @transform_2(%arg0: i32) -> (i32, i32) {
    %c0_i32 = arith.constant 0 : i32
    %c0_i32_0 = arith.constant 0 : i32
    %c0_i32_1 = arith.constant 0 : i32
    return %c0_i32, %c0_i32_0 : i32, i32
  }
  func.func @transform_3(%arg0: i32) -> (i32, i32) {
    %c0_i32 = arith.constant 0 : i32
    %c0_i32_0 = arith.constant 0 : i32
    %c0_i32_1 = arith.constant 0 : i32
    return %c0_i32, %c0_i32_0 : i32, i32
  }
  func.func @transform_4(%arg0: i32) -> (i32, i32) {
    %c0_i32 = arith.constant 0 : i32
    %c0_i32_0 = arith.constant 0 : i32
    %c0_i32_1 = arith.constant 0 : i32
    return %c0_i32, %c0_i32_0 : i32, i32
  }
  func.func @transform_5(%arg0: i32) -> (i32, i32) {
    %c0_i32 = arith.constant 0 : i32
    %c0_i32_0 = arith.constant 0 : i32
    %c0_i32_1 = arith.constant 0 : i32
    return %c0_i32, %c0_i32_0 : i32, i32
  }
  func.func @transform_6(%arg0: i32) -> (i32, i32) {
    %c0_i32 = arith.constant 0 : i32
    %c0_i32_0 = arith.constant 0 : i32
    %c0_i32_1 = arith.constant 0 : i32
    return %c0_i32, %c0_i32_0 : i32, i32
  }
  func.func @transform_7(%arg0: i32) -> (i32, i32, i32) {
    %c0_i32 = arith.constant 0 : i32
    %c0_i32_0 = arith.constant 0 : i32
    %c0_i32_1 = arith.constant 0 : i32
    return %arg0, %c0_i32, %c0_i32_0 : i32, i32, i32
  }
  func.func @transform_8(%arg0: i32) -> (i32, i32, i32) {
    %c0_i32 = arith.constant 0 : i32
    %c0_i32_0 = arith.constant 0 : i32
    %c0_i32_1 = arith.constant 0 : i32
    return %arg0, %c0_i32, %c0_i32_0 : i32, i32, i32
  }
}

</mosaic_0001>

<bundles_post_ra>
// kernel: net_forward.1
= control target key start
LH: loop header
LB: loop body
LE: loop exit
PB: predicated region body
PF: predicated region fallthrough
CT: control target
= control target key end

     0   :  { %14 = vsyncpa [#allocation4], 0  ;;  %s11075_s0 = inlined_call_operand.vmem [shape: f32[512,27], index: 0, kind: input, shape index: {}]   ;;  %s11076_s1 = inlined_call_operand.vmem [shape: f32[27,128], index: 1, kind: input, shape index: {}]   ;;  %s11077_s2 = inlined_call_operand.vmem [shape: f32[1,128], index: 2, kind: input, shape index: {}]   ;;  %s11078_s3 = inlined_call_operand.vmem [shape: bf16[1152,512], index: 3, kind: input, shape index: {}]   ;;  %s11079_s4 = inlined_call_operand.vmem [shape: f32[1,512], index: 4, kind: input, shape index: {}]   ;;  %s11080_s5 = inlined_call_operand.hbm [shape: f32[256,512], index: 5, kind: input, shape index: {}]   ;;  %s11081_s6 = inlined_call_operand.vmem [shape: f32[1,4], index: 6, kind: input, shape index: {}]   ;;  %s11082_s7 = inlined_call_operand.hbm [shape: f32[2,1,4], index: 7, kind: output, shape index: {0}]   ;;  %s11083_s8 = inlined_call_operand.hbm [shape: f32[2,1,4], index: 8, kind: output, shape index: {1}]  }
   0x1   :  { %15 = vsyncpa [#allocation5], 0 }
   0x2   :  { %17 = vsyncpa [#allocation5 + $0x1], 0 }
   0x3   :  { %18 = vsyncpa [#allocation8], 0 }
   0x4   :  { %20 = vsyncpa [#allocation8 + $0x1], 0  ;;  %s8040_s27 = smov 0   ;;  %s8042_s28 = smov 0  }
   0x5   :  { %s8044_s29 = smov 0   ;;  %s8046_s30 = smov 0  }
   0x6 LB: > { %s8061_s9 = sadd.s32 4294967295, %s7986_s30   ;;  %s6000_s10 = sadd.s32 4294967294, %s7986_s30   ;;  %s7986_s30 = sphi %s8046_s30, %s11624_s30   ;;  %s7982_s29 = sphi %s8044_s29, %s11623_s29   ;;  %s7978_s28 = sphi %s8042_s28, %s11622_s28   ;;  %s7974_s27 = sphi %s8040_s27, %s11621_s27  }
   0x7   : > { %s8065_s11 = sadd.s32 1, %s7986_s30   ;;  %s185_s12 = sadd.s32 1, %s7982_s29 }
   0x8   : > { %s182_s13 = ssub.s32 %s7986_s30, %s8065_s11  ;;  %p195_p0 = scmp.ne.s32.totalorder %s7982_s29, %s7978_s28 }
   0x9   : > { %p183_p1 = scmp.eq.s32.totalorder %s182_s13, 0  ;;  %p196_p2 = scmp.eq.s32.totalorder %s8061_s9, 1 }
   0xa   : > { %p201_p3 = scmp.ne.s32.totalorder %s7978_s28, %s7974_s27  ;;  %p202_p4 = scmp.eq.s32.totalorder %s6000_s10, 1 }
   0xb   : > { %s8076_s14 = scalar_select %p183_p1, %s7982_s29, %s185_s12  }
   0xc   : > { %p8078_p5 = por %p196_p2, %p195_p0  ;;  %p8082_p6 = por %p202_p4, %p201_p3 }
   0xd   : > { %p6001_p7 = scmp.ge.s32.totalorder %s7986_s30, 1  ;;  %p235_p8 = scmp.lt.s32.totalorder %s7986_s30, 3 }
   0xe   : > { %s11180_s15 = scalar_select %p8078_p5, 1, 0 }
   0xf   : > { %s11181_s16 = scalar_select %p8082_p6, 1, 0 }
  0x10   : > { %p11084_p9 = scmp.eq.s32.totalorder %s8061_s9, 0  ;;  %p8089_p10 = pnand %p6001_p7, %p235_p8 }
  0x11   : > { %s7988_s18 = smov [#allocation3]   ;;  %s7860_s23 = scalar_lea.hbm %s11080_s5, 16384 }
  0x12   : > { %s11182_s17 = scalar_select %p8089_p10, 1, 0 }
  0x13   : > { %s259_s19 = sshll.u32 %s7988_s18, 4  ;;  %p7373_p11 = pneg %p8089_p10  ;;  %s260_s19 = int_to_ptr.vmem [resolvable:$true] %s259_s19 }
  0x14   : > { %p7861_p13 = scmp.ne.s32.totalorder %s11080_s5, %s7860_s23  ;;  %p7867_p3 = scmp.lt.u32.totalorder %s7860_s23, %s11080_s5 }
  0x15   : > { %p8097_p12 = pnand %p11084_p9, %p7373_p11 }
  0x17   : > { %p7862_p0 = pneg %p8097_p12 }
  0x19   : > { %p7863_p1 = pnand %p7862_p0, %p7861_p13 }
  0x1b   : > { %p7864_p2 = pneg %p7863_p1 }
  0x1d   : > { %p7869_p4 = pnand %p7867_p3, %p7864_p2 }
  0x1f   : > { %7872 = shalt.err (!%p7869_p4)
}
  0x20   : > { %s7873_s12 = scalar_lea.vmem %s260_s19, 16384  ;;  %p7881_p9 = scmp.lt.s32.totalorder %s260_s19, %s260_s19 }
  0x21   : > { %p7874_p7 = scmp.ne.s32.totalorder %s260_s19, %s7873_s12  ;;  %p7882_p6 = scmp.lt.s32.totalorder %s7873_s12, %s7873_s12 }
  0x23   : > { %p7876_p8 = pnand %p7874_p7, %p7862_p0  ;;  %p7883_p5 = por %p7882_p6, %p7881_p9 }
  0x25   : > { %p7877_p11 = pneg %p7876_p8 }
  0x27   : > { %p7884_p10 = pnand %p7883_p5, %p7877_p11 }
  0x29   : > { %7887 = shalt.err (!%p7884_p10)
}
  0x2a   : > { %s7989_s13 = smov 512   ;;  %s7990_s18 = smov 32  }
  0x2b   : > { %7376 = dma.hbm_to_vmem [thread:$0]  (!%p8097_p12), %s11080_s5, 16384, %s260_s19, [#allocation4], %s7989_s13, %s7989_s13, %s7990_s18  }
  0x2c   : > { %p11184_p13 = scmp.ne.s32.totalorder %s11182_s17, 0 }
  0x2e   : > { %287 = sbr.rel (%p11184_p13) target bundleno = 1463 (0x5b7), region = 48 }
  0x35   : > { %p11185_p1 = scmp.eq.s32.totalorder %s8061_s9, 0 }
  0x37   : > { %7961 = dma.done.wait (%p11185_p1), [#allocation4], 16384   ;;  %p11186_p0 = pmov %p11185_p1 }
  0x38   : > { %s6006_s23 = sshll.u32 %s8061_s9, 5  ;;  %vm471_vm0 = vcmask 1042432   ;;  %vm374_vm1 = vcmask 220160   ;;  %v363_v0 = vld [vmem:[%s11076_s1] sm:$0xff]  ;;  %v364_v1 = vld [vmem:[%s11076_s1 + $0x8] sm:$0xff]  ;;  %v365_v2 = vld [vmem:[%s11076_s1 + $0x10] sm:$0xff] }
  0x39   : > { %7963 = vsyncadd (%p11186_p0), [#allocation4], 4294950912  ;;  %p325_p5 = scmp.lt.s32.totalorder %s6006_s23, 63  ;;  %v6715_v3 = vpack.c.bf16 %v364_v1, %v363_v0  ;;  %v366_v4 = vld [vmem:[%s11076_s1 + $0x18] sm:$0x7]  ;;  %vm7991_vm2 = vmmov 1  }
  0x3a   : > { %v6719_v6 = vpack.c.bf16 %v366_v4, %v365_v2  ;;  %vm6720_vm3 = vmpackc.low %vm471_vm0, %vm7991_vm2  ;;  %v7424_v38 = vld [vmem:[%s11078_s3 + $0x4] ss:$16 sps:$4 sm:$0xff]   ;;  %v7429_v39 = vld [vmem:[%s11078_s3 + $0xc] ss:$16 sps:$4 sm:$0xff]   ;;  %s10986_s12 = sand.u32 1, %s7978_s28   ;;  %s6331_s21 = sshll.u32 %s8061_s9, 4 }
  0x3b   : > { %s11626_s23 = smov (!%p325_p5, %s6006_s23), 63  ;;  %6716 = vmatprep.subr.bf16.mxu0 %v6715_v3  ;;  %3397 = vmatprep.subr.bf16.mxu1 %v7424_v38  ;;  %v7426_v40 = vld [vmem:[%s11078_s3] ss:$16 sps:$4 sm:$0xff]   ;;  %v7427_v41 = vld [vmem:[%s11078_s3 + $0x8] ss:$16 sps:$4 sm:$0xff]   ;;  %s317_s22 = scalar_lea.vmem [#allocation6], %s10986_s12 }
  0x3c   : > { %s6007_s24 = sshll.u32 %s11626_s23, 3  ;;  %6718 = vmatpush3.bf16.msra.mxu0 %v6715_v3  ;;  %3398 = vmatpush1.bf16.msra.mxu1 %v7426_v40  ;;  %v7430_v42 = vld [vmem:[%s11078_s3 + $0x24] ss:$16 sps:$4 sm:$0xff]   ;;  %v7435_v43 = vld [vmem:[%s11078_s3 + $0x2c] ss:$16 sps:$4 sm:$0xff]   ;;  %v732_v40 = vlaneseq  ;;  %s5892_s23 = sshll.u32 %s317_s22, 4  ;;  %s11000_s23 = int_to_ptr.vmem [resolvable:$true] %s5892_s23 }
  0x3d   : > { %s8127_s26 = scalar_lea.vmem %s11075_s0, %s6007_s24  ;;  %6721 = vmatprep.subr.msk.bf16.mxu0 %vm6720_vm3, %v6719_v6  ;;  %v7432_v44 = vld [vmem:[%s11078_s3 + $0x20] ss:$16 sps:$4 sm:$0xff]   ;;  %v7433_v45 = vld [vmem:[%s11078_s3 + $0x28] ss:$16 sps:$4 sm:$0xff]   ;;  %3399 = vmatprep.subr.bf16.mxu1 %v7430_v42  ;;  %v7436_v46 = vld [vmem:[%s11078_s3 + $0x44] ss:$16 sps:$4 sm:$0xff]   ;;  %s10998_s25 = scalar_lea.hbm %s11082_s7, %s6331_s21 }
  0x3e   : > { %v331_v5 = vld [vmem:[%s8127_s26] sm:$0xff]  ;;  %v332_v7 = vld [vmem:[%s8127_s26 + $0x8] sm:$0xff]  ;;  %v333_v8 = vld [vmem:[%s8127_s26 + $0x10] sm:$0xff]  ;;  %s5876_s17 = scalar_lea.sflag [#allocation5], %s10986_s12  ;;  %s7888_s19 = scalar_lea.vmem %s11000_s23, 16 }
  0x3f   : > { %6667 = vmatprep.mubr.msk.f32.mxu0 %vm374_vm1, %v331_v5  ;;  %v334_v9 = vld [vmem:[%s8127_s26 + $0x18] sm:$0xff]  ;;  %v335_v10 = vld [vmem:[%s8127_s26 + $0x20] sm:$0xff]  ;;  %v336_v11 = vld [vmem:[%s8127_s26 + $0x28] sm:$0xff]  ;;  %p7889_p6 = scmp.ne.s32.totalorder %s11000_s23, %s7888_s19  ;;  %p11619_p9 = scmp.ne.s32.totalorder %s11180_s15, 0 }
  0x40   : > { %6724 = vmatpush3.bf16.msk.msra.mxu0 %vm6720_vm3, %v6719_v6  ;;  %v337_v12 = vld [vmem:[%s8127_s26 + $0x30] sm:$0xff]  ;;  %v338_v13 = vld [vmem:[%s8127_s26 + $0x38] sm:$0xff]  ;;  %v339_v14 = vld [vmem:[%s8127_s26 + $0x40] sm:$0xff]  ;;  %3400 = vmatpush1.bf16.msra.mxu1 %v7432_v44 }
  0x41   : > { %v340_v15 = vld [vmem:[%s8127_s26 + $0x48] sm:$0xff]  ;;  %v341_v16 = vld [vmem:[%s8127_s26 + $0x50] sm:$0xff]  ;;  %v342_v17 = vld [vmem:[%s8127_s26 + $0x58] sm:$0xff]  ;;  %4362 = vmatprep.subr.bf16.mxu0 %v7429_v39  ;;  %3401 = vmatprep.subr.bf16.mxu1 %v7436_v46  ;;  %p7890_p10 = pnand %p7889_p6, %p11619_p9 }
  0x42   : > { %v343_v18 = vld [vmem:[%s8127_s26 + $0x60] sm:$0xff]  ;;  %v344_v19 = vld [vmem:[%s8127_s26 + $0x68] sm:$0xff]  ;;  %v345_v20 = vld [vmem:[%s8127_s26 + $0x70] sm:$0xff] }
  0x43   : > { %6668 = vmatmul.mubr.msk.f32.vlgmr.msra.gmra.mrb[0].mxu0 %vm374_vm1, %v332_v7  ;;  %v346_v21 = vld [vmem:[%s8127_s26 + $0x78] sm:$0xff]  ;;  %v347_v22 = vld [vmem:[%s8127_s26 + $0x80] sm:$0xff]  ;;  %v348_v23 = vld [vmem:[%s8127_s26 + $0x88] sm:$0xff]  ;;  %p7891_p12 = pneg %p7890_p10 }
  0x44   : > { %6670 = vmatprep.mubr.msk.f32.mxu0 %vm374_vm1, %v333_v8  ;;  %v349_v24 = vld [vmem:[%s8127_s26 + $0x90] sm:$0xff]  ;;  %v350_v25 = vld [vmem:[%s8127_s26 + $0x98] sm:$0xff]  ;;  %v351_v26 = vld [vmem:[%s8127_s26 + $0xa0] sm:$0xff]  ;;  %4363 = vmatpush1.bf16.msra.mxu0 %v7427_v41  ;;  %v8403_v41 = vshrl.u32 %v732_v40, 7 }
  0x45   : > { %v352_v27 = vld [vmem:[%s8127_s26 + $0xa8] sm:$0xff]  ;;  %v353_v28 = vld [vmem:[%s8127_s26 + $0xb0] sm:$0xff]  ;;  %v354_v29 = vld [vmem:[%s8127_s26 + $0xb8] sm:$0xff]  ;;  %4364 = vmatprep.subr.bf16.mxu0 %v7435_v43 }
  0x46   : > { %v355_v30 = vld [vmem:[%s8127_s26 + $0xc0] sm:$0xff]  ;;  %v356_v31 = vld [vmem:[%s8127_s26 + $0xc8] sm:$0xff]  ;;  %v357_v32 = vld [vmem:[%s8127_s26 + $0xd0] sm:$0xff]  ;;  %11187 = vst [vmem:[#allocation12_spill] sm:$0xff] %v8403_v41  ;;  %v734_v42 = vadd.s32 8, %v8403_v41  ;;  %v736_v43 = vadd.s32 24, %v8403_v41 }
  0x47   : > { %6671 = vmatmul.mubr.msk.f32.gmra.mrb[2].mxu0 %vm374_vm1, %v334_v9  ;;  %v358_v33 = vld [vmem:[%s8127_s26 + $0xd8] sm:$0xff]  ;;  %v359_v34 = vld [vmem:[%s8127_s26 + $0xe0] sm:$0xff]  ;;  %v360_v35 = vld [vmem:[%s8127_s26 + $0xe8] sm:$0xff]  ;;  %v735_v44 = vadd.s32 16, %v8403_v41  ;;  %v765_v46 = vand.u32 255, %v8403_v41  ;;  %vm11107_vm3 = vcmp.lt.s32.totalorder %v8403_v41, 7 }
  0x48   : > { %6673 = vmatprep.mubr.msk.f32.mxu0 %vm374_vm1, %v335_v10  ;;  %v361_v36 = vld [vmem:[%s8127_s26 + $0xf0] sm:$0xff]  ;;  %v362_v37 = vld [vmem:[%s8127_s26 + $0xf8] sm:$0xff]  ;;  %4365 = vmatpush1.bf16.msra.mxu0 %v7433_v45  ;;  %v766_v45 = vand.u32 255, %v734_v42  ;;  %s7993_s26 = smov [#allocation6]  }
  0x49   : > { %v7438_v47 = vld [vmem:[%s11078_s3 + $0x40] ss:$16 sps:$4 sm:$0xff]   ;;  %v7439_v48 = vld [vmem:[%s11078_s3 + $0x48] ss:$16 sps:$4 sm:$0xff]   ;;  %v7441_v49 = vld [vmem:[%s11078_s3 + $0x4c] ss:$16 sps:$4 sm:$0xff]  }
  0x4a   : > { %3402 = vmatpush1.bf16.msra.mxu1 %v7438_v47  ;;  %4366 = vmatprep.subr.bf16.mxu0 %v7441_v49  ;;  %v7442_v50 = vld [vmem:[%s11078_s3 + $0x64] ss:$16 sps:$4 sm:$0xff]   ;;  %v7444_v51 = vld [vmem:[%s11078_s3 + $0x60] ss:$16 sps:$4 sm:$0xff]   ;;  %v7445_v52 = vld [vmem:[%s11078_s3 + $0x68] ss:$16 sps:$4 sm:$0xff]  }
  0x4b   : > { %6674 = vmatmul.mubr.msk.f32.gmra.mrb[4].mxu0 %vm374_vm1, %v336_v11  ;;  %3403 = vmatprep.subr.bf16.mxu1 %v7442_v50  ;;  %v7447_v53 = vld [vmem:[%s11078_s3 + $0x6c] ss:$16 sps:$4 sm:$0xff]   ;;  %v7448_v54 = vld [vmem:[%s11078_s3 + $0x84] ss:$16 sps:$4 sm:$0xff]   ;;  %v7450_v56 = vld [vmem:[%s11078_s3 + $0x80] ss:$16 sps:$4 sm:$0xff]  }
  0x4c   : > { %6676 = vmatprep.mubr.msk.f32.mxu0 %vm374_vm1, %v337_v12  ;;  %4367 = vmatpush1.bf16.msra.mxu0 %v7439_v48  ;;  %v7453_v55 = vld [vmem:[%s11078_s3 + $0x8c] ss:$16 sps:$4 sm:$0xff]   ;;  %v7451_v57 = vld [vmem:[%s11078_s3 + $0x88] ss:$16 sps:$4 sm:$0xff]   ;;  %v7454_v58 = vld [vmem:[%s11078_s3 + $0xa4] ss:$16 sps:$4 sm:$0xff]  }
  0x4d   : > { %4368 = vmatprep.subr.bf16.mxu0 %v7447_v53  ;;  %v7456_v59 = vld [vmem:[%s11078_s3 + $0xa0] ss:$16 sps:$4 sm:$0xff]   ;;  %v7457_v60 = vld [vmem:[%s11078_s3 + $0xa8] ss:$16 sps:$4 sm:$0xff]   ;;  %v7459_v61 = vld [vmem:[%s11078_s3 + $0xac] ss:$16 sps:$4 sm:$0xff]  }
  0x4e   : > { %3404 = vmatpush1.bf16.msra.mxu1 %v7444_v51  ;;  %v7460_v62 = vld [vmem:[%s11078_s3 + $0xc4] ss:$16 sps:$4 sm:$0xff]   ;;  %v7462_v63 = vld [vmem:[%s11078_s3 + $0xc0] ss:$16 sps:$4 sm:$0xff]   ;;  %v7463_v0 = vld [vmem:[%s11078_s3 + $0xc8] ss:$16 sps:$4 sm:$0xff]  }
  0x4f   : > { %6677 = vmatmul.mubr.msk.f32.gmra.mrb[6].mxu0 %vm374_vm1, %v338_v13  ;;  %3405 = vmatprep.subr.bf16.mxu1 %v7448_v54  ;;  %v7465_v1 = vld [vmem:[%s11078_s3 + $0xcc] ss:$16 sps:$4 sm:$0xff]   ;;  %v7466_v2 = vld [vmem:[%s11078_s3 + $0xe4] ss:$16 sps:$4 sm:$0xff]   ;;  %v7468_v3 = vld [vmem:[%s11078_s3 + $0xe0] ss:$16 sps:$4 sm:$0xff]  }
  0x50   : > { %6679 = vmatprep.mubr.msk.f32.mxu0 %vm374_vm1, %v339_v14  ;;  %4369 = vmatpush1.bf16.msra.mxu0 %v7445_v52  ;;  %v7469_v4 = vld [vmem:[%s11078_s3 + $0xe8] ss:$16 sps:$4 sm:$0xff]   ;;  %v7471_v5 = vld [vmem:[%s11078_s3 + $0xec] ss:$16 sps:$4 sm:$0xff]   ;;  %v7472_v6 = vld [vmem:[%s11078_s3 + $0x104] ss:$16 sps:$4 sm:$0xff]  }
  0x51   : > { %4370 = vmatprep.subr.bf16.mxu0 %v7453_v55  ;;  %v7477_v7 = vld [vmem:[%s11078_s3 + $0x10c] ss:$16 sps:$4 sm:$0xff]   ;;  %v7474_v8 = vld [vmem:[%s11078_s3 + $0x100] ss:$16 sps:$4 sm:$0xff]   ;;  %v7475_v9 = vld [vmem:[%s11078_s3 + $0x108] ss:$16 sps:$4 sm:$0xff]  }
  0x52   : > { %3406 = vmatpush1.bf16.msra.mxu1 %v7450_v56  ;;  %v7478_v10 = vld [vmem:[%s11078_s3 + $0x124] ss:$16 sps:$4 sm:$0xff]   ;;  %v7483_v11 = vld [vmem:[%s11078_s3 + $0x12c] ss:$16 sps:$4 sm:$0xff]   ;;  %v7480_v12 = vld [vmem:[%s11078_s3 + $0x120] ss:$16 sps:$4 sm:$0xff]  }
  0x53   : > { %6680 = vmatmul.mubr.msk.f32.gmra.mrb[8].mxu0 %vm374_vm1, %v340_v15  ;;  %3407 = vmatprep.subr.bf16.mxu1 %v7454_v58  ;;  %v7481_v13 = vld [vmem:[%s11078_s3 + $0x128] ss:$16 sps:$4 sm:$0xff]   ;;  %v7484_v14 = vld [vmem:[%s11078_s3 + $0x144] ss:$16 sps:$4 sm:$0xff]   ;;  %v7486_v15 = vld [vmem:[%s11078_s3 + $0x140] ss:$16 sps:$4 sm:$0xff]  }
  0x54   : > { %6682 = vmatprep.mubr.msk.f32.mxu0 %vm374_vm1, %v341_v16  ;;  %4371 = vmatpush1.bf16.msra.mxu0 %v7451_v57  ;;  %v7487_v16 = vld [vmem:[%s11078_s3 + $0x148] ss:$16 sps:$4 sm:$0xff]   ;;  %v7522_v38 = vld [vmem:[%s11078_s3 + $0x204] ss:$16 sps:$4 sm:$0xff]   ;;  %v7525_v39 = vld [vmem:[%s11078_s3 + $0x20c] ss:$16 sps:$4 sm:$0xff]  }
  0x55   : > { %4372 = vmatprep.subr.bf16.mxu0 %v7459_v61  ;;  %v738_v47 = vadd.s32 40, %v8403_v41  ;;  %v768_v48 = vand.u32 255, %v736_v43  ;;  %v737_v49 = vadd.s32 32, %v8403_v41  ;;  %v767_v50 = vand.u32 255, %v735_v44  ;;  %s7892_s10 = sshll.u32 %s7993_s26, 4  ;;  %s7893_s10 = int_to_ptr.vmem [resolvable:$false] %s7892_s10 }
  0x56   : > { %3408 = vmatpush1.bf16.msra.mxu1 %v7456_v59  ;;  %v740_v51 = vadd.s32 56, %v8403_v41  ;;  %v8412_v52 = vshra.s32 %v766_v45, 4  ;;  %v739_v53 = vadd.s32 48, %v8403_v41  ;;  %v742_v54 = vadd.s32 72, %v8403_v41  ;;  %s7894_s13 = scalar_lea.vmem %s7893_s10, 32  ;;  %p7895_p2 = scmp.lt.s32.totalorder %s11000_s23, %s7893_s10 }
  0x57   : > { %6683 = vmatmul.mubr.msk.f32.gmra.mrb[10].mxu0 %vm374_vm1, %v342_v17  ;;  %3409 = vmatprep.subr.bf16.mxu1 %v7460_v62  ;;  %v7489_v17 = vld [vmem:[%s11078_s3 + $0x14c] ss:$16 sps:$4 sm:$0xff]   ;;  %v8416_v55 = vand.u32 15, %v766_v45  ;;  %v8418_v56 = vshra.s32 %v765_v46, 4  ;;  %v770_v57 = vand.u32 255, %v738_v47  ;;  %v741_v58 = vadd.s32 64, %v8403_v41  ;;  %p7896_p3 = scmp.lt.s32.totalorder %s7894_s13, %s7888_s19 }
  0x58   : > { %6685 = vmatprep.mubr.msk.f32.mxu0 %vm374_vm1, %v343_v18  ;;  %4373 = vmatpush1.bf16.msra.mxu0 %v7457_v60  ;;  %v7490_v18 = vld [vmem:[%s11078_s3 + $0x164] ss:$16 sps:$4 sm:$0xff]   ;;  %v8421_v59 = vand.u32 15, %v765_v46  ;;  %v8423_v60 = vshra.s32 %v768_v48, 4  ;;  %v769_v61 = vand.u32 255, %v737_v49  ;;  %v744_v62 = vadd.s32 88, %v8403_v41 }
  0x59   : > { %4374 = vmatprep.subr.bf16.mxu0 %v7465_v1  ;;  %v772_v1 = vand.u32 255, %v740_v51  ;;  %vm862_vm4 = vcmp.ge.s32.totalorder %v8412_v52, 1  ;;  %vm894_vm5 = vcmp.le.s32.totalorder %v8412_v52, 14  ;;  %vm861_vm6 = vcmp.ge.s32.totalorder %v8418_v56, 1  ;;  %v8538_v52 = vld [vmem:[%s11077_s2] ss:$0 sm:$0xff]  ;;  %p7897_p4 = por %p7896_p3, %p7895_p2 }
  0x5a   : > { %3410 = vmatpush1.bf16.msra.mxu1 %v7462_v63  ;;  %v8426_v63 = vand.u32 15, %v768_v48  ;;  %vm893_vm7 = vcmp.le.s32.totalorder %v8418_v56, 14  ;;  %vm1022_vm8 = vcmp.le.s32.totalorder %v8416_v55, 14  ;;  %vm957_vm9 = vcmp.ge.s32.totalorder %v8421_v59, 1  ;;  %vm8522_vm2 = vmand %vm862_vm4, %vm894_vm5 }
  0x5b   : > { %6686 = vmatmul.mubr.msk.f32.gmra.mrb[12].mxu0 %vm374_vm1, %v344_v19  ;;  %3411 = vmatprep.subr.bf16.mxu1 %v7466_v2  ;;  %v7492_v19 = vld [vmem:[%s11078_s3 + $0x160] ss:$16 sps:$4 sm:$0xff]   ;;  %v743_v2 = vadd.s32 80, %v8403_v41  ;;  %vm864_vm10 = vcmp.ge.s32.totalorder %v8423_v60, 1  ;;  %vm896_vm11 = vcmp.le.s32.totalorder %v8423_v60, 14  ;;  %v753_v43 = vadd.s32 160, %v8403_v41  ;;  %vm8544_vm4 = vmand %vm861_vm6, %vm893_vm7  ;;  %p7898_p7 = pnand %p7897_p4, %p7891_p12 }
  0x5c   : > { %6688 = vmatprep.mubr.msk.f32.mxu0 %vm374_vm1, %v345_v20  ;;  %4375 = vmatpush1.bf16.msra.mxu0 %v7463_v0  ;;  %v7493_v20 = vld [vmem:[%s11078_s3 + $0x168] ss:$16 sps:$4 sm:$0xff]   ;;  %v8428_v0 = vshra.s32 %v767_v50, 4  ;;  %v756_v47 = vadd.s32 184, %v8403_v41  ;;  %v755_v51 = vadd.s32 176, %v8403_v41  ;;  %vm1024_vm14 = vcmp.le.s32.totalorder %v8426_v63, 14  ;;  %vm8565_vm6 = vmand %vm8522_vm2, %vm1022_vm8 }
  0x5d   : > { %4376 = vmatprep.subr.bf16.mxu0 %v7471_v5  ;;  %v774_v5 = vand.u32 255, %v742_v54  ;;  %vm11109_vm5 = vcmp.lt.s32.totalorder %v8403_v41, 1  ;;  %vm8584_vm8 = vmand %vm8544_vm4, %vm957_vm9 }
  0x5e   : > { %3412 = vmatpush1.bf16.msra.mxu1 %v7468_v3  ;;  %v8431_v3 = vand.u32 15, %v767_v50  ;;  %vm863_vm12 = vcmp.ge.s32.totalorder %v8428_v0, 1  ;;  %vm895_vm13 = vcmp.le.s32.totalorder %v8428_v0, 14  ;;  %vm8601_vm9 = vmand %vm864_vm10, %vm896_vm11 }
  0x5f   : > { %6689 = vmatmul.mubr.msk.f32.gmra.mrb[14].mxu0 %vm374_vm1, %v346_v21  ;;  %3413 = vmatprep.subr.bf16.mxu1 %v7472_v6  ;;  %v7495_v21 = vld [vmem:[%s11078_s3 + $0x16c] ss:$16 sps:$4 sm:$0xff]   ;;  %v746_v6 = vadd.s32 104, %v8403_v41  ;;  %vm8617_vm7 = vmand %vm863_vm12, %vm895_vm13 }
  0x60   : > { %6691 = vmatprep.mubr.msk.f32.mxu0 %vm374_vm1, %v347_v22  ;;  %4377 = vmatpush1.bf16.msra.mxu0 %v7469_v4  ;;  %v7496_v22 = vld [vmem:[%s11078_s3 + $0x184] ss:$16 sps:$4 sm:$0xff]   ;;  %v771_v4 = vand.u32 255, %v739_v53  ;;  %vm959_vm15 = vcmp.ge.s32.totalorder %v8431_v3, 1  ;;  %vm8645_vm12 = vmand %vm8601_vm9, %vm1024_vm14 }
  0x61   : > { %4378 = vmatprep.subr.bf16.mxu0 %v7477_v7  ;;  %v8434_v7 = vshra.s32 %v770_v57, 4  ;;  %vm8665_vm14 = vmand %vm8617_vm7, %vm959_vm15 }
  0x62   : > { %3414 = vmatpush1.bf16.msra.mxu1 %v7474_v8  ;;  %v8436_v8 = vand.u32 15, %v770_v57 }
  0x63   : > { %6692 = vmatmul.mubr.msk.f32.gmra.mrb[16].mxu0 %vm374_vm1, %v348_v23  ;;  %3415 = vmatprep.subr.bf16.mxu1 %v7478_v10  ;;  %v7501_v23 = vld [vmem:[%s11078_s3 + $0x18c] ss:$16 sps:$4 sm:$0xff]   ;;  %v745_v10 = vadd.s32 96, %v8403_v41  ;;  %vm11217_vm13 = vcmp.ge.s32.totalorder %v8434_v7, 1 }
  0x64   : > { %6694 = vmatprep.mubr.msk.f32.mxu0 %vm374_vm1, %v349_v24  ;;  %4379 = vmatpush1.bf16.msra.mxu0 %v7475_v9  ;;  %v7498_v24 = vld [vmem:[%s11078_s3 + $0x180] ss:$16 sps:$4 sm:$0xff]   ;;  %v773_v9 = vand.u32 255, %v741_v58  ;;  %v758_v58 = vadd.s32 200, %v8403_v41  ;;  %vm1026_vm0 = vcmp.le.s32.totalorder %v8436_v8, 14  ;;  %v11231_v8 = vmov 0 }
  0x65   : > { %4380 = vmatprep.subr.bf16.mxu0 %v7483_v11  ;;  %v8439_v11 = vshra.s32 %v769_v61, 4 }
  0x66   : > { %3416 = vmatpush1.bf16.msra.mxu1 %v7480_v12  ;;  %v8441_v12 = vand.u32 15, %v769_v61 }
  0x67   : > { %6695 = vmatmul.mubr.msk.f32.gmra.mrb[18].mxu0 %vm374_vm1, %v350_v25  ;;  %3417 = vmatprep.subr.bf16.mxu1 %v7484_v14  ;;  %v7499_v25 = vld [vmem:[%s11078_s3 + $0x188] ss:$16 sps:$4 sm:$0xff]   ;;  %v748_v14 = vadd.s32 120, %v8403_v41  ;;  %vm11220_vm9 = vcmp.le.s32.totalorder %v8439_v11, 14  ;;  %vm11221_vm10 = vcmp.ge.s32.totalorder %v8439_v11, 1 }
  0x68   : > { %6697 = vmatprep.mubr.msk.f32.mxu0 %vm374_vm1, %v351_v26  ;;  %4381 = vmatpush1.bf16.msra.mxu0 %v7481_v13  ;;  %v7502_v26 = vld [vmem:[%s11078_s3 + $0x1a4] ss:$16 sps:$4 sm:$0xff]   ;;  %v776_v13 = vand.u32 255, %v744_v62  ;;  %v785_v62 = vand.u32 255, %v753_v43  ;;  %vm8687_vm11 = vmand %vm11221_vm10, %vm11220_vm9  ;;  %vm11230_vm9 = vcmp.ge.s32.totalorder %v8441_v12, 1 }
  0x69   : > { %4382 = vmatprep.subr.bf16.mxu0 %v7489_v17  ;;  %v775_v17 = vand.u32 255, %v743_v2  ;;  %v760_v2 = vadd.s32 216, %v8403_v41  ;;  %vm8736_vm2 = vmand %vm8687_vm11, %vm11230_vm9 }
  0x6a   : > { %3418 = vmatpush1.bf16.msra.mxu1 %v7486_v15  ;;  %v8444_v15 = vshra.s32 %v772_v1, 4  ;;  %v8559_v56 = vshra.s32 %v785_v62, 4  ;;  %v8570_v43 = vand.u32 15, %v785_v62  ;;  %v8594_v62 = vadd.s32 224, %v8403_v41 }
  0x6b   : > { %6698 = vmatmul.mubr.msk.f32.gmra.mrb[20].mxu0 %vm374_vm1, %v352_v27  ;;  %3419 = vmatprep.subr.bf16.mxu1 %v7490_v18  ;;  %v7507_v27 = vld [vmem:[%s11078_s3 + $0x1ac] ss:$16 sps:$4 sm:$0xff]   ;;  %v747_v18 = vadd.s32 112, %v8403_v41  ;;  %v11232_v8 = vsel %vm8736_vm2, 4294967295, %v11231_v8 }
  0x6c   : > { %6700 = vmatprep.mubr.msk.f32.mxu0 %vm374_vm1, %v353_v28  ;;  %4383 = vmatpush1.bf16.msra.mxu0 %v7487_v16  ;;  %v7504_v28 = vld [vmem:[%s11078_s3 + $0x1a0] ss:$16 sps:$4 sm:$0xff]   ;;  %v8446_v16 = vand.u32 15, %v772_v1  ;;  %v757_v1 = vadd.s32 192, %v8403_v41 }
  0x6d   : > { %4384 = vmatprep.subr.bf16.mxu0 %v7495_v21  ;;  %v8455_v21 = vshra.s32 %v774_v5, 4 }
  0x6e   : > { %3420 = vmatpush1.bf16.msra.mxu1 %v7492_v19  ;;  %v8451_v19 = vshra.s32 %v771_v4, 4  ;;  %vm11247_vm9 = vcmp.le.s32.totalorder %v8446_v16, 14 }
  0x6f   : > { %6701 = vmatmul.mubr.msk.f32.gmra.mrb[22].mxu0 %vm374_vm1, %v354_v29  ;;  %3421 = vmatprep.subr.bf16.mxu1 %v7496_v22  ;;  %v7505_v29 = vld [vmem:[%s11078_s3 + $0x1a8] ss:$16 sps:$4 sm:$0xff]   ;;  %v778_v22 = vand.u32 255, %v746_v6 }
  0x70   : > { %6703 = vmatprep.mubr.msk.f32.mxu0 %vm374_vm1, %v355_v30  ;;  %4385 = vmatpush1.bf16.msra.mxu0 %v7493_v20  ;;  %v7508_v30 = vld [vmem:[%s11078_s3 + $0x1c4] ss:$16 sps:$4 sm:$0xff]   ;;  %v8453_v20 = vand.u32 15, %v771_v4  ;;  %vm11238_vm15 = vcmp.ge.s32.totalorder %v8451_v19, 1 }
  0x71   : > { %4386 = vmatprep.subr.bf16.mxu0 %v7501_v23  ;;  %v8459_v23 = vand.u32 15, %v774_v5 }
  0x72   : > { %3422 = vmatpush1.bf16.msra.mxu1 %v7498_v24  ;;  %v8461_v24 = vshra.s32 %v773_v9, 4 }
  0x73   : > { %6704 = vmatmul.mubr.msk.f32.gmra.mrb[24].mxu0 %vm374_vm1, %v356_v31  ;;  %3423 = vmatprep.subr.bf16.mxu1 %v7502_v26  ;;  %v7510_v31 = vld [vmem:[%s11078_s3 + $0x1c0] ss:$16 sps:$4 sm:$0xff]   ;;  %v750_v26 = vadd.s32 136, %v8403_v41 }
  0x74   : > { %6706 = vmatprep.mubr.msk.f32.mxu0 %vm374_vm1, %v357_v32  ;;  %4387 = vmatpush1.bf16.msra.mxu0 %v7499_v25  ;;  %v7511_v32 = vld [vmem:[%s11078_s3 + $0x1c8] ss:$16 sps:$4 sm:$0xff]   ;;  %v777_v25 = vand.u32 255, %v745_v10 }
  0x75   : > { %4388 = vmatprep.subr.bf16.mxu0 %v7507_v27  ;;  %v8464_v27 = vand.u32 15, %v773_v9  ;;  %v782_v42 = vand.u32 255, %v750_v26  ;;  %v788_v9 = vand.u32 255, %v756_v47 }
  0x76   : > { %3424 = vmatpush1.bf16.msra.mxu1 %v7504_v28  ;;  %v8466_v28 = vshra.s32 %v776_v13, 4  ;;  %v8486_v40 = vshra.s32 %v777_v25, 4  ;;  %v8491_v44 = vand.u32 15, %v777_v25 }
  0x77   : > { %6707 = vmatmul.mubr.msk.f32.gmra.mrb[26].mxu0 %vm374_vm1, %v358_v33  ;;  %3425 = vmatprep.subr.bf16.mxu1 %v7508_v30  ;;  %v7513_v33 = vld [vmem:[%s11078_s3 + $0x1cc] ss:$16 sps:$4 sm:$0xff]   ;;  %v749_v30 = vadd.s32 128, %v8403_v41  ;;  %v8506_v61 = vshra.s32 %v782_v42, 4  ;;  %v8512_v4 = vand.u32 15, %v782_v42  ;;  %v11192_v42 = vmov 0 }
  0x78   : > { %6709 = vmatprep.mubr.msk.f32.mxu0 %vm374_vm1, %v359_v34  ;;  %4389 = vmatpush1.bf16.msra.mxu0 %v7505_v29  ;;  %v7514_v34 = vld [vmem:[%s11078_s3 + $0x1e4] ss:$16 sps:$4 sm:$0xff]   ;;  %v780_v29 = vand.u32 255, %v748_v14  ;;  %v11193_v42 = vsel %vm8565_vm6, 4294967295, %v11192_v42  ;;  %v8574_v47 = vand.u32 15, %v788_v9 }
  0x79   : > { %4390 = vmatprep.subr.bf16.mxu0 %v7513_v33  ;;  %v779_v33 = vand.u32 255, %v747_v18  ;;  %v781_v46 = vand.u32 255, %v749_v30  ;;  %v8533_v18 = vadd.s32 208, %v8403_v41  ;;  %v790_v30 = vand.u32 255, %v758_v58  ;;  %11194 = vst [vmem:[#allocation13_spill] sm:$0xff] %v11193_v42 }
  0x7a   : > { %3426 = vmatpush1.bf16.msra.mxu1 %v7510_v31  ;;  %v8470_v31 = vand.u32 15, %v776_v13  ;;  %v8493_v45 = vshra.s32 %v780_v29, 4  ;;  %v8496_v48 = vand.u32 15, %v780_v29 }
  0x7b   : > { %6710 = vmatmul.mubr.msk.f32.gmra.mrb[28].mxu0 %vm374_vm1, %v360_v35  ;;  %v7519_v35 = vld [vmem:[%s11078_s3 + $0x1ec] ss:$16 sps:$4 sm:$0xff]   ;;  %3427 = vmatprep.subr.bf16.mxu1 %v7514_v34  ;;  %v752_v34 = vadd.s32 152, %v8403_v41  ;;  %v8498_v49 = vshra.s32 %v779_v33, 4  ;;  %v8502_v53 = vand.u32 15, %v779_v33  ;;  %v8514_v5 = vshra.s32 %v781_v46, 4 }
  0x7c   : > { %6712 = vmatprep.mubr.msk.f32.mxu0 %vm374_vm1, %v361_v36  ;;  %4391 = vmatpush1.bf16.msra.mxu0 %v7511_v32  ;;  %v7516_v36 = vld [vmem:[%s11078_s3 + $0x1e0] ss:$16 sps:$4 sm:$0xff]   ;;  %v8472_v32 = vshra.s32 %v775_v17, 4  ;;  %v8516_v6 = vand.u32 15, %v781_v46  ;;  %v8572_v46 = vshra.s32 %v788_v9, 4  ;;  %v791_v58 = vand.u32 255, %v8533_v18 }
  0x7d   : > { %4392 = vmatprep.subr.bf16.mxu0 %v7519_v35  ;;  %v8476_v35 = vand.u32 15, %v775_v17  ;;  %v784_v50 = vand.u32 255, %v752_v34  ;;  %v787_v17 = vand.u32 255, %v755_v51  ;;  %v789_v34 = vand.u32 255, %v757_v1 }
  0x7e   : > { %3428 = vmatpush1.bf16.msra.mxu1 %v7516_v36  ;;  %v8478_v36 = vshra.s32 %v778_v22, 4  ;;  %v8609_v9 = vshra.s32 %v790_v30, 4  ;;  %v8611_v10 = vand.u32 15, %v790_v30 }
  0x7f   : > { %6713 = vmatmul.mubr.msk.f32.gmra.mrb[30].mxu0 %vm374_vm1, %v362_v37  ;;  %v7517_v37 = vld [vmem:[%s11078_s3 + $0x1e8] ss:$16 sps:$4 sm:$0xff]   ;;  %3590 = vmatprep.subr.bf16.mxu1 %v7522_v38  ;;  %v754_v38 = vadd.s32 168, %v8403_v41  ;;  %vm898_vm1 = vcmp.le.s32.totalorder %v8434_v7, 14  ;;  %v8528_v13 = vshra.s32 %v784_v50, 4  ;;  %v8530_v14 = vand.u32 15, %v784_v50 }
  0x80   : > { %4393 = vmatpush1.bf16.msra.mxu0 %v7517_v37  ;;  %v751_v37 = vadd.s32 144, %v8403_v41  ;;  %v8577_v50 = vadd.s32 232, %v8403_v41  ;;  %11201 = vst [vmem:[#allocation16_spill] sm:$0xff] %v8611_v10  ;;  %v8634_v10 = vadd.s32 248, %v8403_v41  ;;  %vm8677_vm4 = vmand %vm11217_vm13, %vm898_vm1  ;;  %v8693_v7 = vand.u32 15, %v791_v58 }
  0x81   : > { %4555 = vmatprep.subr.bf16.mxu0 %v7525_v39  ;;  %v8484_v39 = vand.u32 15, %v778_v22  ;;  %v786_v57 = vand.u32 255, %v754_v38  ;;  %v8623_v22 = vshra.s32 %v789_v34, 4  ;;  %vm8722_vm10 = vmand %vm8677_vm4, %vm1026_vm0  ;;  %vm11233_vm4 = vcmp.le.s32.totalorder %v8444_v15, 14 }
  0x82   : > { %v783_v54 = vand.u32 255, %v751_v37  ;;  %v792_v37 = vand.u32 255, %v760_v2  ;;  %v8607_v2 = vand.u32 15, %v787_v17  ;;  %v794_v0 = vand.u32 255, %v8577_v50  ;;  %11224 = vst [vmem:[#allocation26_spill] sm:$0xff] %v8693_v7 }
  0x83   : > { %v8554_v29 = vshra.s32 %v786_v57, 4  ;;  %v8557_v33 = vand.u32 15, %v786_v57  ;;  %v8590_v57 = vshra.s32 %v787_v17, 4  ;;  %11204 = vst [vmem:[#allocation17_spill] sm:$0xff] %v8623_v22  ;;  %v8625_v17 = vand.u32 15, %v789_v34 }
  0x84   : > { %v8550_v25 = vshra.s32 %v783_v54, 4  ;;  %v8552_v26 = vand.u32 15, %v783_v54  ;;  %v11195_v54 = vmov 0  ;;  %11200 = vst [vmem:[#allocation15_spill] sm:$0xff] %v8607_v2  ;;  %v8650_v50 = vshra.s32 %v791_v58, 4 }
  0x85   : > { %v11196_v54 = vsel %vm8584_vm8, 4294967295, %v11195_v54  ;;  %11205 = vst [vmem:[#allocation18_spill] sm:$0xff] %v8625_v17  ;;  %v8741_v3 = vand.u32 15, %v794_v0  ;;  %vm11234_vm13 = vcmp.ge.s32.totalorder %v8444_v15, 1  ;;  %vm11237_vm0 = vcmp.le.s32.totalorder %v8451_v19, 14 }
  0x86   : > { %11197 = vst [vmem:[#allocation14_spill] sm:$0xff] %v11196_v54  ;;  %11211 = vst [vmem:[#allocation22_spill] sm:$0xff] %v8650_v50 }
  0x87   : > { %vm8749_vm1 = vmand %vm11234_vm13, %vm11233_vm4  ;;  %vm11250_vm4 = vcmp.ge.s32.totalorder %v8453_v20, 1  ;;  %v11254_v20 = vmov 0 }
  0x88   : > { %vm8760_vm7 = vmand %vm11238_vm15, %vm11237_vm0  ;;  %vm11242_vm15 = vcmp.le.s32.totalorder %v8455_v21, 14  ;;  %vm11243_vm0 = vcmp.ge.s32.totalorder %v8455_v21, 1  ;;  %v11248_v21 = vmov 0 }
  0x89   : > { %vm8785_vm13 = vmand %vm11243_vm0, %vm11242_vm15 }
  0x8a   : > { %vm8803_vm15 = vmand %vm8749_vm1, %vm11247_vm9  ;;  %vm11253_vm9 = vcmp.le.s32.totalorder %v8459_v23, 14  ;;  %vm11273_vm1 = vcmp.le.s32.totalorder %v8472_v32, 14 }
  0x8b   : > { %v11249_v21 = vsel %vm8803_vm15, 4294967295, %v11248_v21  ;;  %vm8812_vm11 = vmand %vm8760_vm7, %vm11250_vm4  ;;  %vm11257_vm4 = vcmp.ge.s32.totalorder %v8461_v24, 1  ;;  %vm11277_vm7 = vcmp.lt.s32.totalorder %v8403_v41, 1 }
  0x8c   : > { %vm8825_vm0 = vmand %vm8785_vm13, %vm11253_vm9  ;;  %vm11256_vm13 = vcmp.le.s32.totalorder %v8461_v24, 14 }
  0x8d   : > { %v11255_v20 = vsel %vm8825_vm0, 4294967295, %v11254_v20  ;;  %vm8842_vm9 = vmand %vm11257_vm4, %vm11256_vm13  ;;  %vm11262_vm13 = vcmp.ge.s32.totalorder %v8466_v28, 1 }
 0x116   : > { %v6669_v38 = vpop.f32.mrb[0].mxu0 }
 0x117   : > { %v547_v51 = vadd.f32 %v6669_v38, %v8538_v52  ;;  %v541_v55 = vpop.f32.mrb[1].mxu0  ;;  %v8627_v38 = vshra.s32 %v792_v37, 4 }
 0x118   : > { %v542_v1 = vadd.f32 %v8538_v52, %v541_v55  ;;  %v8630_v55 = vand.u32 15, %v792_v37 }
 0x119   : > { %v701_v18 = vmax.f32 %v547_v51, 0.0  ;;  %11206 = vst [vmem:[#allocation19_spill] sm:$0xff] %v8627_v38 }
 0x11a   : > { %v700_v30 = vmax.f32 %v542_v1, 0.0  ;;  %v6672_v51 = vpop.f32.mrb[2].mxu0  ;;  %11207 = vst [vmem:[#allocation20_spill] sm:$0xff] %v8630_v55  ;;  %v11208_v1 = vmov 0  ;;  %v793_v55 = vand.u32 255, %v8594_v62 }
 0x11b   : > { %v8638_v2 = vsel %vm8565_vm6, %v701_v18, 0.0  ;;  %v557_v34 = vadd.f32 %v6672_v51, %v8538_v52  ;;  %v11209_v1 = vsel %vm8645_vm12, 4294967295, %v11208_v1  ;;  %v551_v37 = vpop.f32.mrb[3].mxu0  ;;  %v11214_v51 = vmov 0 }
 0x11c   : > { %11210 = vst [vmem:[#allocation21_spill] sm:$0xff] %v11209_v1  ;;  %v1182_v42 = vrot.slane %v8638_v2, 7  ;;  %v1311_v17 = vrot.slane %v8638_v2, 1  ;;  %v8657_v63 = vsel %vm8584_vm8, %v700_v30, 0.0  ;;  %v8659_v59 = vpack.c.bf16 %v701_v18, %v700_v30 }
 0x11d   : > { %11212 = vst [vmem:[#allocation23_spill] sm:$0xff] %v8657_v63  ;;  %v11215_v51 = vsel %vm8665_vm14, 4294967295, %v11214_v51  ;;  %v11099_v62 = vrot.slane %v8657_v63, 7  ;;  %v11100_v2 = vrot.slane %v8657_v63, 1  ;;  %v703_v50 = vmax.f32 %v557_v34, 0.0 }
 0x11e   : > { %11213 = vst [vmem:[#allocation24_spill] sm:$0xff] %v8659_v59  ;;  %11216 = vst [vmem:[#allocation25_spill] sm:$0xff] %v11215_v51  ;;  %v552_v54 = vadd.f32 %v8538_v52, %v551_v37  ;;  %v6675_v18 = vpop.f32.mrb[4].mxu0  ;;  %v8695_v30 = vshra.s32 %v794_v0, 4  ;;  %v8699_v37 = vadd.s32 240, %v8403_v41  ;;  %v8766_v15 = vand.u32 15, %v793_v55 }
 0x11f   : > { %v8705_v11 = vsel %vm11109_vm5, %v11099_v62, %v1182_v42  ;;  %v1373_v59 = vsel %vm11107_vm3, %v11100_v2, %v1311_v17  ;;  %v8713_v58 = vsel %vm8645_vm12, %v703_v50, 0.0  ;;  %v561_v34 = vpop.f32.mrb[5].mxu0  ;;  %v567_v22 = vadd.f32 %v6675_v18, %v8538_v52 }
 0x120   : > { %11225 = vst [vmem:[#allocation27_spill] sm:$0xff] %v8695_v30  ;;  %11226 = vst [vmem:[#allocation28_spill] sm:$0xff] %v8705_v11  ;;  %v702_v30 = vmax.f32 %v552_v54, 0.0  ;;  %v1184_v7 = vrot.slane %v8713_v58, 7  ;;  %v1313_v38 = vrot.slane %v8713_v58, 1  ;;  %v11227_v62 = vmov 0 }
 0x121   : > { %v11228_v62 = vsel %vm8722_vm10, 4294967295, %v11227_v62  ;;  %v562_v2 = vadd.f32 %v8538_v52, %v561_v34  ;;  %v8743_v18 = vshra.s32 %v793_v55, 4  ;;  %v705_v51 = vmax.f32 %v567_v22, 0.0 }
 0x122   : > { %v1151_v54 = vsel %vm8665_vm14, %v702_v30, 0.0  ;;  %v8730_v1 = vpack.c.bf16 %v703_v50, %v702_v30  ;;  %v6678_v50 = vpop.f32.mrb[6].mxu0 }
 0x123   : > { %v1183_v34 = vrot.slane %v1151_v54, 7  ;;  %v1312_v58 = vrot.slane %v1151_v54, 1  ;;  %v704_v11 = vmax.f32 %v562_v2, 0.0  ;;  %v577_v0 = vadd.f32 %v6678_v50, %v8538_v52  ;;  %v571_v60 = vpop.f32.mrb[7].mxu0 }
 0x124   : > { %11229 = vst [vmem:[#allocation29_spill] sm:$0xff] %v8730_v1  ;;  %v11241_v2 = vand.u32 255, %v8634_v10 }
 0x125   : > { %v1242_v50 = vsel %vm11109_vm5, %v1183_v34, %v1184_v7  ;;  %v1243_v19 = vsel %vm11109_vm5, %v1182_v42, %v1183_v34  ;;  %v1371_v1 = vsel %vm11107_vm3, %v1312_v58, %v1313_v38  ;;  %v1372_v63 = vsel %vm11107_vm3, %v1311_v17, %v1312_v58 }
 0x126   : > { %v8770_v30 = vshra.s32 %v11241_v2, 4  ;;  %v8791_v2 = vpack.c.bf16 %v1242_v50, %v1243_v19  ;;  %v8793_v42 = vpack.c.bf16 %v1372_v63, %v1373_v59  ;;  %v1154_v34 = vsel %vm8722_vm10, %v705_v51, 0.0  ;;  %v6681_v16 = vpop.f32.mrb[8].mxu0 }
 0x127   : > { %v1153_v17 = vsel %vm8736_vm2, %v704_v11, 0.0  ;;  %v1186_v58 = vrot.slane %v1154_v34, 7  ;;  %v1315_v50 = vrot.slane %v1154_v34, 1  ;;  %v11251_v19 = vmov 0  ;;  %v581_v22 = vpop.f32.mrb[9].mxu0 }
 0x128   : > { %11246 = vst [vmem:[#allocation30_spill] sm:$0xff] %v8793_v42  ;;  %v1185_v63 = vrot.slane %v1153_v17, 7  ;;  %v1314_v59 = vrot.slane %v1153_v17, 1  ;;  %v11252_v19 = vsel %vm8812_vm11, 4294967295, %v11251_v19  ;;  %v8817_v12 = vpack.c.bf16 %v705_v51, %v704_v11 }
 0x129   : > { %v707_v54 = vmax.f32 %v577_v0, 0.0  ;;  %v572_v42 = vadd.f32 %v8538_v52, %v571_v60  ;;  %v587_v34 = vadd.f32 %v6681_v16, %v8538_v52  ;;  %v582_v16 = vadd.f32 %v8538_v52, %v581_v22 }
 0x12a   : > { %v1240_v51 = vsel %vm11109_vm5, %v1185_v63, %v1186_v58  ;;  %v1241_v11 = vsel %vm11109_vm5, %v1184_v7, %v1185_v63  ;;  %v1369_v0 = vsel %vm11107_vm3, %v1314_v59, %v1315_v50  ;;  %v1370_v23 = vsel %vm11107_vm3, %v1313_v38, %v1314_v59 }
 0x12b   : > { %v8848_v55 = vpack.c.bf16 %v1240_v51, %v1241_v11  ;;  %v8850_v7 = vpack.c.bf16 %v1370_v23, %v1371_v1  ;;  %v8854_v17 = vsel %vm8803_vm15, %v707_v54, 0.0  ;;  %v706_v38 = vmax.f32 %v572_v42, 0.0  ;;  %v6684_v42 = vpop.f32.mrb[10].mxu0  ;;  %vm11278_vm15 = vmmov %vm11277_vm7 }
 0x12c   : > { %vm11261_vm3 = vcmp.le.s32.totalorder %v8466_v28, 14  ;;  %v1188_v1 = vrot.slane %v8854_v17, 7  ;;  %v1317_v63 = vrot.slane %v8854_v17, 1  ;;  %v709_v59 = vmax.f32 %v587_v34, 0.0  ;;  %v591_v17 = vpop.f32.mrb[11].mxu0 }
 0x12d   : > { %11260 = vst [vmem:[#allocation31_spill] sm:$0xff] %v8850_v7  ;;  %vm8860_vm4 = vmand %vm11262_vm13, %vm11261_vm3  ;;  %v1155_v51 = vsel %vm8812_vm11, %v706_v38, 0.0  ;;  %v8871_v28 = vpack.c.bf16 %v707_v54, %v706_v38  ;;  %vm11265_vm3 = vcmp.ge.s32.totalorder %v8464_v27, 1  ;;  %v11266_v11 = vmov 0 }
 0x12e   : > { %vm8877_vm13 = vmand %vm8842_vm9, %vm11265_vm3  ;;  %v597_v23 = vadd.f32 %v6684_v42, %v8538_v52  ;;  %v11268_v34 = vand.u32 255, %v8634_v10  ;;  %v1187_v7 = vrot.slane %v1155_v51, 7  ;;  %v1316_v54 = vrot.slane %v1155_v51, 1 }
 0x12f   : > { %v11267_v11 = vsel %vm8877_vm13, 4294967295, %v11266_v11  ;;  %v8889_v27 = vsel %vm8825_vm0, %v709_v59, 0.0  ;;  %v708_v60 = vmax.f32 %v582_v16, 0.0  ;;  %vm11269_vm9 = vcmp.le.s32.totalorder %v8470_v31, 14 }
 0x130   : > { %v8885_v22 = vand.u32 15, %v11268_v34  ;;  %vm8895_vm3 = vmand %vm8860_vm4, %vm11269_vm9  ;;  %v11270_v38 = vmov 0  ;;  %v711_v51 = vmax.f32 %v597_v23, 0.0  ;;  %v592_v34 = vadd.f32 %v8538_v52, %v591_v17  ;;  %v6687_v17 = vpop.f32.mrb[12].mxu0 }
 0x131   : > { %v11271_v38 = vsel %vm8895_vm3, 4294967295, %v11270_v38  ;;  %vm11274_vm5 = vcmp.ge.s32.totalorder %v8472_v32, 1  ;;  %v1238_v24 = vsel %vm11277_vm7, %v1187_v7, %v1188_v1  ;;  %v1239_v16 = vsel %vm11278_vm15, %v1186_v58, %v1187_v7  ;;  %v601_v10 = vpop.f32.mrb[13].mxu0 }
 0x132   : > { %11272 = vst [vmem:[#allocation32_spill] sm:$0xff] %v11271_v38  ;;  %vm8907_vm0 = vmand %vm11274_vm5, %vm11273_vm1  ;;  %vm11279_vm11 = vcmp.lt.s32.totalorder %v8403_v41, 7  ;;  %vm11281_vm5 = vcmp.le.s32.totalorder %v8478_v36, 14  ;;  %vm11282_vm1 = vcmp.ge.s32.totalorder %v8478_v36, 1  ;;  %v8931_v58 = vpack.c.bf16 %v1238_v24, %v1239_v16 }
 0x133   : > { %v1367_v23 = vsel %vm11279_vm11, %v1316_v54, %v1317_v63  ;;  %vm11280_vm10 = vmmov %vm11279_vm11  ;;  %vm11287_vm11 = vcmp.ge.s32.totalorder %v8486_v40, 1  ;;  %v8951_v16 = vsel %vm8895_vm3, %v711_v51, 0.0  ;;  %vm11290_vm7 = vcmp.ge.s32.totalorder %v8476_v35, 1 }
 0x134   : > { %v1368_v32 = vsel %vm11280_vm10, %v1315_v50, %v1316_v54  ;;  %vm8925_vm4 = vmand %vm11282_vm1, %vm11281_vm5  ;;  %v1157_v50 = vsel %vm8877_vm13, %v708_v60, 0.0  ;;  %v8937_v54 = vpack.c.bf16 %v709_v59, %v708_v60  ;;  %vm11286_vm10 = vcmp.le.s32.totalorder %v8486_v40, 14 }
 0x135   : > { %v8933_v7 = vpack.c.bf16 %v1368_v32, %v1369_v0  ;;  %vm8943_vm15 = vmand %vm11287_vm11, %vm11286_vm10  ;;  %v1189_v0 = vrot.slane %v1157_v50, 7  ;;  %v1318_v24 = vrot.slane %v1157_v50, 1  ;;  %v710_v59 = vmax.f32 %v592_v34, 0.0 }
 0x136   : > { %vm8957_vm9 = vmand %vm8907_vm0, %vm11290_vm7  ;;  %v11291_v40 = vmov 0  ;;  %v1192_v60 = vrot.slane %v8951_v16, 7  ;;  %v1321_v32 = vrot.slane %v8951_v16, 1  ;;  %v607_v50 = vadd.f32 %v6687_v17, %v8538_v52 }
 0x137   : > { %11285 = vst [vmem:[#allocation33_spill] sm:$0xff] %v8933_v7  ;;  %v11292_v40 = vsel %vm8957_vm9, 4294967295, %v11291_v40  ;;  %vm11293_vm11 = vcmp.le.s32.totalorder %v8484_v39, 14  ;;  %v11294_v35 = vmov 0  ;;  %v602_v34 = vadd.f32 %v8538_v52, %v601_v10 }
 0x138   : > { %vm8969_vm5 = vmand %vm8925_vm4, %vm11293_vm11  ;;  %v11296_v31 = vrot.slane %v8889_v27, 7  ;;  %vm11297_vm7 = vcmp.lt.s32.totalorder %v8403_v41, 1  ;;  %v11299_v39 = vrot.slane %v8889_v27, 1  ;;  %vm11300_vm1 = vcmp.lt.s32.totalorder %v8403_v41, 7 }
 0x139   : > { %v11295_v35 = vsel %vm8969_vm5, 4294967295, %v11294_v35  ;;  %vm11298_vm10 = vmmov %vm11297_vm7  ;;  %vm11302_vm11 = vcmp.ge.s32.totalorder %v8491_v44, 1  ;;  %v11303_v10 = vmov 0  ;;  %v9002_v38 = vpack.c.bf16 %v711_v51, %v710_v59 }
 0x13a   : > { %v1236_v7 = vsel %vm11297_vm7, %v1189_v0, %v11296_v31  ;;  %v1237_v17 = vsel %vm11298_vm10, %v1188_v1, %v1189_v0  ;;  %v1365_v42 = vsel %vm11300_vm1, %v1318_v24, %v11299_v39  ;;  %vm11301_vm4 = vmmov %vm11300_vm1  ;;  %v6690_v31 = vpop.f32.mrb[14].mxu0  ;;  %v1159_v39 = vsel %vm8957_vm9, %v710_v59, 0.0 }
 0x13b   : > { %v1366_v16 = vsel %vm11301_vm4, %v1317_v63, %v1318_v24  ;;  %vm8991_vm0 = vmand %vm8943_vm15, %vm11302_vm11  ;;  %v8996_v1 = vpack.c.bf16 %v1236_v7, %v1237_v17  ;;  %vm11306_vm1 = vcmp.le.s32.totalorder %v8493_v45, 14  ;;  %vm11307_vm10 = vcmp.ge.s32.totalorder %v8493_v45, 1  ;;  %v611_v63 = vpop.f32.mrb[15].mxu0 }
 0x13c   : > { %v11304_v10 = vsel %vm8991_vm0, 4294967295, %v11303_v10  ;;  %v8998_v0 = vpack.c.bf16 %v1366_v16, %v1367_v23  ;;  %vm9008_vm15 = vmand %vm11307_vm10, %vm11306_vm1  ;;  %v1191_v23 = vrot.slane %v1159_v39, 7  ;;  %v1320_v7 = vrot.slane %v1159_v39, 1 }
 0x13d   : > { %v713_v36 = vmax.f32 %v607_v50, 0.0  ;;  %v712_v24 = vmax.f32 %v602_v34, 0.0  ;;  %vm11310_vm7 = vcmp.le.s32.totalorder %v8498_v49, 14  ;;  %vm11311_vm3 = vcmp.ge.s32.totalorder %v8498_v49, 1  ;;  %vm11320_vm11 = vmmov %vm11301_vm4 }
 0x13e   : > { %11305 = vst [vmem:[#allocation34_spill] sm:$0xff] %v8998_v0  ;;  %vm9018_vm9 = vmand %vm11311_vm3, %vm11310_vm7  ;;  %v617_v45 = vadd.f32 %v6690_v31, %v8538_v52  ;;  %v612_v59 = vadd.f32 %v8538_v52, %v611_v63  ;;  %v11314_v50 = vand.u32 255, %v8699_v37  ;;  %vm11316_vm3 = vcmp.lt.s32.totalorder %v8403_v41, 1 }
 0x13f   : > { %v1234_v16 = vsel %vm11316_vm3, %v1191_v23, %v1192_v60  ;;  %v11317_v39 = vrot.slane %v8889_v27, 7  ;;  %vm11318_vm7 = vmmov %vm11316_vm3  ;;  %v1363_v63 = vsel %vm11301_vm4, %v1320_v7, %v1321_v32  ;;  %v11319_v0 = vrot.slane %v8889_v27, 1 }
 0x140   : > { %v9030_v34 = vshra.s32 %v11314_v50, 4  ;;  %v11315_v49 = vmov %v11314_v50  ;;  %vm11321_vm1 = vcmp.le.s32.totalorder %v8496_v48, 14  ;;  %v11322_v37 = vmov 0 }
 0x141   : > { %v9034_v17 = vand.u32 15, %v11315_v49  ;;  %v1235_v31 = vsel %vm11318_vm7, %v11317_v39, %v1191_v23  ;;  %v1364_v50 = vsel %vm11320_vm11, %v11319_v0, %v1320_v7  ;;  %vm9052_vm10 = vmand %vm9008_vm15, %vm11321_vm1  ;;  %v6693_v49 = vpop.f32.mrb[16].mxu0  ;;  %v1162_v27 = vsel %vm8969_vm5, %v713_v36, 0.0 }
 0x142   : > { %v11323_v37 = vsel %vm9052_vm10, 4294967295, %v11322_v37  ;;  %v9057_v23 = vpack.c.bf16 %v1234_v16, %v1235_v31  ;;  %v9059_v39 = vpack.c.bf16 %v1364_v50, %v1365_v42  ;;  %v1161_v0 = vsel %vm8991_vm0, %v712_v24, 0.0  ;;  %v621_v44 = vpop.f32.mrb[17].mxu0 }
 0x143   : > { %11324 = vst [vmem:[#allocation35_spill] sm:$0xff] %v11323_v37  ;;  %vm11327_vm4 = vcmp.ge.s32.totalorder %v8502_v53, 1  ;;  %v11328_v48 = vmov 0  ;;  %v1194_v7 = vrot.slane %v1162_v27, 7  ;;  %v1323_v42 = vrot.slane %v1162_v27, 1 }
 0x144   : > { %11325 = vst [vmem:[#allocation36_spill] sm:$0xff] %v9057_v23  ;;  %11326 = vst [vmem:[#allocation37_spill] sm:$0xff] %v9059_v39  ;;  %v1193_v16 = vrot.slane %v1161_v0, 7  ;;  %v1322_v31 = vrot.slane %v1161_v0, 1  ;;  %vm11331_vm1 = vcmp.le.s32.totalorder %v8506_v61, 14  ;;  %vm11332_vm7 = vcmp.ge.s32.totalorder %v8506_v61, 1 }
 0x145   : > { %vm9069_vm15 = vmand %vm9018_vm9, %vm11327_vm4  ;;  %v9083_v53 = vpack.c.bf16 %v713_v36, %v712_v24  ;;  %v715_v51 = vmax.f32 %v617_v45, 0.0  ;;  %v714_v39 = vmax.f32 %v612_v59, 0.0  ;;  %v627_v23 = vadd.f32 %v6693_v49, %v8538_v52  ;;  %v6696_v45 = vpop.f32.mrb[18].mxu0 }
 0x146   : > { %v11329_v48 = vsel %vm9069_vm15, 4294967295, %v11328_v48  ;;  %vm9078_vm3 = vmand %vm11332_vm7, %vm11331_vm1  ;;  %vm11335_vm4 = vcmp.le.s32.totalorder %v8514_v5, 14  ;;  %vm11336_vm11 = vcmp.ge.s32.totalorder %v8514_v5, 1  ;;  %vm11339_vm1 = vcmp.lt.s32.totalorder %v8403_v41, 1 }
 0x147   : > { %11330 = vst [vmem:[#allocation38_spill] sm:$0xff] %v11329_v48  ;;  %vm9090_vm5 = vmand %vm11336_vm11, %vm11335_vm4  ;;  %v1232_v61 = vsel %vm11339_vm1, %v1193_v16, %v1194_v7  ;;  %vm11341_vm9 = vcmp.lt.s32.totalorder %v8403_v41, 7  ;;  %vm11343_vm13 = vcmp.le.s32.totalorder %v8528_v13, 14  ;;  %vm11344_vm11 = vcmp.ge.s32.totalorder %v8528_v13, 1 }
 0x148   : > { %vm11340_vm7 = vmmov %vm11339_vm1  ;;  %v1361_v36 = vsel %vm11341_vm9, %v1322_v31, %v1323_v42  ;;  %v1163_v49 = vsel %vm9069_vm15, %v714_v39, 0.0  ;;  %v11350_v13 = vmov 0  ;;  %v9144_v50 = vpack.c.bf16 %v715_v51, %v714_v39 }
 0x149   : > { %v1233_v0 = vsel %vm11340_vm7, %v1192_v60, %v1193_v16  ;;  %vm11342_vm0 = vmmov %vm11341_vm9  ;;  %v631_v16 = vpop.f32.mrb[19].mxu0  ;;  %vm11358_vm9 = vcmp.le.s32.totalorder %v8530_v14, 14 }
 0x14a   : > { %v1362_v24 = vsel %vm11342_vm0, %v1321_v32, %v1322_v31  ;;  %vm9106_vm4 = vmand %vm11344_vm11, %vm11343_vm13  ;;  %v9112_v60 = vpack.c.bf16 %v1232_v61, %v1233_v0  ;;  %v9118_v32 = vsel %vm9052_vm10, %v715_v51, 0.0  ;;  %vm11349_vm13 = vcmp.le.s32.totalorder %v8512_v4, 14  ;;  %11357 = vst [vmem:[#allocation43_spill] sm:$0xff] %v9144_v50  ;;  %v6699_v51 = vpop.f32.mrb[20].mxu0 }
 0x14b   : > { %v9114_v59 = vpack.c.bf16 %v1362_v24, %v1363_v63  ;;  %vm9126_vm0 = vmand %vm9078_vm3, %vm11349_vm13  ;;  %v1196_v63 = vrot.slane %v9118_v32, 7  ;;  %v1325_v31 = vrot.slane %v9118_v32, 1  ;;  %v1195_v61 = vrot.slane %v1163_v49, 7 }
 0x14c   : > { %11347 = vst [vmem:[#allocation39_spill] sm:$0xff] %v9112_v60  ;;  %v11351_v13 = vsel %vm9126_vm0, 4294967295, %v11350_v13  ;;  %v1324_v0 = vrot.slane %v1163_v49, 1  ;;  %vm11353_vm11 = vcmp.ge.s32.totalorder %v8516_v6, 1  ;;  %v11354_v4 = vmov 0  ;;  %vm9152_vm7 = vmand %vm9106_vm4, %vm11358_vm9 }
 0x14d   : > { %11348 = vst [vmem:[#allocation40_spill] sm:$0xff] %v9114_v59  ;;  %11352 = vst [vmem:[#allocation41_spill] sm:$0xff] %v11351_v13  ;;  %v717_v24 = vmax.f32 %v627_v23, 0.0  ;;  %v622_v59 = vadd.f32 %v8538_v52, %v621_v44  ;;  %v637_v32 = vadd.f32 %v6696_v45, %v8538_v52  ;;  %v11359_v6 = vmov 0  ;;  %v11370_v45 = vld [vmem:[#allocation15_spill] sm:$0xff] }
 0x14e   : > { %vm9138_vm1 = vmand %vm9090_vm5, %vm11353_vm11  ;;  %v11360_v6 = vsel %vm9152_vm7, 4294967295, %v11359_v6  ;;  %vm11362_vm11 = vcmp.lt.s32.totalorder %v8403_v41, 1  ;;  %vm11364_vm13 = vcmp.lt.s32.totalorder %v8403_v41, 7  ;;  %vm11366_vm10 = vcmp.le.s32.totalorder %v8550_v25, 14 }
 0x14f   : > { %v11355_v4 = vsel %vm9138_vm1, 4294967295, %v11354_v4  ;;  %11361 = vst [vmem:[#allocation44_spill] sm:$0xff] %v11360_v6  ;;  %v1230_v27 = vsel %vm11362_vm11, %v1195_v61, %v1196_v63  ;;  %vm11363_vm3 = vmmov %vm11362_vm11  ;;  %v1359_v39 = vsel %vm11364_vm13, %v1324_v0, %v1325_v31  ;;  %vm11367_vm4 = vcmp.ge.s32.totalorder %v8550_v25, 1 }
 0x150   : > { %11356 = vst [vmem:[#allocation42_spill] sm:$0xff] %v11355_v4  ;;  %v1231_v23 = vsel %vm11363_vm3, %v1194_v7, %v1195_v61  ;;  %vm11365_vm2 = vmmov %vm11364_vm13  ;;  %v9180_v49 = vsel %vm9126_vm0, %v717_v24, 0.0  ;;  %vm11374_vm3 = vcmp.ge.s32.totalorder %v8554_v29, 1  ;;  %v641_v61 = vpop.f32.mrb[21].mxu0  ;;  %vm11379_vm11 = vcmp.ge.s32.totalorder %v8559_v56, 1 }
 0x151   : > { %v1360_v14 = vsel %vm11365_vm2, %v1323_v42, %v1324_v0  ;;  %vm9169_vm9 = vmand %vm11367_vm4, %vm11366_vm10  ;;  %v9174_v5 = vpack.c.bf16 %v1230_v27, %v1231_v23  ;;  %v716_v42 = vmax.f32 %v622_v59, 0.0  ;;  %vm11373_vm2 = vcmp.le.s32.totalorder %v8554_v29, 14  ;;  %v11377_v0 = vld [vmem:[#allocation16_spill] sm:$0xff]  ;;  %v11382_v59 = vld [vmem:[#allocation17_spill] sm:$0xff] }
 0x152   : > { %v9176_v7 = vpack.c.bf16 %v1360_v14, %v1361_v36  ;;  %vm9186_vm10 = vmand %vm11374_vm3, %vm11373_vm2  ;;  %v1198_v27 = vrot.slane %v9180_v49, 7  ;;  %v1327_v36 = vrot.slane %v9180_v49, 1  ;;  %v719_v23 = vmax.f32 %v637_v32, 0.0  ;;  %v11387_v49 = vld [vmem:[#allocation19_spill] sm:$0xff]  ;;  %v11402_v29 = vld [vmem:[#allocation20_spill] sm:$0xff] }
 0x153   : > { %11371 = vst [vmem:[#allocation15_spill] sm:$0xff] %v9174_v5  ;;  %v632_v14 = vadd.f32 %v8538_v52, %v631_v16  ;;  %vm11378_vm4 = vcmp.le.s32.totalorder %v8559_v56, 14  ;;  %v9206_v5 = vpack.c.bf16 %v717_v24, %v716_v42  ;;  %vm11384_vm13 = vcmp.ge.s32.totalorder %v8552_v26, 1 }
 0x154   : > { %11372 = vst [vmem:[#allocation45_spill] sm:$0xff] %v9176_v7  ;;  %vm9198_vm5 = vmand %vm11379_vm11, %vm11378_vm4  ;;  %v1165_v7 = vsel %vm9138_vm1, %v716_v42, 0.0  ;;  %v11385_v16 = vmov 0  ;;  %v647_v56 = vadd.f32 %v6699_v51, %v8538_v52  ;;  %v642_v32 = vadd.f32 %v8538_v52, %v641_v61  ;;  %v6702_v51 = vpop.f32.mrb[22].mxu0  ;;  %v11392_v42 = vld [vmem:[#allocation22_spill] sm:$0xff] }
 0x155   : > { %11383 = vst [vmem:[#allocation16_spill] sm:$0xff] %v9206_v5  ;;  %vm9212_vm0 = vmand %vm9169_vm9, %vm11384_vm13  ;;  %v1197_v13 = vrot.slane %v1165_v7, 7  ;;  %v1326_v4 = vrot.slane %v1165_v7, 1  ;;  %v1168_v24 = vsel %vm9152_vm7, %v719_v23, 0.0  ;;  %v718_v26 = vmax.f32 %v632_v14, 0.0  ;;  %v651_v25 = vpop.f32.mrb[23].mxu0 }
 0x156   : > { %v11386_v16 = vsel %vm9212_vm0, 4294967295, %v11385_v16  ;;  %vm11388_vm2 = vcmp.le.s32.totalorder %v8557_v33, 14  ;;  %v11389_v44 = vmov 0  ;;  %v1200_v61 = vrot.slane %v1168_v24, 7  ;;  %v11397_v14 = vld [vmem:[#allocation18_spill] sm:$0xff] }
 0x157   : > { %vm9226_vm9 = vmand %vm9186_vm10, %vm11388_vm2  ;;  %v1329_v5 = vrot.slane %v1168_v24, 1  ;;  %v721_v7 = vmax.f32 %v647_v56, 0.0  ;;  %v720_v50 = vmax.f32 %v642_v32, 0.0  ;;  %vm11393_vm4 = vcmp.ge.s32.totalorder %v8570_v43, 1 }
 0x158   : > { %v11390_v44 = vsel %vm9226_vm9, 4294967295, %v11389_v44  ;;  %vm9236_vm3 = vmand %vm9198_vm5, %vm11393_vm4  ;;  %v11394_v33 = vmov 0  ;;  %vm11398_vm2 = vcmp.lt.s32.totalorder %v8403_v41, 1  ;;  %vm11400_vm11 = vcmp.lt.s32.totalorder %v8403_v41, 7 }
 0x159   : > { %11391 = vst [vmem:[#allocation17_spill] sm:$0xff] %v11390_v44  ;;  %v11395_v33 = vsel %vm9236_vm3, 4294967295, %v11394_v33  ;;  %v1228_v6 = vsel %vm11398_vm2, %v1197_v13, %v1198_v27  ;;  %vm11399_vm13 = vmmov %vm11398_vm2  ;;  %v1357_v56 = vsel %vm11400_vm11, %v1326_v4, %v1327_v36  ;;  %v1167_v37 = vsel %vm9212_vm0, %v718_v26, 0.0 }
 0x15a   : > { %11396 = vst [vmem:[#allocation19_spill] sm:$0xff] %v11395_v33  ;;  %v1229_v60 = vsel %vm11399_vm13, %v1196_v63, %v1197_v13  ;;  %vm11401_vm7 = vmmov %vm11400_vm11  ;;  %v9256_v48 = vpack.c.bf16 %v719_v23, %v718_v26  ;;  %vm11406_vm4 = vcmp.le.s32.totalorder %v8572_v46, 14  ;;  %vm11407_vm13 = vcmp.ge.s32.totalorder %v8572_v46, 1  ;;  %v11410_v63 = vld [vmem:[#allocation26_spill] sm:$0xff]  ;;  %v11415_v23 = vld [vmem:[#allocation27_spill] sm:$0xff] }
 0x15b   : > { %v1358_v43 = vsel %vm11401_vm7, %v1325_v31, %v1326_v4  ;;  %v9250_v32 = vpack.c.bf16 %v1228_v6, %v1229_v60  ;;  %vm9262_vm2 = vmand %vm11407_vm13, %vm11406_vm4  ;;  %v1199_v31 = vrot.slane %v1167_v37, 7  ;;  %v1328_v60 = vrot.slane %v1167_v37, 1 }
 0x15c   : > { %v9252_v24 = vpack.c.bf16 %v1358_v43, %v1359_v39  ;;  %11405 = vst [vmem:[#allocation20_spill] sm:$0xff] %v9256_v48  ;;  %v9269_v4 = vsel %vm9226_vm9, %v721_v7, 0.0  ;;  %v1169_v6 = vsel %vm9236_vm3, %v720_v50, 0.0  ;;  %vm11411_vm11 = vcmp.le.s32.totalorder %v8590_v57, 14  ;;  %v6705_v39 = vpop.f32.mrb[24].mxu0 }
 0x15d   : > { %11403 = vst [vmem:[#allocation22_spill] sm:$0xff] %v9250_v32  ;;  %vm11412_vm5 = vcmp.ge.s32.totalorder %v8590_v57, 1  ;;  %v1201_v43 = vrot.slane %v1169_v6, 7  ;;  %vm11416_vm7 = vcmp.le.s32.totalorder %v8609_v9, 14  ;;  %vm11417_vm9 = vcmp.ge.s32.totalorder %v8609_v9, 1  ;;  %v661_v44 = vpop.f32.mrb[25].mxu0 }
 0x15e   : > { %11404 = vst [vmem:[#allocation18_spill] sm:$0xff] %v9252_v24  ;;  %vm9277_vm10 = vmand %vm11412_vm5, %vm11411_vm11  ;;  %v1330_v24 = vrot.slane %v1169_v6, 1  ;;  %vm11420_vm5 = vcmp.lt.s32.totalorder %v8403_v41, 1  ;;  %vm11422_vm4 = vcmp.lt.s32.totalorder %v8403_v41, 7  ;;  %vm11424_vm0 = vcmp.le.s32.totalorder %v8574_v47, 14 }
 0x15f   : > { %vm9289_vm3 = vmand %vm11417_vm9, %vm11416_vm7  ;;  %v1226_v33 = vsel %vm11420_vm5, %v1199_v31, %v1200_v61  ;;  %v1355_v26 = vsel %vm11422_vm4, %v1328_v60, %v1329_v5  ;;  %v11425_v9 = vmov 0  ;;  %v9336_v13 = vpack.c.bf16 %v721_v7, %v720_v50 }
 0x160   : > { %vm11421_vm11 = vmmov %vm11420_vm5  ;;  %v652_v50 = vadd.f32 %v8538_v52, %v651_v25  ;;  %vm11454_vm15 = vcmp.ge.s32.totalorder %v11397_v14, 1 }
 0x161   : > { %v1227_v48 = vsel %vm11421_vm11, %v1198_v27, %v1199_v31  ;;  %vm11423_vm13 = vmmov %vm11422_vm4  ;;  %v11428_v27 = vrot.slane %v9269_v4, 7 }
 0x162   : > { %v1356_v6 = vsel %vm11423_vm13, %v1327_v36, %v1328_v60  ;;  %vm9305_vm9 = vmand %vm9262_vm2, %vm11424_vm0  ;;  %v9309_v37 = vpack.c.bf16 %v1226_v33, %v1227_v48  ;;  %vm11431_vm13 = vcmp.ge.s32.totalorder %v11370_v45, 1  ;;  %v11434_v33 = vrot.slane %v9269_v4, 1  ;;  %v6708_v60 = vpop.f32.mrb[26].mxu0 }
 0x163   : > { %v11426_v9 = vsel %vm9305_vm9, 4294967295, %v11425_v9  ;;  %v9311_v32 = vpack.c.bf16 %v1356_v6, %v1357_v56  ;;  %vm11429_vm7 = vmmov %vm11420_vm5  ;;  %v11438_v45 = vmov 0  ;;  %v671_v7 = vpop.f32.mrb[27].mxu0  ;;  %v11455_v6 = vmov 0 }
 0x164   : > { %v1224_v31 = vsel %vm11429_vm7, %v1201_v43, %v11428_v27  ;;  %vm11430_vm4 = vmmov %vm11420_vm5  ;;  %vm11435_vm5 = vcmp.lt.s32.totalorder %v8403_v41, 7  ;;  %vm11437_vm7 = vcmp.le.s32.totalorder %v11377_v0, 14 }
 0x165   : > { %11427 = vst [vmem:[#allocation26_spill] sm:$0xff] %v9311_v32  ;;  %v1225_v36 = vsel %vm11430_vm4, %v1200_v61, %v1201_v43  ;;  %vm9323_vm0 = vmand %vm9277_vm10, %vm11431_vm13  ;;  %v1353_v56 = vsel %vm11435_vm5, %v1330_v24, %v11434_v33  ;;  %v657_v43 = vadd.f32 %v6702_v51, %v8538_v52  ;;  %vm11446_vm4 = vcmp.le.s32.totalorder %v11387_v49, 14 }
 0x166   : > { %v9328_v48 = vpack.c.bf16 %v1224_v31, %v1225_v36  ;;  %vm11436_vm11 = vmmov %vm11435_vm5  ;;  %vm11442_vm5 = vcmp.le.s32.totalorder %v11382_v59, 14  ;;  %vm11447_vm13 = vcmp.ge.s32.totalorder %v11387_v49, 1 }
 0x167   : > { %v1354_v61 = vsel %vm11436_vm11, %v1329_v5, %v1330_v24  ;;  %vm9342_vm10 = vmand %vm9289_vm3, %vm11437_vm7  ;;  %v667_v5 = vadd.f32 %v6705_v39, %v8538_v52  ;;  %vm11443_vm3 = vcmp.ge.s32.totalorder %v11382_v59, 1  ;;  %v662_v24 = vadd.f32 %v8538_v52, %v661_v44 }
 0x168   : > { %v11439_v45 = vsel %vm9342_vm10, 4294967295, %v11438_v45  ;;  %v9348_v46 = vpack.c.bf16 %v1354_v61, %v1355_v26  ;;  %vm9357_vm11 = vmand %vm11443_vm3, %vm11442_vm5  ;;  %v677_v26 = vadd.f32 %v6708_v60, %v8538_v52  ;;  %v672_v59 = vadd.f32 %v8538_v52, %v671_v7 }
 0x169   : > { %11440 = vst [vmem:[#allocation27_spill] sm:$0xff] %v11439_v45  ;;  %vm9368_vm2 = vmand %vm11447_vm13, %vm11446_vm4  ;;  %v723_v25 = vmax.f32 %v657_v43, 0.0  ;;  %v722_v39 = vmax.f32 %v652_v50, 0.0  ;;  %v725_v57 = vmax.f32 %v667_v5, 0.0  ;;  %vm11450_vm3 = vcmp.le.s32.totalorder %v11392_v42, 14 }
 0x16a   : > { %11441 = vst [vmem:[#allocation46_spill] sm:$0xff] %v9348_v46  ;;  %vm11451_vm7 = vcmp.ge.s32.totalorder %v11392_v42, 1  ;;  %v724_v49 = vmax.f32 %v662_v24, 0.0  ;;  %vm9388_vm5 = vmand %vm9357_vm11, %vm11454_vm15  ;;  %v727_v27 = vmax.f32 %v677_v26, 0.0  ;;  %v726_v31 = vmax.f32 %v672_v59, 0.0  ;;  %v6711_v42 = vpop.f32.mrb[28].mxu0 }
 0x16b   : > { %vm9378_vm1 = vmand %vm11451_vm7, %vm11450_vm3  ;;  %v11456_v6 = vsel %vm9388_vm5, 4294967295, %v11455_v6  ;;  %v1172_v36 = vsel %vm9305_vm9, %v723_v25, 0.0  ;;  %v1171_v33 = vsel %vm9323_vm0, %v722_v39, 0.0  ;;  %v9398_v14 = vpack.c.bf16 %v723_v25, %v722_v39  ;;  %v681_v43 = vpop.f32.mrb[29].mxu0 }
 0x16c   : > { %v1174_v61 = vsel %vm9342_vm10, %v725_v57, 0.0  ;;  %vm11457_vm15 = vcmp.le.s32.totalorder %v11402_v29, 14  ;;  %v11458_v60 = vmov 0  ;;  %v1204_v50 = vrot.slane %v1172_v36, 7 }
 0x16d   : > { %vm9406_vm11 = vmand %vm9368_vm2, %vm11457_vm15  ;;  %v1333_v5 = vrot.slane %v1172_v36, 1  ;;  %v1203_v0 = vrot.slane %v1171_v33, 7  ;;  %v1332_v7 = vrot.slane %v1171_v33, 1  ;;  %vm11460_vm4 = vcmp.ge.s32.totalorder %v11410_v63, 1  ;;  %v6714_v36 = vpop.f32.mrb[30].mxu0 }
 0x16e   : > { %v11459_v60 = vsel %vm9406_vm11, 4294967295, %v11458_v60  ;;  %vm9415_vm13 = vmand %vm9378_vm1, %vm11460_vm4  ;;  %v11461_v24 = vmov 0  ;;  %v1206_v29 = vrot.slane %v1174_v61, 7  ;;  %v1335_v26 = vrot.slane %v1174_v61, 1 }
 0x16f   : > { %v11462_v24 = vsel %vm9415_vm13, 4294967295, %v11461_v24  ;;  %v1173_v51 = vsel %vm9388_vm5, %v724_v49, 0.0  ;;  %v9421_v59 = vpack.c.bf16 %v725_v57, %v724_v49  ;;  %vm11464_vm2 = vcmp.le.s32.totalorder %v11415_v23, 14 }
 0x170   : > { %vm11465_vm15 = vcmp.ge.s32.totalorder %v11415_v23, 1  ;;  %vm11468_vm1 = vcmp.lt.s32.totalorder %v8403_v41, 1  ;;  %v11469_v39 = vrot.slane %v9269_v4, 7  ;;  %vm11471_vm3 = vcmp.lt.s32.totalorder %v8403_v41, 7  ;;  %v11584_v47 = vld [vmem:[#allocation27_spill] sm:$0xff] }
 0x171   : > { %11463 = vst [vmem:[#allocation47_spill] sm:$0xff] %v9421_v59  ;;  %vm9427_vm7 = vmand %vm11465_vm15, %vm11464_vm2  ;;  %v1222_v63 = vsel %vm11468_vm1, %v1203_v0, %v1204_v50  ;;  %v1351_v57 = vsel %vm11471_vm3, %v1332_v7, %v1333_v5  ;;  %v11472_v49 = vrot.slane %v9269_v4, 1  ;;  %v1205_v46 = vrot.slane %v1173_v51, 7  ;;  %v691_v59 = vpop.f32.mrb[31].mxu0 }
 0x172   : > { %vm11470_vm4 = vmmov %vm11468_vm1  ;;  %v1334_v32 = vrot.slane %v1173_v51, 1  ;;  %v1176_v45 = vsel %vm9406_vm11, %v727_v27, 0.0  ;;  %v687_v4 = vadd.f32 %v6711_v42, %v8538_v52  ;;  %vm11481_vm11 = vcmp.le.s32.totalorder %v8743_v18, 14 }
 0x173   : > { %v1223_v44 = vsel %vm11470_vm4, %v11469_v39, %v1203_v0  ;;  %vm11473_vm10 = vmmov %vm11471_vm3  ;;  %v1175_v0 = vsel %vm9415_vm13, %v726_v31, 0.0  ;;  %v9451_v39 = vpack.c.bf16 %v727_v27, %v726_v31  ;;  %vm11482_vm13 = vcmp.ge.s32.totalorder %v8743_v18, 1  ;;  %v7624_v18 = vld [vmem:[%s11078_s3 + $0x424] ss:$16 sps:$4 sm:$0xff]  }
 0x174   : > { %v1352_v23 = vsel %vm11473_vm10, %v11472_v49, %v1332_v7  ;;  %v9443_v33 = vpack.c.bf16 %v1222_v63, %v1223_v44  ;;  %vm11474_vm10 = vcmp.le.s32.totalorder %v8741_v3, 14  ;;  %vm11477_vm2 = vmmov %vm11468_vm1  ;;  %v1208_v25 = vrot.slane %v1176_v45, 7 }
 0x175   : > { %v9445_v61 = vpack.c.bf16 %v1352_v23, %v1353_v56  ;;  %vm9458_vm3 = vmand %vm9427_vm7, %vm11474_vm10  ;;  %v1220_v7 = vsel %vm11477_vm2, %v1205_v46, %v1206_v29  ;;  %v1337_v63 = vrot.slane %v1176_v45, 1  ;;  %vm11483_vm10 = vcmp.le.s32.totalorder %v8770_v30, 14  ;;  %v11528_v23 = vld [vmem:[#allocation29_spill] sm:$0xff]  ;;  %v7619_v56 = vld [vmem:[%s11078_s3 + $0x408] ss:$16 sps:$4 sm:$0xff]  }
 0x176   : > { %vm11478_vm15 = vmmov %vm11468_vm1  ;;  %vm11479_vm1 = vcmp.lt.s32.totalorder %v8403_v41, 7  ;;  %vm11484_vm2 = vcmp.ge.s32.totalorder %v8770_v30, 1  ;;  %v729_v44 = vmax.f32 %v687_v4, 0.0  ;;  %v697_v45 = vadd.f32 %v6714_v36, %v8538_v52 }
 0x177   : > { %v1221_v51 = vsel %vm11478_vm15, %v1204_v50, %v1205_v46  ;;  %v1349_v27 = vsel %vm11479_vm1, %v1334_v32, %v1335_v26  ;;  %vm11480_vm4 = vmmov %vm11479_vm1  ;;  %v1207_v46 = vrot.slane %v1175_v0, 7  ;;  %v1336_v50 = vrot.slane %v1175_v0, 1 }
 0x178   : > { %v1350_v31 = vsel %vm11480_vm4, %v1333_v5, %v1334_v32  ;;  %vm953_vm7 = vmand %vm11482_vm13, %vm11481_vm11  ;;  %v9474_v3 = vpack.c.bf16 %v1220_v7, %v1221_v51  ;;  %v682_v32 = vadd.f32 %v8538_v52, %v681_v43  ;;  %vm11485_vm1 = vcmp.le.s32.totalorder %v9030_v34, 14 }
 0x179   : > { %v9476_v42 = vpack.c.bf16 %v1350_v31, %v1351_v57  ;;  %vm956_vm15 = vmand %vm11484_vm2, %vm11483_vm10  ;;  %vm11486_vm13 = vcmp.ge.s32.totalorder %v9030_v34, 1  ;;  %vm11487_vm4 = vcmp.ge.s32.totalorder %v8766_v15, 1  ;;  %v692_v30 = vadd.f32 %v8538_v52, %v691_v59  ;;  %v7538_v57 = vld [vmem:[%s11078_s3 + $0x260] ss:$16 sps:$4 sm:$0xff]  }
 0x17a   : > { %vm955_vm11 = vmand %vm11486_vm13, %vm11485_vm1  ;;  %vm11490_vm10 = vcmp.lt.s32.totalorder %v8403_v41, 1  ;;  %vm11492_vm9 = vcmp.lt.s32.totalorder %v8403_v41, 7  ;;  %v1178_v59 = vsel %vm9458_vm3, %v729_v44, 0.0  ;;  %v731_v36 = vmax.f32 %v697_v45, 0.0  ;;  %v7669_v41 = vld [vmem:[%s11078_s3 + $0x50c] ss:$16 sps:$4 sm:$0xff]  }
 0x17b   : > { %vm9489_vm5 = vmand %vm953_vm7, %vm11487_vm4  ;;  %v1218_v5 = vsel %vm11490_vm10, %v1207_v46, %v1208_v25  ;;  %v1347_v34 = vsel %vm11492_vm9, %v1336_v50, %v1337_v63  ;;  %vm11494_vm7 = vcmp.le.s32.totalorder %v8885_v22, 14  ;;  %vm11498_vm4 = vcmp.ge.s32.totalorder %v9034_v17, 1 }
 0x17c   : > { %vm11491_vm2 = vmmov %vm11490_vm10  ;;  %v1339_v22 = vrot.slane %v1178_v59, 1  ;;  %v730_v0 = vmax.f32 %v692_v30, 0.0 }
 0x17d   : > { %v1219_v43 = vsel %vm11491_vm2, %v1206_v29, %v1207_v46  ;;  %vm11493_vm1 = vmmov %vm11492_vm9  ;;  %v728_v29 = vmax.f32 %v682_v32, 0.0 }
 0x17e   : > { %v1348_v15 = vsel %vm11493_vm1, %v1335_v26, %v1336_v50  ;;  %vm9505_vm13 = vmand %vm956_vm15, %vm11494_vm7  ;;  %v9509_v49 = vpack.c.bf16 %v1218_v5, %v1219_v43  ;;  %v1210_v26 = vrot.slane %v1178_v59, 7 }
 0x17f   : > { %v9511_v52 = vpack.c.bf16 %v1348_v15, %v1349_v27  ;;  %vm9517_vm9 = vmand %vm955_vm11, %vm11498_vm4  ;;  %v1177_v4 = vsel %vm9489_vm5, %v728_v29, 0.0  ;;  %v9523_v7 = vpack.c.bf16 %v729_v44, %v728_v29  ;;  %v1180_v31 = vsel %vm9505_vm13, %v731_v36, 0.0  ;;  %v11506_v29 = vld [vmem:[#allocation23_spill] sm:$0xff] }
 0x180   : > { %v1209_v51 = vrot.slane %v1177_v4, 7  ;;  %v1338_v27 = vrot.slane %v1177_v4, 1  ;;  %v1179_v17 = vsel %vm9517_vm9, %v730_v0, 0.0  ;;  %v1212_v46 = vrot.slane %v1180_v31, 7  ;;  %vm11501_vm15 = vmmov %vm11491_vm2 }
 0x181   : > { %11497 = vst [vmem:[#allocation48_spill] sm:$0xff] %v9511_v52  ;;  %v1341_v50 = vrot.slane %v1180_v31, 1  ;;  %v1211_v32 = vrot.slane %v1179_v17, 7  ;;  %v1340_v5 = vrot.slane %v1179_v17, 1  ;;  %vm11502_vm11 = vmmov %vm11491_vm2  ;;  %v11507_v4 = vrot.slane %v11506_v29, 7 }
 0x182   : > { %v1216_v45 = vsel %vm11501_vm15, %v1209_v51, %v1210_v26  ;;  %v1217_v30 = vsel %vm11502_vm11, %v1208_v25, %v1209_v51  ;;  %vm11503_vm10 = vmmov %vm11493_vm1  ;;  %v11509_v17 = vrot.slane %v11506_v29, 1  ;;  %v11511_v51 = vld [vmem:[#allocation28_spill] sm:$0xff]  ;;  %v9572_v29 = vpack.c.bf16 %v731_v36, %v730_v0  ;;  %v7531_v0 = vld [vmem:[%s11078_s3 + $0x22c] ss:$16 sps:$4 sm:$0xff]  }
 0x183   : > { %v1345_v44 = vsel %vm11503_vm10, %v1338_v27, %v1339_v22  ;;  %vm11504_vm2 = vmmov %vm11493_vm1  ;;  %v9537_v15 = vpack.c.bf16 %v1216_v45, %v1217_v30  ;;  %v11516_v45 = vmov 0  ;;  %v7528_v36 = vld [vmem:[%s11078_s3 + $0x224] ss:$16 sps:$4 sm:$0xff]  }
 0x184   : > { %v1346_v43 = vsel %vm11504_vm2, %v1337_v63, %v1338_v27  ;;  %vm11508_vm1 = vmmov %vm11502_vm11 }
 0x185   : > { %11505 = vst [vmem:[#allocation49_spill] sm:$0xff] %v9537_v15  ;;  %v9539_v59 = vpack.c.bf16 %v1346_v43, %v1347_v34  ;;  %v1245_v31 = vsel %vm11508_vm1, %v1212_v46, %v11507_v4  ;;  %vm11510_vm7 = vmmov %vm11504_vm2  ;;  %v1344_v43 = vsel %vm11504_vm2, %v1339_v22, %v1340_v5  ;;  %v7523_v22 = vld [vmem:[%s11078_s3 + $0x208] ss:$16 sps:$4 sm:$0xff]  }
 0x186   : > { %v1374_v25 = vsel %vm11510_vm7, %v1341_v50, %v11509_v17  ;;  %v9550_v52 = vpack.c.bf16 %v11511_v51, %v1245_v31  ;;  %vm11513_vm4 = vmmov %vm11508_vm1  ;;  %v7529_v4 = vld [vmem:[%s11078_s3 + $0x228] ss:$16 sps:$4 sm:$0xff]   ;;  %v7534_v31 = vld [vmem:[%s11078_s3 + $0x244] ss:$16 sps:$4 sm:$0xff]  }
 0x187   : > { %v1214_v63 = vsel %vm11513_vm4, %v1211_v32, %v1212_v46  ;;  %vm11514_vm15 = vmmov %vm11508_vm1  ;;  %v7537_v17 = vld [vmem:[%s11078_s3 + $0x24c] ss:$16 sps:$4 sm:$0xff]   ;;  %v7558_v51 = vld [vmem:[%s11078_s3 + $0x2c4] ss:$16 sps:$4 sm:$0xff]   ;;  %vm11534_vm1 = vnez %v11249_v21  ;;  %vm11537_vm4 = vnez %v11267_v11 }
 0x188   : > { %11512 = vst [vmem:[#allocation23_spill] sm:$0xff] %v9550_v52  ;;  %v1215_v34 = vsel %vm11514_vm15, %v1210_v26, %v1211_v32  ;;  %vm11515_vm11 = vmmov %vm11504_vm2  ;;  %v7520_v26 = vld [vmem:[%s11078_s3 + $0x200] ss:$16 sps:$4 sm:$0xff]   ;;  %v9585_v32 = vpack.c.bf16 %v1344_v43, %v1345_v44  ;;  %v7540_v43 = vld [vmem:[%s11078_s3 + $0x264] ss:$16 sps:$4 sm:$0xff]   ;;  %vm11538_vm15 = vnez %v11255_v20  ;;  %vm11541_vm2 = vnez %v11292_v40 }
 0x189   : > { %v1343_v27 = vsel %vm11515_vm11, %v1340_v5, %v1341_v50  ;;  %vm9562_vm10 = vmpackc.low %vm9505_vm13, %vm9517_vm9  ;;  %v9566_v30 = vpack.c.bf16 %v1214_v63, %v1215_v34  ;;  %v11523_v5 = vld [vmem:[#allocation24_spill] sm:$0xff]  ;;  %v7526_v44 = vld [vmem:[%s11078_s3 + $0x220] ss:$16 sps:$4 sm:$0xff]   ;;  %vm11533_vm9 = vnez %v11252_v19 }
 0x18a   : > { %v11517_v45 = vsel %vm9562_vm10, 4294967295, %v11516_v45  ;;  %v9570_v46 = vpack.c.bf16 %v1374_v25, %v1343_v27  ;;  %vm9581_vm13 = vmpackc.low %vm8565_vm6, %vm8584_vm8  ;;  %6337 = vmatprep.mubr.msk.bf16.mxu1 %vm9562_vm10, %v9572_v29  ;;  %6481 = vmatprep.mubr.msk.bf16.mxu0 %vm9562_vm10, %v9572_v29  ;;  %v7532_v34 = vld [vmem:[%s11078_s3 + $0x240] ss:$16 sps:$4 sm:$0xff]   ;;  %v7535_v27 = vld [vmem:[%s11078_s3 + $0x248] ss:$16 sps:$4 sm:$0xff]   ;;  %vm11529_vm8 = vnez %v11232_v8 }
 0x18b   : > { %11518 = vst [vmem:[#allocation28_spill] sm:$0xff] %v9566_v30  ;;  %3430 = vmatmul.mubr.bf16.vlgmr.msra.gmra.mrb[0].mxu1 %v9566_v30  ;;  %4395 = vmatmul.mubr.bf16.vlgmr.msra.gmra.mrb[32].mxu0 %v9566_v30  ;;  %vm9626_vm6 = vmpackc.low %vm8645_vm12, %vm8665_vm14  ;;  %vm11530_vm12 = vnez %v11228_v62  ;;  %v7552_v62 = vld [vmem:[%s11078_s3 + $0x2a4] ss:$16 sps:$4 sm:$0xff]   ;;  %v7555_v8 = vld [vmem:[%s11078_s3 + $0x2ac] ss:$16 sps:$4 sm:$0xff]  }
 0x18c   : > { %3591 = vmatpush1.bf16.msra.mxu1 %v7520_v26  ;;  %6340 = vmatprep.mubr.msk.bf16.mxu1 %vm9581_vm13, %v11523_v5  ;;  %v7543_v26 = vld [vmem:[%s11078_s3 + $0x26c] ss:$16 sps:$4 sm:$0xff]   ;;  %vm9666_vm14 = vmpackc.low %vm11530_vm12, %vm11529_vm8  ;;  %v7553_v25 = vld [vmem:[%s11078_s3 + $0x2a8] ss:$16 sps:$4 sm:$0xff]  }
 0x18d   : > { %6484 = vmatprep.mubr.msk.bf16.mxu0 %vm9581_vm13, %v11523_v5  ;;  %4556 = vmatpush1.bf16.msra.mxu0 %v7523_v22  ;;  %v7541_v22 = vld [vmem:[%s11078_s3 + $0x268] ss:$16 sps:$4 sm:$0xff]   ;;  %vm9706_vm7 = vmpackc.low %vm11534_vm1, %vm11533_vm9  ;;  %v7564_v21 = vld [vmem:[%s11078_s3 + $0x2e4] ss:$16 sps:$4 sm:$0xff]   ;;  %vm11546_vm9 = vnez %v11304_v10  ;;  %vm11547_vm1 = vnez %v11295_v35 }
 0x18e   : > { %3592 = vmatprep.subr.bf16.mxu1 %v7528_v36  ;;  %4557 = vmatprep.subr.bf16.mxu0 %v7531_v0  ;;  %v7546_v36 = vld [vmem:[%s11078_s3 + $0x284] ss:$16 sps:$4 sm:$0xff]   ;;  %v7549_v0 = vld [vmem:[%s11078_s3 + $0x28c] ss:$16 sps:$4 sm:$0xff]   ;;  %vm9746_vm11 = vmpackc.low %vm11538_vm15, %vm11537_vm4 }
 0x18f   : > { %v7567_v19 = vld [vmem:[%s11078_s3 + $0x2ec] ss:$16 sps:$4 sm:$0xff]   ;;  %v7576_v20 = vld [vmem:[%s11078_s3 + $0x324] ss:$16 sps:$4 sm:$0xff]   ;;  %vm9826_vm4 = vmpackc.low %vm11547_vm1, %vm11546_vm9 }
 0x190   : > { %3593 = vmatpush1.bf16.msra.mxu1 %v7526_v44  ;;  %v7579_v11 = vld [vmem:[%s11078_s3 + $0x32c] ss:$16 sps:$4 sm:$0xff]   ;;  %v7588_v40 = vld [vmem:[%s11078_s3 + $0x364] ss:$16 sps:$4 sm:$0xff]   ;;  %v7814_v63 = vld [vmem:[%s11078_s3 + $0x820] ss:$16 sps:$4 sm:$0xff]  }
 0x191   : > { %4558 = vmatpush1.bf16.msra.mxu0 %v7529_v4  ;;  %3594 = vmatprep.subr.bf16.mxu1 %v7534_v31  ;;  %v7544_v4 = vld [vmem:[%s11078_s3 + $0x280] ss:$16 sps:$4 sm:$0xff]   ;;  %v7547_v31 = vld [vmem:[%s11078_s3 + $0x288] ss:$16 sps:$4 sm:$0xff]   ;;  %v7600_v35 = vld [vmem:[%s11078_s3 + $0x3a4] ss:$16 sps:$4 sm:$0xff]  }
 0x192   : > { %4559 = vmatprep.subr.bf16.mxu0 %v7537_v17  ;;  %v7550_v17 = vld [vmem:[%s11078_s3 + $0x2a0] ss:$16 sps:$4 sm:$0xff]   ;;  %v7603_v10 = vld [vmem:[%s11078_s3 + $0x3ac] ss:$16 sps:$4 sm:$0xff]   ;;  %v7823_v44 = vld [vmem:[%s11078_s3 + $0x848] ss:$16 sps:$4 sm:$0xff]  }
 0x193   : > { %3440 = vmatmul.mubr.bf16.gmra.mrb[4].mxu1 %v9550_v52  ;;  %4405 = vmatmul.mubr.bf16.gmra.mrb[36].mxu0 %v9550_v52 }
 0x194   : > { %6343 = vmatprep.mubr.msk.bf16.mxu1 %vm9626_vm6, %v11528_v23  ;;  %6487 = vmatprep.mubr.msk.bf16.mxu0 %vm9626_vm6, %v11528_v23 }
 0x195   : > { %3595 = vmatpush1.bf16.msra.mxu1 %v7532_v34  ;;  %4560 = vmatpush1.bf16.msra.mxu0 %v7535_v27  ;;  %v7561_v34 = vld [vmem:[%s11078_s3 + $0x2cc] ss:$16 sps:$4 sm:$0xff]   ;;  %v7832_v27 = vld [vmem:[%s11078_s3 + $0x880] ss:$16 sps:$4 sm:$0xff]  }
 0x196   : > { %3596 = vmatprep.subr.bf16.mxu1 %v7540_v43  ;;  %4561 = vmatprep.subr.bf16.mxu0 %v7543_v26  ;;  %v7556_v43 = vld [vmem:[%s11078_s3 + $0x2c0] ss:$16 sps:$4 sm:$0xff]   ;;  %v7559_v26 = vld [vmem:[%s11078_s3 + $0x2c8] ss:$16 sps:$4 sm:$0xff]  }
 0x199   : > { %3597 = vmatpush1.bf16.msra.mxu1 %v7538_v57  ;;  %4562 = vmatpush1.bf16.msra.mxu0 %v7541_v22  ;;  %v7562_v57 = vld [vmem:[%s11078_s3 + $0x2e0] ss:$16 sps:$4 sm:$0xff]   ;;  %v7565_v22 = vld [vmem:[%s11078_s3 + $0x2e8] ss:$16 sps:$4 sm:$0xff]  }
 0x19a   : > { %3598 = vmatprep.subr.bf16.mxu1 %v7546_v36  ;;  %4563 = vmatprep.subr.bf16.mxu0 %v7549_v0  ;;  %v7570_v36 = vld [vmem:[%s11078_s3 + $0x304] ss:$16 sps:$4 sm:$0xff]   ;;  %v7573_v0 = vld [vmem:[%s11078_s3 + $0x30c] ss:$16 sps:$4 sm:$0xff]  }
 0x19b   : > { %3450 = vmatmul.mubr.bf16.gmra.mrb[8].mxu1 %v8791_v2  ;;  %4415 = vmatmul.mubr.bf16.gmra.mrb[40].mxu0 %v8791_v2 }
 0x19c   : > { %6346 = vmatprep.mubr.msk.bf16.mxu1 %vm9666_vm14, %v8817_v12  ;;  %6490 = vmatprep.mubr.msk.bf16.mxu0 %vm9666_vm14, %v8817_v12 }
 0x19d   : > { %3599 = vmatpush1.bf16.msra.mxu1 %v7544_v4  ;;  %4564 = vmatpush1.bf16.msra.mxu0 %v7547_v31  ;;  %v7568_v31 = vld [vmem:[%s11078_s3 + $0x300] ss:$16 sps:$4 sm:$0xff]  }
 0x19e   : > { %3600 = vmatprep.subr.bf16.mxu1 %v7552_v62  ;;  %4565 = vmatprep.subr.bf16.mxu0 %v7555_v8  ;;  %v7571_v62 = vld [vmem:[%s11078_s3 + $0x308] ss:$16 sps:$4 sm:$0xff]   ;;  %v7574_v8 = vld [vmem:[%s11078_s3 + $0x320] ss:$16 sps:$4 sm:$0xff]  }
 0x19f   : > { %v7844_v4 = vld [vmem:[%s11078_s3 + $0x8c0] ss:$16 sps:$4 sm:$0xff]  }
 0x1a1   : > { %3601 = vmatpush1.bf16.msra.mxu1 %v7550_v17  ;;  %4566 = vmatpush1.bf16.msra.mxu0 %v7553_v25  ;;  %v7577_v17 = vld [vmem:[%s11078_s3 + $0x328] ss:$16 sps:$4 sm:$0xff]   ;;  %v7582_v25 = vld [vmem:[%s11078_s3 + $0x344] ss:$16 sps:$4 sm:$0xff]  }
 0x1a2   : > { %3602 = vmatprep.subr.bf16.mxu1 %v7558_v51  ;;  %4567 = vmatprep.subr.bf16.mxu0 %v7561_v34  ;;  %v7585_v51 = vld [vmem:[%s11078_s3 + $0x34c] ss:$16 sps:$4 sm:$0xff]   ;;  %v11542_v34 = vld [vmem:[#allocation32_spill] sm:$0xff] }
 0x1a3   : > { %3460 = vmatmul.mubr.bf16.gmra.mrb[12].mxu1 %v8848_v55  ;;  %4425 = vmatmul.mubr.bf16.gmra.mrb[44].mxu0 %v8848_v55  ;;  %vm11543_vm8 = vnez %v11542_v34  ;;  %v11551_v34 = vld [vmem:[#allocation38_spill] sm:$0xff] }
 0x1a4   : > { %6349 = vmatprep.mubr.msk.bf16.mxu1 %vm9706_vm7, %v8871_v28  ;;  %6493 = vmatprep.mubr.msk.bf16.mxu0 %vm9706_vm7, %v8871_v28  ;;  %vm9786_vm12 = vmpackc.low %vm11543_vm8, %vm11541_vm2  ;;  %vm11552_vm15 = vnez %v11551_v34  ;;  %v11566_v34 = vld [vmem:[#allocation16_spill] sm:$0xff] }
 0x1a5   : > { %3603 = vmatpush1.bf16.msra.mxu1 %v7556_v43  ;;  %4568 = vmatpush1.bf16.msra.mxu0 %v7559_v26  ;;  %v7580_v26 = vld [vmem:[%s11078_s3 + $0x340] ss:$16 sps:$4 sm:$0xff]  }
 0x1a6   : > { %3604 = vmatprep.subr.bf16.mxu1 %v7564_v21  ;;  %4569 = vmatprep.subr.bf16.mxu0 %v7567_v19  ;;  %v7583_v21 = vld [vmem:[%s11078_s3 + $0x348] ss:$16 sps:$4 sm:$0xff]   ;;  %v7591_v19 = vld [vmem:[%s11078_s3 + $0x36c] ss:$16 sps:$4 sm:$0xff]  }
 0x1a9   : > { %3605 = vmatpush1.bf16.msra.mxu1 %v7562_v57  ;;  %4570 = vmatpush1.bf16.msra.mxu0 %v7565_v22  ;;  %v7586_v57 = vld [vmem:[%s11078_s3 + $0x360] ss:$16 sps:$4 sm:$0xff]   ;;  %v7589_v22 = vld [vmem:[%s11078_s3 + $0x368] ss:$16 sps:$4 sm:$0xff]  }
 0x1aa   : > { %3606 = vmatprep.subr.bf16.mxu1 %v7570_v36  ;;  %4571 = vmatprep.subr.bf16.mxu0 %v7573_v0  ;;  %v7594_v36 = vld [vmem:[%s11078_s3 + $0x384] ss:$16 sps:$4 sm:$0xff]   ;;  %v7597_v0 = vld [vmem:[%s11078_s3 + $0x38c] ss:$16 sps:$4 sm:$0xff]  }
 0x1ab   : > { %3470 = vmatmul.mubr.bf16.gmra.mrb[16].mxu1 %v8931_v58  ;;  %4435 = vmatmul.mubr.bf16.gmra.mrb[48].mxu0 %v8931_v58 }
 0x1ac   : > { %6352 = vmatprep.mubr.msk.bf16.mxu1 %vm9746_vm11, %v8937_v54  ;;  %6496 = vmatprep.mubr.msk.bf16.mxu0 %vm9746_vm11, %v8937_v54 }
 0x1ad   : > { %3607 = vmatpush1.bf16.msra.mxu1 %v7568_v31  ;;  %4572 = vmatpush1.bf16.msra.mxu0 %v7571_v62  ;;  %v7592_v62 = vld [vmem:[%s11078_s3 + $0x380] ss:$16 sps:$4 sm:$0xff]  }
 0x1ae   : > { %3608 = vmatprep.subr.bf16.mxu1 %v7576_v20  ;;  %4573 = vmatprep.subr.bf16.mxu0 %v7579_v11  ;;  %v7595_v20 = vld [vmem:[%s11078_s3 + $0x388] ss:$16 sps:$4 sm:$0xff]  }
 0x1af   : > { %v11550_v11 = vld [vmem:[#allocation36_spill] sm:$0xff] }
 0x1b1   : > { %3609 = vmatpush1.bf16.msra.mxu1 %v7574_v8  ;;  %4574 = vmatpush1.bf16.msra.mxu0 %v7577_v17  ;;  %v7598_v8 = vld [vmem:[%s11078_s3 + $0x3a0] ss:$16 sps:$4 sm:$0xff]   ;;  %v7601_v17 = vld [vmem:[%s11078_s3 + $0x3a8] ss:$16 sps:$4 sm:$0xff]  }
 0x1b2   : > { %3610 = vmatprep.subr.bf16.mxu1 %v7582_v25  ;;  %4575 = vmatprep.subr.bf16.mxu0 %v7585_v51  ;;  %v7606_v25 = vld [vmem:[%s11078_s3 + $0x3c4] ss:$16 sps:$4 sm:$0xff]   ;;  %v7609_v51 = vld [vmem:[%s11078_s3 + $0x3cc] ss:$16 sps:$4 sm:$0xff]  }
 0x1b3   : > { %3480 = vmatmul.mubr.bf16.gmra.mrb[20].mxu1 %v8996_v1  ;;  %4445 = vmatmul.mubr.bf16.gmra.mrb[52].mxu0 %v8996_v1 }
 0x1b4   : > { %6355 = vmatprep.mubr.msk.bf16.mxu1 %vm9786_vm12, %v9002_v38  ;;  %6499 = vmatprep.mubr.msk.bf16.mxu0 %vm9786_vm12, %v9002_v38 }
 0x1b5   : > { %3611 = vmatpush1.bf16.msra.mxu1 %v7580_v26  ;;  %4576 = vmatpush1.bf16.msra.mxu0 %v7583_v21  ;;  %v11553_v26 = vld [vmem:[#allocation35_spill] sm:$0xff] }
 0x1b6   : > { %3612 = vmatprep.subr.bf16.mxu1 %v7588_v40  ;;  %4577 = vmatprep.subr.bf16.mxu0 %v7591_v19  ;;  %vm11554_vm2 = vnez %v11553_v26  ;;  %v7604_v40 = vld [vmem:[%s11078_s3 + $0x3c0] ss:$16 sps:$4 sm:$0xff]   ;;  %v7607_v19 = vld [vmem:[%s11078_s3 + $0x3c8] ss:$16 sps:$4 sm:$0xff]  }
 0x1b7   : > { %vm9866_vm8 = vmpackc.low %vm11554_vm2, %vm11552_vm15  ;;  %vm11567_vm2 = vnez %v11386_v16  ;;  %v11568_v26 = vld [vmem:[#allocation44_spill] sm:$0xff]  ;;  %v11576_v16 = vld [vmem:[#allocation17_spill] sm:$0xff] }
 0x1b9   : > { %3613 = vmatpush1.bf16.msra.mxu1 %v7586_v57  ;;  %4578 = vmatpush1.bf16.msra.mxu0 %v7589_v22  ;;  %v7612_v57 = vld [vmem:[%s11078_s3 + $0x3e4] ss:$16 sps:$4 sm:$0xff]   ;;  %v7615_v22 = vld [vmem:[%s11078_s3 + $0x3ec] ss:$16 sps:$4 sm:$0xff]  }
 0x1ba   : > { %3614 = vmatprep.subr.bf16.mxu1 %v7594_v36  ;;  %4579 = vmatprep.subr.bf16.mxu0 %v7597_v0  ;;  %v11557_v36 = vld [vmem:[#allocation39_spill] sm:$0xff] }
 0x1bb   : > { %3490 = vmatmul.mubr.bf16.gmra.mrb[24].mxu1 %v11550_v11  ;;  %4455 = vmatmul.mubr.bf16.gmra.mrb[56].mxu0 %v11550_v11  ;;  %v11558_v0 = vld [vmem:[#allocation43_spill] sm:$0xff] }
 0x1bc   : > { %6358 = vmatprep.mubr.msk.bf16.mxu1 %vm9826_vm4, %v9083_v53  ;;  %6502 = vmatprep.mubr.msk.bf16.mxu0 %vm9826_vm4, %v9083_v53 }
 0x1bd   : > { %3615 = vmatpush1.bf16.msra.mxu1 %v7592_v62  ;;  %4580 = vmatpush1.bf16.msra.mxu0 %v7595_v20  ;;  %v7610_v62 = vld [vmem:[%s11078_s3 + $0x3e0] ss:$16 sps:$4 sm:$0xff]   ;;  %v7613_v20 = vld [vmem:[%s11078_s3 + $0x3e8] ss:$16 sps:$4 sm:$0xff]  }
 0x1be   : > { %3616 = vmatprep.subr.bf16.mxu1 %v7600_v35  ;;  %4581 = vmatprep.subr.bf16.mxu0 %v7603_v10  ;;  %v7618_v35 = vld [vmem:[%s11078_s3 + $0x404] ss:$16 sps:$4 sm:$0xff]   ;;  %v7621_v10 = vld [vmem:[%s11078_s3 + $0x40c] ss:$16 sps:$4 sm:$0xff]  }
 0x1c1   : > { %3617 = vmatpush1.bf16.msra.mxu1 %v7598_v8  ;;  %4582 = vmatpush1.bf16.msra.mxu0 %v7601_v17  ;;  %v11559_v8 = vld [vmem:[#allocation42_spill] sm:$0xff]  ;;  %v11561_v17 = vld [vmem:[#allocation41_spill] sm:$0xff] }
 0x1c2   : > { %3618 = vmatprep.subr.bf16.mxu1 %v7606_v25  ;;  %4583 = vmatprep.subr.bf16.mxu0 %v7609_v51  ;;  %vm11560_vm9 = vnez %v11559_v8  ;;  %vm11562_vm1 = vnez %v11561_v17  ;;  %v11563_v25 = vmov 0  ;;  %v11565_v51 = vld [vmem:[#allocation15_spill] sm:$0xff]  ;;  %v7625_v17 = vld [vmem:[%s11078_s3 + $0x428] ss:$16 sps:$4 sm:$0xff]  }
 0x1c3   : > { %3500 = vmatmul.mubr.bf16.gmra.mrb[28].mxu1 %v11557_v36  ;;  %4465 = vmatmul.mubr.bf16.gmra.mrb[60].mxu0 %v11557_v36  ;;  %vm9906_vm15 = vmpackc.low %vm11562_vm1, %vm11560_vm9  ;;  %vm11569_vm9 = vnez %v11568_v26  ;;  %v7622_v8 = vld [vmem:[%s11078_s3 + $0x420] ss:$16 sps:$4 sm:$0xff]   ;;  %v7630_v26 = vld [vmem:[%s11078_s3 + $0x444] ss:$16 sps:$4 sm:$0xff]  }
 0x1c4   : > { %6361 = vmatprep.mubr.msk.bf16.mxu1 %vm9866_vm8, %v11558_v0  ;;  %6505 = vmatprep.mubr.msk.bf16.mxu0 %vm9866_vm8, %v11558_v0  ;;  %v11564_v25 = vsel %vm9906_vm15, 4294967295, %v11563_v25  ;;  %vm9922_vm1 = vmpackc.low %vm11569_vm9, %vm11567_vm2  ;;  %vm11580_vm9 = vnez %v11426_v9  ;;  %v5457_v9 = vld [vmem:[#allocation3 + $0x10] sm:$0xff] }
 0x1c5   : > { %3619 = vmatpush1.bf16.msra.mxu1 %v7604_v40  ;;  %4584 = vmatpush1.bf16.msra.mxu0 %v7607_v19  ;;  %v11572_v19 = vld [vmem:[#allocation22_spill] sm:$0xff] }
 0x1c6   : > { %3620 = vmatprep.subr.bf16.mxu1 %v7612_v57  ;;  %4585 = vmatprep.subr.bf16.mxu0 %v7615_v22  ;;  %v11573_v57 = vld [vmem:[#allocation20_spill] sm:$0xff]  ;;  %v11574_v22 = vld [vmem:[#allocation19_spill] sm:$0xff] }
 0x1c7   : > { %vm11575_vm10 = vnez %v11574_v22  ;;  %v7633_v22 = vld [vmem:[%s11078_s3 + $0x44c] ss:$16 sps:$4 sm:$0xff]  }
 0x1c9   : > { %3621 = vmatpush1.bf16.msra.mxu1 %v7610_v62  ;;  %4586 = vmatpush1.bf16.msra.mxu0 %v7613_v20  ;;  %v11578_v62 = vmov 0  ;;  %v11581_v20 = vmov 0 }
 0x1ca   : > { %3783 = vmatprep.subr.bf16.mxu1 %v7618_v35  ;;  %4748 = vmatprep.subr.bf16.mxu0 %v7621_v10  ;;  %v11588_v35 = vld [vmem:[#allocation47_spill] sm:$0xff] }
 0x1cb   : > { %3510 = vmatmul.mubr.bf16.gmra.mrb[32].mxu1 %v11565_v51  ;;  %4475 = vmatmul.mubr.bf16.gmra.mrb[64].mxu0 %v11565_v51  ;;  %v7627_v10 = vld [vmem:[%s11078_s3 + $0x42c] ss:$16 sps:$4 sm:$0xff]  }
 0x1cc   : > { %6364 = vmatprep.mubr.msk.bf16.mxu1 %vm9906_vm15, %v11566_v34  ;;  %6508 = vmatprep.mubr.msk.bf16.mxu0 %vm9906_vm15, %v11566_v34  ;;  %vm11577_vm15 = vnez %v11576_v16  ;;  %v7628_v16 = vld [vmem:[%s11078_s3 + $0x440] ss:$16 sps:$4 sm:$0xff]  }
 0x1cd   : > { %vm9938_vm2 = vmpackc.low %vm11577_vm15, %vm11575_vm10  ;;  %vm11583_vm15 = vnez %v11456_v6 }
 0x1ce   : > { %v11579_v62 = vsel %vm9938_vm2, 4294967295, %v11578_v62  ;;  %vm9954_vm10 = vmpackc.low %vm11580_vm9, %vm9323_vm0  ;;  %vm11589_vm9 = vnez %v11462_v24  ;;  %v7616_v24 = vld [vmem:[%s11078_s3 + $0x400] ss:$16 sps:$4 sm:$0xff]  }
 0x1cf   : > { %v11582_v20 = vsel %vm9954_vm10, 4294967295, %v11581_v20 }
 0x1d3   : > { %3520 = vmatmul.mubr.bf16.gmra.mrb[36].mxu1 %v11572_v19  ;;  %4485 = vmatmul.mubr.bf16.gmra.mrb[68].mxu0 %v11572_v19 }
 0x1d4   : > { %6367 = vmatprep.mubr.msk.bf16.mxu1 %vm9922_vm1, %v11573_v57  ;;  %6511 = vmatprep.mubr.msk.bf16.mxu0 %vm9922_vm1, %v11573_v57 }
 0x1db   : > { %3530 = vmatmul.mubr.bf16.gmra.mrb[40].mxu1 %v9309_v37  ;;  %4495 = vmatmul.mubr.bf16.gmra.mrb[72].mxu0 %v9309_v37 }
 0x1dc   : > { %6370 = vmatprep.mubr.msk.bf16.mxu1 %vm9938_vm2, %v9336_v13  ;;  %6514 = vmatprep.mubr.msk.bf16.mxu0 %vm9938_vm2, %v9336_v13  ;;  %vm11585_vm2 = vnez %v11584_v47  ;;  %v7631_v47 = vld [vmem:[%s11078_s3 + $0x448] ss:$16 sps:$4 sm:$0xff]  }
 0x1dd   : > { %vm9970_vm0 = vmpackc.low %vm11585_vm2, %vm11583_vm15  ;;  %vm11608_vm15 = vnez %v11582_v20 }
 0x1e3   : > { %3540 = vmatmul.mubr.bf16.gmra.mrb[44].mxu1 %v9328_v48  ;;  %4505 = vmatmul.mubr.bf16.gmra.mrb[76].mxu0 %v9328_v48 }
 0x1e4   : > { %6373 = vmatprep.mubr.msk.bf16.mxu1 %vm9954_vm10, %v9398_v14  ;;  %6517 = vmatprep.mubr.msk.bf16.mxu0 %vm9954_vm10, %v9398_v14  ;;  %vm11590_vm10 = vnez %v11459_v60 }
 0x1e5   : > { %vm9986_vm2 = vmpackc.low %vm11590_vm10, %vm11589_vm9  ;;  %vm11609_vm9 = vnez %v11517_v45 }
 0x1e6   : > { %vm10002_vm10 = vmpackc.low %vm9458_vm3, %vm9489_vm5  ;;  %vm11606_vm5 = vnez %v11564_v25  ;;  %vm11607_vm3 = vnez %v11579_v62  ;;  %v5455_v62 = vld [vmem:[#allocation3] sm:$0xff] }
 0x1eb   : > { %3550 = vmatmul.mubr.bf16.gmra.mrb[48].mxu1 %v9443_v33  ;;  %4515 = vmatmul.mubr.bf16.gmra.mrb[80].mxu0 %v9443_v33 }
 0x1ec   : > { %6376 = vmatprep.mubr.msk.bf16.mxu1 %vm9970_vm0, %v11588_v35  ;;  %6520 = vmatprep.mubr.msk.bf16.mxu0 %vm9970_vm0, %v11588_v35 }
 0x1f3   : > { %3560 = vmatmul.mubr.bf16.gmra.mrb[52].mxu1 %v9474_v3  ;;  %4525 = vmatmul.mubr.bf16.gmra.mrb[84].mxu0 %v9474_v3 }
 0x1f4   : > { %6379 = vmatprep.mubr.msk.bf16.mxu1 %vm9986_vm2, %v9451_v39  ;;  %6523 = vmatprep.mubr.msk.bf16.mxu0 %vm9986_vm2, %v9451_v39 }
 0x1fb   : > { %3570 = vmatmul.mubr.bf16.gmra.mrb[56].mxu1 %v9509_v49  ;;  %4535 = vmatmul.mubr.bf16.gmra.mrb[88].mxu0 %v9509_v49 }
 0x1fc   : > { %6382 = vmatprep.mubr.msk.bf16.mxu1 %vm10002_vm10, %v9523_v7  ;;  %6526 = vmatprep.mubr.msk.bf16.mxu0 %vm10002_vm10, %v9523_v7 }
 0x203   : > { %3580 = vmatmul.mubr.bf16.gmra.mrb[60].mxu1 %v9537_v15  ;;  %4545 = vmatmul.mubr.bf16.gmra.mrb[92].mxu0 %v9537_v15 }
 0x204   : > { %3622 = vmatprep.mubr.bf16.mxu1 %v9550_v52  ;;  %4587 = vmatprep.mubr.bf16.mxu0 %v9550_v52  ;;  %v7681_v52 = vld [vmem:[%s11078_s3 + $0x54c] ss:$16 sps:$4 sm:$0xff]  }
 0x20b   : > { %3623 = vmatmul.mubr.bf16.vlgmr.msra.gmra.mrb[0].mxu1 %v9570_v46  ;;  %4588 = vmatmul.mubr.bf16.vlgmr.msra.gmra.mrb[32].mxu0 %v9570_v46 }
 0x20c   : > { %3784 = vmatpush1.bf16.msra.mxu1 %v7616_v24  ;;  %3632 = vmatprep.mubr.bf16.mxu1 %v8791_v2  ;;  %v7636_v24 = vld [vmem:[%s11078_s3 + $0x464] ss:$16 sps:$4 sm:$0xff]  }
 0x20d   : > { %4597 = vmatprep.mubr.bf16.mxu0 %v8791_v2  ;;  %4749 = vmatpush1.bf16.msra.mxu0 %v7619_v56  ;;  %v7639_v56 = vld [vmem:[%s11078_s3 + $0x46c] ss:$16 sps:$4 sm:$0xff]  }
 0x20e   : > { %3785 = vmatprep.subr.bf16.mxu1 %v7624_v18  ;;  %4750 = vmatprep.subr.bf16.mxu0 %v7627_v10  ;;  %v11595_v18 = vld [vmem:[#allocation30_spill] sm:$0xff]  ;;  %v7634_v10 = vld [vmem:[%s11078_s3 + $0x460] ss:$16 sps:$4 sm:$0xff]  }
 0x210   : > { %3786 = vmatpush1.bf16.msra.mxu1 %v7622_v8  ;;  %v7637_v8 = vld [vmem:[%s11078_s3 + $0x468] ss:$16 sps:$4 sm:$0xff]  }
 0x211   : > { %4751 = vmatpush1.bf16.msra.mxu0 %v7625_v17  ;;  %3787 = vmatprep.subr.bf16.mxu1 %v7630_v26  ;;  %v7642_v17 = vld [vmem:[%s11078_s3 + $0x484] ss:$16 sps:$4 sm:$0xff]   ;;  %v7645_v26 = vld [vmem:[%s11078_s3 + $0x48c] ss:$16 sps:$4 sm:$0xff]  }
 0x212   : > { %4752 = vmatprep.subr.bf16.mxu0 %v7633_v22  ;;  %v7640_v22 = vld [vmem:[%s11078_s3 + $0x480] ss:$16 sps:$4 sm:$0xff]  }
 0x213   : > { %3633 = vmatmul.mubr.bf16.gmra.mrb[4].mxu1 %v11595_v18  ;;  %4598 = vmatmul.mubr.bf16.gmra.mrb[36].mxu0 %v11595_v18 }
 0x214   : > { %3642 = vmatprep.mubr.bf16.mxu1 %v8848_v55  ;;  %4607 = vmatprep.mubr.bf16.mxu0 %v8848_v55 }
 0x215   : > { %3788 = vmatpush1.bf16.msra.mxu1 %v7628_v16  ;;  %4753 = vmatpush1.bf16.msra.mxu0 %v7631_v47  ;;  %v7643_v16 = vld [vmem:[%s11078_s3 + $0x488] ss:$16 sps:$4 sm:$0xff]   ;;  %v7648_v47 = vld [vmem:[%s11078_s3 + $0x4a4] ss:$16 sps:$4 sm:$0xff]  }
 0x216   : > { %3789 = vmatprep.subr.bf16.mxu1 %v7636_v24  ;;  %4754 = vmatprep.subr.bf16.mxu0 %v7639_v56  ;;  %v7651_v24 = vld [vmem:[%s11078_s3 + $0x4ac] ss:$16 sps:$4 sm:$0xff]  }
 0x217   : > { %v11596_v56 = vld [vmem:[#allocation31_spill] sm:$0xff] }
 0x219   : > { %3790 = vmatpush1.bf16.msra.mxu1 %v7634_v10  ;;  %4755 = vmatpush1.bf16.msra.mxu0 %v7637_v8  ;;  %v7646_v10 = vld [vmem:[%s11078_s3 + $0x4a0] ss:$16 sps:$4 sm:$0xff]   ;;  %v7649_v8 = vld [vmem:[%s11078_s3 + $0x4a8] ss:$16 sps:$4 sm:$0xff]  }
 0x21a   : > { %3791 = vmatprep.subr.bf16.mxu1 %v7642_v17  ;;  %4756 = vmatprep.subr.bf16.mxu0 %v7645_v26  ;;  %v7654_v17 = vld [vmem:[%s11078_s3 + $0x4c4] ss:$16 sps:$4 sm:$0xff]   ;;  %v7657_v26 = vld [vmem:[%s11078_s3 + $0x4cc] ss:$16 sps:$4 sm:$0xff]  }
 0x21b   : > { %3643 = vmatmul.mubr.bf16.gmra.mrb[8].mxu1 %v11596_v56  ;;  %4608 = vmatmul.mubr.bf16.gmra.mrb[40].mxu0 %v11596_v56 }
 0x21c   : > { %3652 = vmatprep.mubr.bf16.mxu1 %v8931_v58  ;;  %4617 = vmatprep.mubr.bf16.mxu0 %v8931_v58 }
 0x21d   : > { %3792 = vmatpush1.bf16.msra.mxu1 %v7640_v22  ;;  %4757 = vmatpush1.bf16.msra.mxu0 %v7643_v16  ;;  %v7652_v22 = vld [vmem:[%s11078_s3 + $0x4c0] ss:$16 sps:$4 sm:$0xff]   ;;  %v7655_v16 = vld [vmem:[%s11078_s3 + $0x4c8] ss:$16 sps:$4 sm:$0xff]  }
 0x21e   : > { %3793 = vmatprep.subr.bf16.mxu1 %v7648_v47  ;;  %4758 = vmatprep.subr.bf16.mxu0 %v7651_v24  ;;  %v7660_v47 = vld [vmem:[%s11078_s3 + $0x4e4] ss:$16 sps:$4 sm:$0xff]   ;;  %v7663_v24 = vld [vmem:[%s11078_s3 + $0x4ec] ss:$16 sps:$4 sm:$0xff]  }
 0x221   : > { %3794 = vmatpush1.bf16.msra.mxu1 %v7646_v10  ;;  %4759 = vmatpush1.bf16.msra.mxu0 %v7649_v8  ;;  %v11597_v10 = vld [vmem:[#allocation33_spill] sm:$0xff] }
 0x222   : > { %3795 = vmatprep.subr.bf16.mxu1 %v7654_v17  ;;  %4760 = vmatprep.subr.bf16.mxu0 %v7657_v26  ;;  %v7658_v8 = vld [vmem:[%s11078_s3 + $0x4e0] ss:$16 sps:$4 sm:$0xff]   ;;  %v7661_v17 = vld [vmem:[%s11078_s3 + $0x4e8] ss:$16 sps:$4 sm:$0xff]   ;;  %v7666_v26 = vld [vmem:[%s11078_s3 + $0x504] ss:$16 sps:$4 sm:$0xff]  }
 0x223   : > { %3653 = vmatmul.mubr.bf16.gmra.mrb[12].mxu1 %v11597_v10  ;;  %4618 = vmatmul.mubr.bf16.gmra.mrb[44].mxu0 %v11597_v10 }
 0x224   : > { %3662 = vmatprep.mubr.bf16.mxu1 %v8996_v1  ;;  %4627 = vmatprep.mubr.bf16.mxu0 %v8996_v1 }
 0x225   : > { %3796 = vmatpush1.bf16.msra.mxu1 %v7652_v22  ;;  %4761 = vmatpush1.bf16.msra.mxu0 %v7655_v16  ;;  %v7664_v22 = vld [vmem:[%s11078_s3 + $0x500] ss:$16 sps:$4 sm:$0xff]   ;;  %v7667_v16 = vld [vmem:[%s11078_s3 + $0x508] ss:$16 sps:$4 sm:$0xff]  }
 0x226   : > { %3797 = vmatprep.subr.bf16.mxu1 %v7660_v47  ;;  %4762 = vmatprep.subr.bf16.mxu0 %v7663_v24  ;;  %v7672_v47 = vld [vmem:[%s11078_s3 + $0x524] ss:$16 sps:$4 sm:$0xff]   ;;  %v7675_v24 = vld [vmem:[%s11078_s3 + $0x52c] ss:$16 sps:$4 sm:$0xff]  }
 0x229   : > { %3798 = vmatpush1.bf16.msra.mxu1 %v7658_v8  ;;  %4763 = vmatpush1.bf16.msra.mxu0 %v7661_v17  ;;  %v11598_v8 = vld [vmem:[#allocation34_spill] sm:$0xff] }
 0x22a   : > { %3799 = vmatprep.subr.bf16.mxu1 %v7666_v26  ;;  %4764 = vmatprep.subr.bf16.mxu0 %v7669_v41  ;;  %v7670_v41 = vld [vmem:[%s11078_s3 + $0x520] ss:$16 sps:$4 sm:$0xff]   ;;  %v7673_v17 = vld [vmem:[%s11078_s3 + $0x528] ss:$16 sps:$4 sm:$0xff]   ;;  %v7678_v26 = vld [vmem:[%s11078_s3 + $0x544] ss:$16 sps:$4 sm:$0xff]  }
 0x22b   : > { %3663 = vmatmul.mubr.bf16.gmra.mrb[16].mxu1 %v11598_v8  ;;  %4628 = vmatmul.mubr.bf16.gmra.mrb[48].mxu0 %v11598_v8 }
 0x22c   : > { %3672 = vmatprep.mubr.bf16.mxu1 %v11550_v11  ;;  %4637 = vmatprep.mubr.bf16.mxu0 %v11550_v11 }
 0x22d   : > { %3800 = vmatpush1.bf16.msra.mxu1 %v7664_v22  ;;  %4765 = vmatpush1.bf16.msra.mxu0 %v7667_v16  ;;  %v7676_v22 = vld [vmem:[%s11078_s3 + $0x540] ss:$16 sps:$4 sm:$0xff]   ;;  %v7679_v16 = vld [vmem:[%s11078_s3 + $0x548] ss:$16 sps:$4 sm:$0xff]  }
 0x22e   : > { %3801 = vmatprep.subr.bf16.mxu1 %v7672_v47  ;;  %4766 = vmatprep.subr.bf16.mxu0 %v7675_v24  ;;  %v7684_v47 = vld [vmem:[%s11078_s3 + $0x564] ss:$16 sps:$4 sm:$0xff]   ;;  %v7687_v24 = vld [vmem:[%s11078_s3 + $0x56c] ss:$16 sps:$4 sm:$0xff]  }
 0x231   : > { %3802 = vmatpush1.bf16.msra.mxu1 %v7670_v41  ;;  %4767 = vmatpush1.bf16.msra.mxu0 %v7673_v17  ;;  %v11599_v41 = vld [vmem:[#allocation37_spill] sm:$0xff]  ;;  %v7685_v17 = vld [vmem:[%s11078_s3 + $0x568] ss:$16 sps:$4 sm:$0xff]  }
 0x232   : > { %3803 = vmatprep.subr.bf16.mxu1 %v7678_v26  ;;  %4768 = vmatprep.subr.bf16.mxu0 %v7681_v52  ;;  %v7682_v52 = vld [vmem:[%s11078_s3 + $0x560] ss:$16 sps:$4 sm:$0xff]   ;;  %v7690_v26 = vld [vmem:[%s11078_s3 + $0x584] ss:$16 sps:$4 sm:$0xff]  }
 0x233   : > { %3673 = vmatmul.mubr.bf16.gmra.mrb[20].mxu1 %v11599_v41  ;;  %4638 = vmatmul.mubr.bf16.gmra.mrb[52].mxu0 %v11599_v41 }
 0x234   : > { %3682 = vmatprep.mubr.bf16.mxu1 %v11557_v36  ;;  %4647 = vmatprep.mubr.bf16.mxu0 %v11557_v36  ;;  %v7693_v36 = vld [vmem:[%s11078_s3 + $0x58c] ss:$16 sps:$4 sm:$0xff]  }
 0x235   : > { %3804 = vmatpush1.bf16.msra.mxu1 %v7676_v22  ;;  %4769 = vmatpush1.bf16.msra.mxu0 %v7679_v16  ;;  %v7688_v22 = vld [vmem:[%s11078_s3 + $0x580] ss:$16 sps:$4 sm:$0xff]   ;;  %v7691_v16 = vld [vmem:[%s11078_s3 + $0x588] ss:$16 sps:$4 sm:$0xff]  }
 0x236   : > { %3805 = vmatprep.subr.bf16.mxu1 %v7684_v47  ;;  %4770 = vmatprep.subr.bf16.mxu0 %v7687_v24  ;;  %v7696_v47 = vld [vmem:[%s11078_s3 + $0x5a4] ss:$16 sps:$4 sm:$0xff]   ;;  %v7699_v24 = vld [vmem:[%s11078_s3 + $0x5ac] ss:$16 sps:$4 sm:$0xff]  }
 0x239   : > { %3806 = vmatpush1.bf16.msra.mxu1 %v7682_v52  ;;  %4771 = vmatpush1.bf16.msra.mxu0 %v7685_v17  ;;  %v11600_v52 = vld [vmem:[#allocation40_spill] sm:$0xff] }
 0x23a   : > { %3807 = vmatprep.subr.bf16.mxu1 %v7690_v26  ;;  %4772 = vmatprep.subr.bf16.mxu0 %v7693_v36  ;;  %v7694_v36 = vld [vmem:[%s11078_s3 + $0x5a0] ss:$16 sps:$4 sm:$0xff]   ;;  %v7697_v17 = vld [vmem:[%s11078_s3 + $0x5a8] ss:$16 sps:$4 sm:$0xff]   ;;  %v7702_v26 = vld [vmem:[%s11078_s3 + $0x5c4] ss:$16 sps:$4 sm:$0xff]  }
 0x23b   : > { %3683 = vmatmul.mubr.bf16.gmra.mrb[24].mxu1 %v11600_v52  ;;  %4648 = vmatmul.mubr.bf16.gmra.mrb[56].mxu0 %v11600_v52 }
 0x23c   : > { %3692 = vmatprep.mubr.bf16.mxu1 %v11565_v51  ;;  %4657 = vmatprep.mubr.bf16.mxu0 %v11565_v51  ;;  %v7705_v51 = vld [vmem:[%s11078_s3 + $0x5cc] ss:$16 sps:$4 sm:$0xff]  }
 0x23d   : > { %3808 = vmatpush1.bf16.msra.mxu1 %v7688_v22  ;;  %4773 = vmatpush1.bf16.msra.mxu0 %v7691_v16  ;;  %v7700_v22 = vld [vmem:[%s11078_s3 + $0x5c0] ss:$16 sps:$4 sm:$0xff]   ;;  %v7703_v16 = vld [vmem:[%s11078_s3 + $0x5c8] ss:$16 sps:$4 sm:$0xff]  }
 0x23e   : > { %3809 = vmatprep.subr.bf16.mxu1 %v7696_v47  ;;  %4774 = vmatprep.subr.bf16.mxu0 %v7699_v24  ;;  %v7708_v47 = vld [vmem:[%s11078_s3 + $0x5e4] ss:$16 sps:$4 sm:$0xff]   ;;  %v7711_v24 = vld [vmem:[%s11078_s3 + $0x5ec] ss:$16 sps:$4 sm:$0xff]  }
 0x241   : > { %3810 = vmatpush1.bf16.msra.mxu1 %v7694_v36  ;;  %4775 = vmatpush1.bf16.msra.mxu0 %v7697_v17  ;;  %v11601_v36 = vld [vmem:[#allocation45_spill] sm:$0xff]  ;;  %v7709_v17 = vld [vmem:[%s11078_s3 + $0x5e8] ss:$16 sps:$4 sm:$0xff]  }
 0x242   : > { %3811 = vmatprep.subr.bf16.mxu1 %v7702_v26  ;;  %4776 = vmatprep.subr.bf16.mxu0 %v7705_v51  ;;  %v7706_v51 = vld [vmem:[%s11078_s3 + $0x5e0] ss:$16 sps:$4 sm:$0xff]   ;;  %v7714_v26 = vld [vmem:[%s11078_s3 + $0x604] ss:$16 sps:$4 sm:$0xff]  }
 0x243   : > { %3693 = vmatmul.mubr.bf16.gmra.mrb[28].mxu1 %v11601_v36  ;;  %4658 = vmatmul.mubr.bf16.gmra.mrb[60].mxu0 %v11601_v36 }
 0x244   : > { %3702 = vmatprep.mubr.bf16.mxu1 %v11572_v19  ;;  %4667 = vmatprep.mubr.bf16.mxu0 %v11572_v19  ;;  %v7717_v19 = vld [vmem:[%s11078_s3 + $0x60c] ss:$16 sps:$4 sm:$0xff]  }
 0x245   : > { %3812 = vmatpush1.bf16.msra.mxu1 %v7700_v22  ;;  %4777 = vmatpush1.bf16.msra.mxu0 %v7703_v16  ;;  %v11602_v22 = vld [vmem:[#allocation18_spill] sm:$0xff] }
 0x246   : > { %3813 = vmatprep.subr.bf16.mxu1 %v7708_v47  ;;  %4778 = vmatprep.subr.bf16.mxu0 %v7711_v24  ;;  %v11603_v16 = vld [vmem:[#allocation26_spill] sm:$0xff]  ;;  %v7712_v24 = vld [vmem:[%s11078_s3 + $0x600] ss:$16 sps:$4 sm:$0xff]  }
 0x247   : > { %v11604_v47 = vld [vmem:[#allocation46_spill] sm:$0xff] }
 0x249   : > { %3814 = vmatpush1.bf16.msra.mxu1 %v7706_v51  ;;  %4779 = vmatpush1.bf16.msra.mxu0 %v7709_v17  ;;  %v7715_v51 = vld [vmem:[%s11078_s3 + $0x608] ss:$16 sps:$4 sm:$0xff]   ;;  %v7720_v17 = vld [vmem:[%s11078_s3 + $0x624] ss:$16 sps:$4 sm:$0xff]  }
 0x24a   : > { %3976 = vmatprep.subr.bf16.mxu1 %v7714_v26  ;;  %4941 = vmatprep.subr.bf16.mxu0 %v7717_v19  ;;  %v11605_v19 = vld [vmem:[#allocation48_spill] sm:$0xff]  ;;  %v7723_v26 = vld [vmem:[%s11078_s3 + $0x62c] ss:$16 sps:$4 sm:$0xff]  }
 0x24b   : > { %3703 = vmatmul.mubr.bf16.gmra.mrb[32].mxu1 %v11602_v22  ;;  %4668 = vmatmul.mubr.bf16.gmra.mrb[64].mxu0 %v11602_v22 }
 0x24c   : > { %3712 = vmatprep.mubr.bf16.mxu1 %v9309_v37  ;;  %4677 = vmatprep.mubr.bf16.mxu0 %v9309_v37 }
 0x253   : > { %3713 = vmatmul.mubr.bf16.gmra.mrb[36].mxu1 %v11603_v16  ;;  %4678 = vmatmul.mubr.bf16.gmra.mrb[68].mxu0 %v11603_v16 }
 0x254   : > { %3722 = vmatprep.mubr.bf16.mxu1 %v9328_v48  ;;  %4687 = vmatprep.mubr.bf16.mxu0 %v9328_v48 }
 0x25b   : > { %3723 = vmatmul.mubr.bf16.gmra.mrb[40].mxu1 %v11604_v47  ;;  %4688 = vmatmul.mubr.bf16.gmra.mrb[72].mxu0 %v11604_v47 }
 0x25c   : > { %3732 = vmatprep.mubr.bf16.mxu1 %v9443_v33  ;;  %4697 = vmatprep.mubr.bf16.mxu0 %v9443_v33 }
 0x263   : > { %3733 = vmatmul.mubr.bf16.gmra.mrb[44].mxu1 %v9445_v61  ;;  %4698 = vmatmul.mubr.bf16.gmra.mrb[76].mxu0 %v9445_v61 }
 0x264   : > { %3742 = vmatprep.mubr.bf16.mxu1 %v9474_v3  ;;  %4707 = vmatprep.mubr.bf16.mxu0 %v9474_v3 }
 0x26b   : > { %3743 = vmatmul.mubr.bf16.gmra.mrb[48].mxu1 %v9476_v42  ;;  %4708 = vmatmul.mubr.bf16.gmra.mrb[80].mxu0 %v9476_v42 }
 0x26c   : > { %3752 = vmatprep.mubr.bf16.mxu1 %v9509_v49  ;;  %4717 = vmatprep.mubr.bf16.mxu0 %v9509_v49 }
 0x273   : > { %3753 = vmatmul.mubr.bf16.gmra.mrb[52].mxu1 %v11605_v19  ;;  %4718 = vmatmul.mubr.bf16.gmra.mrb[84].mxu0 %v11605_v19 }
 0x274   : > { %3762 = vmatprep.mubr.bf16.mxu1 %v9537_v15  ;;  %4727 = vmatprep.mubr.bf16.mxu0 %v9537_v15  ;;  %v7726_v15 = vld [vmem:[%s11078_s3 + $0x644] ss:$16 sps:$4 sm:$0xff]  }
 0x27b   : > { %3763 = vmatmul.mubr.bf16.gmra.mrb[56].mxu1 %v9539_v59  ;;  %4728 = vmatmul.mubr.bf16.gmra.mrb[88].mxu0 %v9539_v59 }
 0x27c   : > { %3772 = vmatprep.mubr.bf16.mxu1 %v9566_v30  ;;  %4737 = vmatprep.mubr.bf16.mxu0 %v9566_v30  ;;  %v7721_v30 = vld [vmem:[%s11078_s3 + $0x628] ss:$16 sps:$4 sm:$0xff]  }
 0x283   : > { %3773 = vmatmul.mubr.bf16.gmra.mrb[60].mxu1 %v9585_v32  ;;  %4738 = vmatmul.mubr.bf16.gmra.mrb[92].mxu0 %v9585_v32 }
 0x284   : > { %3815 = vmatprep.mubr.bf16.mxu1 %v11595_v18  ;;  %4780 = vmatprep.mubr.bf16.mxu0 %v11595_v18  ;;  %v7718_v18 = vld [vmem:[%s11078_s3 + $0x620] ss:$16 sps:$4 sm:$0xff]  }
 0x28b   : > { %6385 = vmatmul.mubr.msk.bf16.vlgmr.msra.gmra.mrb[0].mxu1 %vm9581_vm13, %v11523_v5  ;;  %6529 = vmatmul.mubr.msk.bf16.vlgmr.msra.gmra.mrb[32].mxu0 %vm9581_vm13, %v11523_v5 }
 0x28c   : > { %3977 = vmatpush1.bf16.msra.mxu1 %v7712_v24  ;;  %3825 = vmatprep.mubr.bf16.mxu1 %v11596_v56  ;;  %v7729_v24 = vld [vmem:[%s11078_s3 + $0x64c] ss:$16 sps:$4 sm:$0xff]  }
 0x28d   : > { %4790 = vmatprep.mubr.bf16.mxu0 %v11596_v56  ;;  %4942 = vmatpush1.bf16.msra.mxu0 %v7715_v51  ;;  %v7724_v51 = vld [vmem:[%s11078_s3 + $0x640] ss:$16 sps:$4 sm:$0xff]   ;;  %v7727_v56 = vld [vmem:[%s11078_s3 + $0x648] ss:$16 sps:$4 sm:$0xff]  }
 0x28e   : > { %3978 = vmatprep.subr.bf16.mxu1 %v7720_v17  ;;  %4943 = vmatprep.subr.bf16.mxu0 %v7723_v26  ;;  %v7732_v17 = vld [vmem:[%s11078_s3 + $0x664] ss:$16 sps:$4 sm:$0xff]   ;;  %v7735_v26 = vld [vmem:[%s11078_s3 + $0x66c] ss:$16 sps:$4 sm:$0xff]  }
 0x290   : > { %3979 = vmatpush1.bf16.msra.mxu1 %v7718_v18  ;;  %v7738_v18 = vld [vmem:[%s11078_s3 + $0x684] ss:$16 sps:$4 sm:$0xff]  }
 0x291   : > { %4944 = vmatpush1.bf16.msra.mxu0 %v7721_v30  ;;  %3980 = vmatprep.subr.bf16.mxu1 %v7726_v15  ;;  %v7730_v15 = vld [vmem:[%s11078_s3 + $0x660] ss:$16 sps:$4 sm:$0xff]   ;;  %v7733_v30 = vld [vmem:[%s11078_s3 + $0x668] ss:$16 sps:$4 sm:$0xff]  }
 0x292   : > { %4945 = vmatprep.subr.bf16.mxu0 %v7729_v24  ;;  %v7741_v24 = vld [vmem:[%s11078_s3 + $0x68c] ss:$16 sps:$4 sm:$0xff]  }
 0x293   : > { %6388 = vmatmul.mubr.msk.bf16.gmra.mrb[4].mxu1 %vm9626_vm6, %v11528_v23  ;;  %6532 = vmatmul.mubr.msk.bf16.gmra.mrb[36].mxu0 %vm9626_vm6, %v11528_v23 }
 0x294   : > { %3835 = vmatprep.mubr.bf16.mxu1 %v11597_v10  ;;  %4800 = vmatprep.mubr.bf16.mxu0 %v11597_v10 }
 0x295   : > { %3981 = vmatpush1.bf16.msra.mxu1 %v7724_v51  ;;  %4946 = vmatpush1.bf16.msra.mxu0 %v7727_v56  ;;  %v7736_v56 = vld [vmem:[%s11078_s3 + $0x680] ss:$16 sps:$4 sm:$0xff]   ;;  %v7739_v51 = vld [vmem:[%s11078_s3 + $0x688] ss:$16 sps:$4 sm:$0xff]  }
 0x296   : > { %3982 = vmatprep.subr.bf16.mxu1 %v7732_v17  ;;  %4947 = vmatprep.subr.bf16.mxu0 %v7735_v26  ;;  %v7744_v17 = vld [vmem:[%s11078_s3 + $0x6a4] ss:$16 sps:$4 sm:$0xff]   ;;  %v7747_v26 = vld [vmem:[%s11078_s3 + $0x6ac] ss:$16 sps:$4 sm:$0xff]  }
 0x299   : > { %3983 = vmatpush1.bf16.msra.mxu1 %v7730_v15  ;;  %4948 = vmatpush1.bf16.msra.mxu0 %v7733_v30  ;;  %v7742_v15 = vld [vmem:[%s11078_s3 + $0x6a0] ss:$16 sps:$4 sm:$0xff]   ;;  %v7745_v30 = vld [vmem:[%s11078_s3 + $0x6a8] ss:$16 sps:$4 sm:$0xff]  }
 0x29a   : > { %3984 = vmatprep.subr.bf16.mxu1 %v7738_v18  ;;  %4949 = vmatprep.subr.bf16.mxu0 %v7741_v24  ;;  %v7750_v18 = vld [vmem:[%s11078_s3 + $0x6c4] ss:$16 sps:$4 sm:$0xff]   ;;  %v7753_v24 = vld [vmem:[%s11078_s3 + $0x6cc] ss:$16 sps:$4 sm:$0xff]  }
 0x29b   : > { %6391 = vmatmul.mubr.msk.bf16.gmra.mrb[8].mxu1 %vm9666_vm14, %v8817_v12  ;;  %6535 = vmatmul.mubr.msk.bf16.gmra.mrb[40].mxu0 %vm9666_vm14, %v8817_v12 }
 0x29c   : > { %3845 = vmatprep.mubr.bf16.mxu1 %v11598_v8  ;;  %4810 = vmatprep.mubr.bf16.mxu0 %v11598_v8 }
 0x29d   : > { %3985 = vmatpush1.bf16.msra.mxu1 %v7736_v56  ;;  %4950 = vmatpush1.bf16.msra.mxu0 %v7739_v51  ;;  %v7748_v56 = vld [vmem:[%s11078_s3 + $0x6c0] ss:$16 sps:$4 sm:$0xff]   ;;  %v7751_v51 = vld [vmem:[%s11078_s3 + $0x6c8] ss:$16 sps:$4 sm:$0xff]  }
 0x29e   : > { %3986 = vmatprep.subr.bf16.mxu1 %v7744_v17  ;;  %4951 = vmatprep.subr.bf16.mxu0 %v7747_v26  ;;  %v7756_v17 = vld [vmem:[%s11078_s3 + $0x6e4] ss:$16 sps:$4 sm:$0xff]   ;;  %v7759_v26 = vld [vmem:[%s11078_s3 + $0x6ec] ss:$16 sps:$4 sm:$0xff]  }
 0x2a1   : > { %3987 = vmatpush1.bf16.msra.mxu1 %v7742_v15  ;;  %4952 = vmatpush1.bf16.msra.mxu0 %v7745_v30  ;;  %v7754_v15 = vld [vmem:[%s11078_s3 + $0x6e0] ss:$16 sps:$4 sm:$0xff]   ;;  %v7757_v30 = vld [vmem:[%s11078_s3 + $0x6e8] ss:$16 sps:$4 sm:$0xff]  }
 0x2a2   : > { %3988 = vmatprep.subr.bf16.mxu1 %v7750_v18  ;;  %4953 = vmatprep.subr.bf16.mxu0 %v7753_v24  ;;  %v7762_v18 = vld [vmem:[%s11078_s3 + $0x704] ss:$16 sps:$4 sm:$0xff]   ;;  %v7765_v24 = vld [vmem:[%s11078_s3 + $0x70c] ss:$16 sps:$4 sm:$0xff]  }
 0x2a3   : > { %6394 = vmatmul.mubr.msk.bf16.gmra.mrb[12].mxu1 %vm9706_vm7, %v8871_v28  ;;  %6538 = vmatmul.mubr.msk.bf16.gmra.mrb[44].mxu0 %vm9706_vm7, %v8871_v28 }
 0x2a4   : > { %3855 = vmatprep.mubr.bf16.mxu1 %v11599_v41  ;;  %4820 = vmatprep.mubr.bf16.mxu0 %v11599_v41 }
 0x2a5   : > { %3989 = vmatpush1.bf16.msra.mxu1 %v7748_v56  ;;  %4954 = vmatpush1.bf16.msra.mxu0 %v7751_v51  ;;  %v7760_v56 = vld [vmem:[%s11078_s3 + $0x700] ss:$16 sps:$4 sm:$0xff]   ;;  %v7763_v51 = vld [vmem:[%s11078_s3 + $0x708] ss:$16 sps:$4 sm:$0xff]  }
 0x2a6   : > { %3990 = vmatprep.subr.bf16.mxu1 %v7756_v17  ;;  %4955 = vmatprep.subr.bf16.mxu0 %v7759_v26  ;;  %v7768_v17 = vld [vmem:[%s11078_s3 + $0x724] ss:$16 sps:$4 sm:$0xff]   ;;  %v7771_v26 = vld [vmem:[%s11078_s3 + $0x72c] ss:$16 sps:$4 sm:$0xff]  }
 0x2a9   : > { %3991 = vmatpush1.bf16.msra.mxu1 %v7754_v15  ;;  %4956 = vmatpush1.bf16.msra.mxu0 %v7757_v30  ;;  %v7766_v15 = vld [vmem:[%s11078_s3 + $0x720] ss:$16 sps:$4 sm:$0xff]   ;;  %v7769_v30 = vld [vmem:[%s11078_s3 + $0x728] ss:$16 sps:$4 sm:$0xff]  }
 0x2aa   : > { %3992 = vmatprep.subr.bf16.mxu1 %v7762_v18  ;;  %4957 = vmatprep.subr.bf16.mxu0 %v7765_v24  ;;  %v7774_v18 = vld [vmem:[%s11078_s3 + $0x744] ss:$16 sps:$4 sm:$0xff]   ;;  %v7777_v24 = vld [vmem:[%s11078_s3 + $0x74c] ss:$16 sps:$4 sm:$0xff]  }
 0x2ab   : > { %6397 = vmatmul.mubr.msk.bf16.gmra.mrb[16].mxu1 %vm9746_vm11, %v8937_v54  ;;  %6541 = vmatmul.mubr.msk.bf16.gmra.mrb[48].mxu0 %vm9746_vm11, %v8937_v54 }
 0x2ac   : > { %3865 = vmatprep.mubr.bf16.mxu1 %v11600_v52  ;;  %4830 = vmatprep.mubr.bf16.mxu0 %v11600_v52 }
 0x2ad   : > { %3993 = vmatpush1.bf16.msra.mxu1 %v7760_v56  ;;  %4958 = vmatpush1.bf16.msra.mxu0 %v7763_v51  ;;  %v7772_v56 = vld [vmem:[%s11078_s3 + $0x740] ss:$16 sps:$4 sm:$0xff]   ;;  %v7775_v51 = vld [vmem:[%s11078_s3 + $0x748] ss:$16 sps:$4 sm:$0xff]  }
 0x2ae   : > { %3994 = vmatprep.subr.bf16.mxu1 %v7768_v17  ;;  %4959 = vmatprep.subr.bf16.mxu0 %v7771_v26  ;;  %v7780_v17 = vld [vmem:[%s11078_s3 + $0x764] ss:$16 sps:$4 sm:$0xff]   ;;  %v7783_v26 = vld [vmem:[%s11078_s3 + $0x76c] ss:$16 sps:$4 sm:$0xff]  }
 0x2b1   : > { %3995 = vmatpush1.bf16.msra.mxu1 %v7766_v15  ;;  %4960 = vmatpush1.bf16.msra.mxu0 %v7769_v30  ;;  %v7778_v15 = vld [vmem:[%s11078_s3 + $0x760] ss:$16 sps:$4 sm:$0xff]   ;;  %v7781_v30 = vld [vmem:[%s11078_s3 + $0x768] ss:$16 sps:$4 sm:$0xff]  }
 0x2b2   : > { %3996 = vmatprep.subr.bf16.mxu1 %v7774_v18  ;;  %4961 = vmatprep.subr.bf16.mxu0 %v7777_v24  ;;  %v7786_v18 = vld [vmem:[%s11078_s3 + $0x784] ss:$16 sps:$4 sm:$0xff]   ;;  %v7789_v24 = vld [vmem:[%s11078_s3 + $0x78c] ss:$16 sps:$4 sm:$0xff]  }
 0x2b3   : > { %6400 = vmatmul.mubr.msk.bf16.gmra.mrb[20].mxu1 %vm9786_vm12, %v9002_v38  ;;  %6544 = vmatmul.mubr.msk.bf16.gmra.mrb[52].mxu0 %vm9786_vm12, %v9002_v38 }
 0x2b4   : > { %3875 = vmatprep.mubr.bf16.mxu1 %v11601_v36  ;;  %4840 = vmatprep.mubr.bf16.mxu0 %v11601_v36 }
 0x2b5   : > { %3997 = vmatpush1.bf16.msra.mxu1 %v7772_v56  ;;  %4962 = vmatpush1.bf16.msra.mxu0 %v7775_v51  ;;  %v7784_v56 = vld [vmem:[%s11078_s3 + $0x780] ss:$16 sps:$4 sm:$0xff]   ;;  %v7787_v51 = vld [vmem:[%s11078_s3 + $0x788] ss:$16 sps:$4 sm:$0xff]  }
 0x2b6   : > { %3998 = vmatprep.subr.bf16.mxu1 %v7780_v17  ;;  %4963 = vmatprep.subr.bf16.mxu0 %v7783_v26  ;;  %v7792_v17 = vld [vmem:[%s11078_s3 + $0x7a4] ss:$16 sps:$4 sm:$0xff]   ;;  %v7795_v26 = vld [vmem:[%s11078_s3 + $0x7ac] ss:$16 sps:$4 sm:$0xff]  }
 0x2b9   : > { %3999 = vmatpush1.bf16.msra.mxu1 %v7778_v15  ;;  %4964 = vmatpush1.bf16.msra.mxu0 %v7781_v30  ;;  %v7790_v15 = vld [vmem:[%s11078_s3 + $0x7a0] ss:$16 sps:$4 sm:$0xff]   ;;  %v7793_v30 = vld [vmem:[%s11078_s3 + $0x7a8] ss:$16 sps:$4 sm:$0xff]  }
 0x2ba   : > { %4000 = vmatprep.subr.bf16.mxu1 %v7786_v18  ;;  %4965 = vmatprep.subr.bf16.mxu0 %v7789_v24  ;;  %v7798_v18 = vld [vmem:[%s11078_s3 + $0x7c4] ss:$16 sps:$4 sm:$0xff]   ;;  %v7801_v24 = vld [vmem:[%s11078_s3 + $0x7cc] ss:$16 sps:$4 sm:$0xff]  }
 0x2bb   : > { %6403 = vmatmul.mubr.msk.bf16.gmra.mrb[24].mxu1 %vm9826_vm4, %v9083_v53  ;;  %6547 = vmatmul.mubr.msk.bf16.gmra.mrb[56].mxu0 %vm9826_vm4, %v9083_v53 }
 0x2bc   : > { %3885 = vmatprep.mubr.bf16.mxu1 %v11602_v22  ;;  %4850 = vmatprep.mubr.bf16.mxu0 %v11602_v22 }
 0x2bd   : > { %4001 = vmatpush1.bf16.msra.mxu1 %v7784_v56  ;;  %4966 = vmatpush1.bf16.msra.mxu0 %v7787_v51  ;;  %v7796_v56 = vld [vmem:[%s11078_s3 + $0x7c0] ss:$16 sps:$4 sm:$0xff]   ;;  %v7799_v51 = vld [vmem:[%s11078_s3 + $0x7c8] ss:$16 sps:$4 sm:$0xff]  }
 0x2be   : > { %4002 = vmatprep.subr.bf16.mxu1 %v7792_v17  ;;  %4967 = vmatprep.subr.bf16.mxu0 %v7795_v26  ;;  %v7804_v17 = vld [vmem:[%s11078_s3 + $0x7e4] ss:$16 sps:$4 sm:$0xff]   ;;  %v7807_v26 = vld [vmem:[%s11078_s3 + $0x7ec] ss:$16 sps:$4 sm:$0xff]  }
 0x2c1   : > { %4003 = vmatpush1.bf16.msra.mxu1 %v7790_v15  ;;  %4968 = vmatpush1.bf16.msra.mxu0 %v7793_v30  ;;  %v7802_v15 = vld [vmem:[%s11078_s3 + $0x7e0] ss:$16 sps:$4 sm:$0xff]   ;;  %v7805_v30 = vld [vmem:[%s11078_s3 + $0x7e8] ss:$16 sps:$4 sm:$0xff]  }
 0x2c2   : > { %4004 = vmatprep.subr.bf16.mxu1 %v7798_v18  ;;  %4969 = vmatprep.subr.bf16.mxu0 %v7801_v24  ;;  %v7810_v18 = vld [vmem:[%s11078_s3 + $0x804] ss:$16 sps:$4 sm:$0xff]   ;;  %v7813_v24 = vld [vmem:[%s11078_s3 + $0x80c] ss:$16 sps:$4 sm:$0xff]  }
 0x2c3   : > { %6406 = vmatmul.mubr.msk.bf16.gmra.mrb[28].mxu1 %vm9866_vm8, %v11558_v0  ;;  %6550 = vmatmul.mubr.msk.bf16.gmra.mrb[60].mxu0 %vm9866_vm8, %v11558_v0 }
 0x2c4   : > { %3895 = vmatprep.mubr.bf16.mxu1 %v11603_v16  ;;  %4860 = vmatprep.mubr.bf16.mxu0 %v11603_v16 }
 0x2c5   : > { %4005 = vmatpush1.bf16.msra.mxu1 %v7796_v56  ;;  %4970 = vmatpush1.bf16.msra.mxu0 %v7799_v51  ;;  %v7808_v56 = vld [vmem:[%s11078_s3 + $0x800] ss:$16 sps:$4 sm:$0xff]   ;;  %v7811_v51 = vld [vmem:[%s11078_s3 + $0x808] ss:$16 sps:$4 sm:$0xff]  }
 0x2c6   : > { %4006 = vmatprep.subr.bf16.mxu1 %v7804_v17  ;;  %4971 = vmatprep.subr.bf16.mxu0 %v7807_v26  ;;  %v7816_v17 = vld [vmem:[%s11078_s3 + $0x824] ss:$16 sps:$4 sm:$0xff]   ;;  %v7819_v26 = vld [vmem:[%s11078_s3 + $0x82c] ss:$16 sps:$4 sm:$0xff]  }
 0x2c9   : > { %4007 = vmatpush1.bf16.msra.mxu1 %v7802_v15  ;;  %4972 = vmatpush1.bf16.msra.mxu0 %v7805_v30  ;;  %v7825_v15 = vld [vmem:[%s11078_s3 + $0x84c] ss:$16 sps:$4 sm:$0xff]   ;;  %v7828_v30 = vld [vmem:[%s11078_s3 + $0x864] ss:$16 sps:$4 sm:$0xff]  }
 0x2ca   : > { %4169 = vmatprep.subr.bf16.mxu1 %v7810_v18  ;;  %5134 = vmatprep.subr.bf16.mxu0 %v7813_v24  ;;  %v7831_v18 = vld [vmem:[%s11078_s3 + $0x86c] ss:$16 sps:$4 sm:$0xff]   ;;  %v7826_v24 = vld [vmem:[%s11078_s3 + $0x860] ss:$16 sps:$4 sm:$0xff]  }
 0x2cb   : > { %6409 = vmatmul.mubr.msk.bf16.gmra.mrb[32].mxu1 %vm11606_vm5, %v11566_v34  ;;  %6553 = vmatmul.mubr.msk.bf16.gmra.mrb[64].mxu0 %vm11606_vm5, %v11566_v34 }
 0x2cc   : > { %3905 = vmatprep.mubr.bf16.mxu1 %v11604_v47  ;;  %4870 = vmatprep.mubr.bf16.mxu0 %v11604_v47 }
 0x2d3   : > { %6412 = vmatmul.mubr.msk.bf16.gmra.mrb[36].mxu1 %vm9922_vm1, %v11573_v57  ;;  %6556 = vmatmul.mubr.msk.bf16.gmra.mrb[68].mxu0 %vm9922_vm1, %v11573_v57 }
 0x2d4   : > { %3915 = vmatprep.mubr.bf16.mxu1 %v9445_v61  ;;  %4880 = vmatprep.mubr.bf16.mxu0 %v9445_v61 }
 0x2db   : > { %6415 = vmatmul.mubr.msk.bf16.gmra.mrb[40].mxu1 %vm11607_vm3, %v9336_v13  ;;  %6559 = vmatmul.mubr.msk.bf16.gmra.mrb[72].mxu0 %vm11607_vm3, %v9336_v13 }
 0x2dc   : > { %3925 = vmatprep.mubr.bf16.mxu1 %v9476_v42  ;;  %4890 = vmatprep.mubr.bf16.mxu0 %v9476_v42 }
 0x2e3   : > { %6418 = vmatmul.mubr.msk.bf16.gmra.mrb[44].mxu1 %vm11608_vm15, %v9398_v14  ;;  %6562 = vmatmul.mubr.msk.bf16.gmra.mrb[76].mxu0 %vm11608_vm15, %v9398_v14 }
 0x2e4   : > { %3935 = vmatprep.mubr.bf16.mxu1 %v11605_v19  ;;  %4900 = vmatprep.mubr.bf16.mxu0 %v11605_v19 }
 0x2eb   : > { %6421 = vmatmul.mubr.msk.bf16.gmra.mrb[48].mxu1 %vm9970_vm0, %v11588_v35  ;;  %6565 = vmatmul.mubr.msk.bf16.gmra.mrb[80].mxu0 %vm9970_vm0, %v11588_v35 }
 0x2ec   : > { %3945 = vmatprep.mubr.bf16.mxu1 %v9539_v59  ;;  %4910 = vmatprep.mubr.bf16.mxu0 %v9539_v59 }
 0x2f3   : > { %6424 = vmatmul.mubr.msk.bf16.gmra.mrb[52].mxu1 %vm9986_vm2, %v9451_v39  ;;  %6568 = vmatmul.mubr.msk.bf16.gmra.mrb[84].mxu0 %vm9986_vm2, %v9451_v39 }
 0x2f4   : > { %3955 = vmatprep.mubr.bf16.mxu1 %v9585_v32  ;;  %4920 = vmatprep.mubr.bf16.mxu0 %v9585_v32 }
 0x2fb   : > { %6427 = vmatmul.mubr.msk.bf16.gmra.mrb[56].mxu1 %vm10002_vm10, %v9523_v7  ;;  %6571 = vmatmul.mubr.msk.bf16.gmra.mrb[88].mxu0 %vm10002_vm10, %v9523_v7 }
 0x2fc   : > { %3965 = vmatprep.mubr.bf16.mxu1 %v9570_v46  ;;  %4930 = vmatprep.mubr.bf16.mxu0 %v9570_v46 }
 0x303   : > { %6430 = vmatmul.mubr.msk.bf16.gmra.mrb[60].mxu1 %vm11609_vm9, %v9572_v29  ;;  %6574 = vmatmul.mubr.msk.bf16.gmra.mrb[92].mxu0 %vm11609_vm9, %v9572_v29 }
 0x304   : > { %6433 = vmatprep.mubr.msk.bf16.mxu1 %vm9626_vm6, %v11528_v23  ;;  %6577 = vmatprep.mubr.msk.bf16.mxu0 %vm9626_vm6, %v11528_v23  ;;  %v7817_v23 = vld [vmem:[%s11078_s3 + $0x828] ss:$16 sps:$4 sm:$0xff]  }
 0x30b   : > { %4009 = vmatmul.mubr.bf16.vlgmr.msra.gmra.mrb[0].mxu1 %v8791_v2  ;;  %4974 = vmatmul.mubr.bf16.vlgmr.msra.gmra.mrb[32].mxu0 %v8791_v2  ;;  %v7822_v2 = vld [vmem:[%s11078_s3 + $0x844] ss:$16 sps:$4 sm:$0xff]  }
 0x30c   : > { %4170 = vmatpush1.bf16.msra.mxu1 %v7808_v56  ;;  %6436 = vmatprep.mubr.msk.bf16.mxu1 %vm9666_vm14, %v8817_v12  ;;  %v7829_v56 = vld [vmem:[%s11078_s3 + $0x868] ss:$16 sps:$4 sm:$0xff]  }
 0x30d   : > { %6580 = vmatprep.mubr.msk.bf16.mxu0 %vm9666_vm14, %v8817_v12  ;;  %5135 = vmatpush1.bf16.msra.mxu0 %v7811_v51  ;;  %v7820_v12 = vld [vmem:[%s11078_s3 + $0x840] ss:$16 sps:$4 sm:$0xff]   ;;  %v7835_v51 = vld [vmem:[%s11078_s3 + $0x888] ss:$16 sps:$4 sm:$0xff]  }
 0x30e   : > { %4171 = vmatprep.subr.bf16.mxu1 %v7816_v17  ;;  %5136 = vmatprep.subr.bf16.mxu0 %v7819_v26  ;;  %v7840_v17 = vld [vmem:[%s11078_s3 + $0x8a4] ss:$16 sps:$4 sm:$0xff]   ;;  %v7843_v26 = vld [vmem:[%s11078_s3 + $0x8ac] ss:$16 sps:$4 sm:$0xff]  }
 0x310   : > { %4172 = vmatpush1.bf16.msra.mxu1 %v7814_v63  ;;  %v7838_v63 = vld [vmem:[%s11078_s3 + $0x8a0] ss:$16 sps:$4 sm:$0xff]  }
 0x311   : > { %5137 = vmatpush1.bf16.msra.mxu0 %v7817_v23  ;;  %4173 = vmatprep.subr.bf16.mxu1 %v7822_v2  ;;  %v7841_v23 = vld [vmem:[%s11078_s3 + $0x8a8] ss:$16 sps:$4 sm:$0xff]  }
 0x312   : > { %5138 = vmatprep.subr.bf16.mxu0 %v7825_v15  ;;  %v7847_v2 = vld [vmem:[%s11078_s3 + $0x8c8] ss:$16 sps:$4 sm:$0xff]   ;;  %v7852_v15 = vld [vmem:[%s11078_s3 + $0x8e4] ss:$16 sps:$4 sm:$0xff]  }
 0x313   : > { %4019 = vmatmul.mubr.bf16.gmra.mrb[4].mxu1 %v8848_v55  ;;  %4984 = vmatmul.mubr.bf16.gmra.mrb[36].mxu0 %v8848_v55  ;;  %v7834_v55 = vld [vmem:[%s11078_s3 + $0x884] ss:$16 sps:$4 sm:$0xff]  }
 0x314   : > { %6439 = vmatprep.mubr.msk.bf16.mxu1 %vm9706_vm7, %v8871_v28  ;;  %6583 = vmatprep.mubr.msk.bf16.mxu0 %vm9706_vm7, %v8871_v28  ;;  %v7837_v28 = vld [vmem:[%s11078_s3 + $0x88c] ss:$16 sps:$4 sm:$0xff]  }
 0x315   : > { %4174 = vmatpush1.bf16.msra.mxu1 %v7820_v12  ;;  %5139 = vmatpush1.bf16.msra.mxu0 %v7823_v44  ;;  %v7855_v12 = vld [vmem:[%s11078_s3 + $0x8ec] ss:$16 sps:$4 sm:$0xff]   ;;  %v7850_v44 = vld [vmem:[%s11078_s3 + $0x8e0] ss:$16 sps:$4 sm:$0xff]  }
 0x316   : > { %4175 = vmatprep.subr.bf16.mxu1 %v7828_v30  ;;  %5140 = vmatprep.subr.bf16.mxu0 %v7831_v18  ;;  %v7853_v30 = vld [vmem:[%s11078_s3 + $0x8e8] ss:$16 sps:$4 sm:$0xff]  }
 0x319   : > { %4176 = vmatpush1.bf16.msra.mxu1 %v7826_v24  ;;  %5141 = vmatpush1.bf16.msra.mxu0 %v7829_v56  ;;  %v5460_v56 = vld [vmem:[#allocation3 + $0x28] sm:$0xff] }
 0x31a   : > { %4177 = vmatprep.subr.bf16.mxu1 %v7834_v55  ;;  %5142 = vmatprep.subr.bf16.mxu0 %v7837_v28  ;;  %v5462_v55 = vld [vmem:[#allocation3 + $0x38] sm:$0xff] }
 0x31b   : > { %4029 = vmatmul.mubr.bf16.gmra.mrb[8].mxu1 %v8931_v58  ;;  %4994 = vmatmul.mubr.bf16.gmra.mrb[40].mxu0 %v8931_v58  ;;  %v7846_v58 = vld [vmem:[%s11078_s3 + $0x8c4] ss:$16 sps:$4 sm:$0xff]  }
 0x31c   : > { %6442 = vmatprep.mubr.msk.bf16.mxu1 %vm9746_vm11, %v8937_v54  ;;  %6586 = vmatprep.mubr.msk.bf16.mxu0 %vm9746_vm11, %v8937_v54  ;;  %v7849_v54 = vld [vmem:[%s11078_s3 + $0x8cc] ss:$16 sps:$4 sm:$0xff]  }
 0x31d   : > { %4178 = vmatpush1.bf16.msra.mxu1 %v7832_v27  ;;  %5143 = vmatpush1.bf16.msra.mxu0 %v7835_v51 }
 0x31e   : > { %4179 = vmatprep.subr.bf16.mxu1 %v7840_v17  ;;  %5144 = vmatprep.subr.bf16.mxu0 %v7843_v26 }
 0x321   : > { %4180 = vmatpush1.bf16.msra.mxu1 %v7838_v63  ;;  %5145 = vmatpush1.bf16.msra.mxu0 %v7841_v23 }
 0x322   : > { %4181 = vmatprep.subr.bf16.mxu1 %v7846_v58  ;;  %5146 = vmatprep.subr.bf16.mxu0 %v7849_v54 }
 0x323   : > { %4039 = vmatmul.mubr.bf16.gmra.mrb[12].mxu1 %v8996_v1  ;;  %5004 = vmatmul.mubr.bf16.gmra.mrb[44].mxu0 %v8996_v1  ;;  %v11611_v1 = vld [vmem:[#allocation15_spill] sm:$0xff] }
 0x324   : > { %6445 = vmatprep.mubr.msk.bf16.mxu1 %vm9786_vm12, %v9002_v38  ;;  %6589 = vmatprep.mubr.msk.bf16.mxu0 %vm9786_vm12, %v9002_v38  ;;  %v11610_v38 = vld [vmem:[#allocation39_spill] sm:$0xff] }
 0x325   : > { %4182 = vmatpush1.bf16.msra.mxu1 %v7844_v4  ;;  %5147 = vmatpush1.bf16.msra.mxu0 %v7847_v2 }
 0x326   : > { %4183 = vmatprep.subr.bf16.mxu1 %v7852_v15  ;;  %5148 = vmatprep.subr.bf16.mxu0 %v7855_v12 }
 0x329   : > { %4184 = vmatpush1.bf16.msra.mxu1 %v7850_v44  ;;  %5149 = vmatpush1.bf16.msra.mxu0 %v7853_v30 }
 0x32b   : > { %4049 = vmatmul.mubr.bf16.gmra.mrb[16].mxu1 %v11550_v11  ;;  %5014 = vmatmul.mubr.bf16.gmra.mrb[48].mxu0 %v11550_v11 }
 0x32c   : > { %6448 = vmatprep.mubr.msk.bf16.mxu1 %vm9826_vm4, %v9083_v53  ;;  %6592 = vmatprep.mubr.msk.bf16.mxu0 %vm9826_vm4, %v9083_v53  ;;  %v11612_v53 = vld [vmem:[#allocation22_spill] sm:$0xff] }
 0x333   : > { %4059 = vmatmul.mubr.bf16.gmra.mrb[20].mxu1 %v11610_v38  ;;  %5024 = vmatmul.mubr.bf16.gmra.mrb[52].mxu0 %v11610_v38 }
 0x334   : > { %6451 = vmatprep.mubr.msk.bf16.mxu1 %vm9866_vm8, %v11558_v0  ;;  %6595 = vmatprep.mubr.msk.bf16.mxu0 %vm9866_vm8, %v11558_v0 }
 0x33b   : > { %4069 = vmatmul.mubr.bf16.gmra.mrb[24].mxu1 %v11611_v1  ;;  %5034 = vmatmul.mubr.bf16.gmra.mrb[56].mxu0 %v11611_v1 }
 0x33c   : > { %6454 = vmatprep.mubr.msk.bf16.mxu1 %vm11606_vm5, %v11566_v34  ;;  %6598 = vmatprep.mubr.msk.bf16.mxu0 %vm11606_vm5, %v11566_v34 }
 0x343   : > { %4079 = vmatmul.mubr.bf16.gmra.mrb[28].mxu1 %v11612_v53  ;;  %5044 = vmatmul.mubr.bf16.gmra.mrb[60].mxu0 %v11612_v53 }
 0x344   : > { %6457 = vmatprep.mubr.msk.bf16.mxu1 %vm9922_vm1, %v11573_v57  ;;  %6601 = vmatprep.mubr.msk.bf16.mxu0 %vm9922_vm1, %v11573_v57 }
 0x34b   : > { %4089 = vmatmul.mubr.bf16.gmra.mrb[32].mxu1 %v9309_v37  ;;  %5054 = vmatmul.mubr.bf16.gmra.mrb[64].mxu0 %v9309_v37  ;;  %v11613_v37 = vld [vmem:[#allocation49_spill] sm:$0xff] }
 0x34c   : > { %6460 = vmatprep.mubr.msk.bf16.mxu1 %vm11607_vm3, %v9336_v13  ;;  %6604 = vmatprep.mubr.msk.bf16.mxu0 %vm11607_vm3, %v9336_v13  ;;  %v11615_v13 = vld [vmem:[#allocation23_spill] sm:$0xff] }
 0x353   : > { %4099 = vmatmul.mubr.bf16.gmra.mrb[36].mxu1 %v9328_v48  ;;  %5064 = vmatmul.mubr.bf16.gmra.mrb[68].mxu0 %v9328_v48  ;;  %v11614_v48 = vld [vmem:[#allocation28_spill] sm:$0xff] }
 0x354   : > { %6463 = vmatprep.mubr.msk.bf16.mxu1 %vm11608_vm15, %v9398_v14  ;;  %6607 = vmatprep.mubr.msk.bf16.mxu0 %vm11608_vm15, %v9398_v14  ;;  %v7992_v14 = vmov 0  }
 0x35b   : > { %4109 = vmatmul.mubr.bf16.gmra.mrb[40].mxu1 %v9443_v33  ;;  %5074 = vmatmul.mubr.bf16.gmra.mrb[72].mxu0 %v9443_v33  ;;  %v11616_v33 = vld [vmem:[#allocation31_spill] sm:$0xff] }
 0x35c   : > { %6466 = vmatprep.mubr.msk.bf16.mxu1 %vm9970_vm0, %v11588_v35  ;;  %6610 = vmatprep.mubr.msk.bf16.mxu0 %vm9970_vm0, %v11588_v35 }
 0x363   : > { %4119 = vmatmul.mubr.bf16.gmra.mrb[44].mxu1 %v9474_v3  ;;  %5084 = vmatmul.mubr.bf16.gmra.mrb[76].mxu0 %v9474_v3 }
 0x364   : > { %6469 = vmatprep.mubr.msk.bf16.mxu1 %vm9986_vm2, %v9451_v39  ;;  %6613 = vmatprep.mubr.msk.bf16.mxu0 %vm9986_vm2, %v9451_v39  ;;  %v11618_v39 = vld [vmem:[#allocation12_spill] sm:$0xff] }
 0x365   : > { %v1939_v3 = vsub.s32 0, %v11618_v39 }
 0x36b   : > { %4129 = vmatmul.mubr.bf16.gmra.mrb[48].mxu1 %v9509_v49  ;;  %5094 = vmatmul.mubr.bf16.gmra.mrb[80].mxu0 %v9509_v49  ;;  %v1935_v49 = vld [vmem:[%s11079_s4] sm:$0xf] }
 0x36c   : > { %6472 = vmatprep.mubr.msk.bf16.mxu1 %vm10002_vm10, %v9523_v7  ;;  %6616 = vmatprep.mubr.msk.bf16.mxu0 %vm10002_vm10, %v9523_v7  ;;  %v1943_v7 = vsub.s32 1, %v11618_v39  ;;  %v10849_v45 = vrot.slane %v1935_v49, %v1939_v3 }
 0x373   : > { %4139 = vmatmul.mubr.bf16.gmra.mrb[52].mxu1 %v11613_v37  ;;  %5104 = vmatmul.mubr.bf16.gmra.mrb[84].mxu0 %v11613_v37 }
 0x374   : > { %6475 = vmatprep.mubr.msk.bf16.mxu1 %vm11609_vm9, %v9572_v29  ;;  %6619 = vmatprep.mubr.msk.bf16.mxu0 %vm11609_vm9, %v9572_v29  ;;  %v10853_v29 = vrot.slane %v1935_v49, %v1943_v7  ;;  %v5464_v7 = vld [vmem:[#allocation3 + $0x48] sm:$0xff] }
 0x37b   : > { %4149 = vmatmul.mubr.bf16.gmra.mrb[56].mxu1 %v11614_v48  ;;  %5114 = vmatmul.mubr.bf16.gmra.mrb[88].mxu0 %v11614_v48 }
 0x37c   : > { %6478 = vmatprep.mubr.msk.bf16.mxu1 %vm9581_vm13, %v11523_v5  ;;  %6622 = vmatprep.mubr.msk.bf16.mxu0 %vm9581_vm13, %v11523_v5  ;;  %vm5866_vm13 = vcmask 24576  }
 0x383   : > { %4159 = vmatmul.mubr.bf16.gmra.mrb[60].mxu1 %v11615_v13  ;;  %5124 = vmatmul.mubr.bf16.gmra.mrb[92].mxu0 %v11615_v13  ;;  %v5463_v13 = vld [vmem:[#allocation3 + $0x40] sm:$0xff] }
 0x384   : > { %4201 = vmatprep.mubr.bf16.mxu1 %v7992_v14  ;;  %5166 = vmatprep.mubr.bf16.mxu0 %v7992_v14 }
 0x38b   : > { %4202 = vmatmul.mubr.bf16.vlgmr.msra.gmra.mrb[0].mxu1 %v11616_v33  ;;  %5167 = vmatmul.mubr.bf16.vlgmr.msra.gmra.mrb[32].mxu0 %v11616_v33 }
 0x38c   : > { %4211 = vmatprep.mubr.bf16.mxu1 %v7992_v14  ;;  %5176 = vmatprep.mubr.bf16.mxu0 %v7992_v14 }
 0x393   : > { %4212 = vmatmul.mubr.bf16.gmra.mrb[4].mxu1 %v11597_v10  ;;  %5177 = vmatmul.mubr.bf16.gmra.mrb[36].mxu0 %v11597_v10 }
 0x394   : > { %4221 = vmatprep.mubr.bf16.mxu1 %v7992_v14  ;;  %5186 = vmatprep.mubr.bf16.mxu0 %v7992_v14 }
 0x39b   : > { %4222 = vmatmul.mubr.bf16.gmra.mrb[8].mxu1 %v11598_v8  ;;  %5187 = vmatmul.mubr.bf16.gmra.mrb[40].mxu0 %v11598_v8 }
 0x39c   : > { %4231 = vmatprep.mubr.bf16.mxu1 %v7992_v14  ;;  %5196 = vmatprep.mubr.bf16.mxu0 %v7992_v14 }
 0x3a3   : > { %4232 = vmatmul.mubr.bf16.gmra.mrb[12].mxu1 %v11599_v41  ;;  %5197 = vmatmul.mubr.bf16.gmra.mrb[44].mxu0 %v11599_v41  ;;  %v5456_v41 = vld [vmem:[#allocation3 + $0x8] sm:$0xff] }
 0x3a4   : > { %4241 = vmatprep.mubr.bf16.mxu1 %v7992_v14  ;;  %5206 = vmatprep.mubr.bf16.mxu0 %v7992_v14 }
 0x3ab   : > { %4242 = vmatmul.mubr.bf16.gmra.mrb[16].mxu1 %v11600_v52  ;;  %5207 = vmatmul.mubr.bf16.gmra.mrb[48].mxu0 %v11600_v52 }
 0x3ac   : > { %4251 = vmatprep.mubr.bf16.mxu1 %v7992_v14  ;;  %5216 = vmatprep.mubr.bf16.mxu0 %v7992_v14 }
 0x3b3   : > { %4252 = vmatmul.mubr.bf16.gmra.mrb[20].mxu1 %v11601_v36  ;;  %5217 = vmatmul.mubr.bf16.gmra.mrb[52].mxu0 %v11601_v36  ;;  %v5459_v36 = vld [vmem:[#allocation3 + $0x20] sm:$0xff] }
 0x3b4   : > { %4261 = vmatprep.mubr.bf16.mxu1 %v7992_v14  ;;  %5226 = vmatprep.mubr.bf16.mxu0 %v7992_v14 }
 0x3bb   : > { %4262 = vmatmul.mubr.bf16.gmra.mrb[24].mxu1 %v11602_v22  ;;  %5227 = vmatmul.mubr.bf16.gmra.mrb[56].mxu0 %v11602_v22  ;;  %v5461_v22 = vld [vmem:[#allocation3 + $0x30] sm:$0xff] }
 0x3bc   : > { %4271 = vmatprep.mubr.bf16.mxu1 %v7992_v14  ;;  %5236 = vmatprep.mubr.bf16.mxu0 %v7992_v14 }
 0x3c3   : > { %4272 = vmatmul.mubr.bf16.gmra.mrb[28].mxu1 %v11603_v16  ;;  %5237 = vmatmul.mubr.bf16.gmra.mrb[60].mxu0 %v11603_v16 }
 0x3c4   : > { %4281 = vmatprep.mubr.bf16.mxu1 %v7992_v14  ;;  %5246 = vmatprep.mubr.bf16.mxu0 %v7992_v14 }
 0x3cb   : > { %4282 = vmatmul.mubr.bf16.gmra.mrb[32].mxu1 %v11604_v47  ;;  %5247 = vmatmul.mubr.bf16.gmra.mrb[64].mxu0 %v11604_v47 }
 0x3cc   : > { %4291 = vmatprep.mubr.bf16.mxu1 %v7992_v14  ;;  %5256 = vmatprep.mubr.bf16.mxu0 %v7992_v14 }
 0x3d3   : > { %4292 = vmatmul.mubr.bf16.gmra.mrb[36].mxu1 %v9445_v61  ;;  %5257 = vmatmul.mubr.bf16.gmra.mrb[68].mxu0 %v9445_v61  ;;  %v11617_v61 = vld [vmem:[#allocation30_spill] sm:$0xff] }
 0x3d4   : > { %4301 = vmatprep.mubr.bf16.mxu1 %v7992_v14  ;;  %5266 = vmatprep.mubr.bf16.mxu0 %v7992_v14 }
 0x3db   : > { %4302 = vmatmul.mubr.bf16.gmra.mrb[40].mxu1 %v9476_v42  ;;  %5267 = vmatmul.mubr.bf16.gmra.mrb[72].mxu0 %v9476_v42  ;;  %v1947_v42 = vsub.s32 2, %v11618_v39 }
 0x3dc   : > { %4311 = vmatprep.mubr.bf16.mxu1 %v7992_v14  ;;  %5276 = vmatprep.mubr.bf16.mxu0 %v7992_v14 }
 0x3e3   : > { %4312 = vmatmul.mubr.bf16.gmra.mrb[44].mxu1 %v11605_v19  ;;  %5277 = vmatmul.mubr.bf16.gmra.mrb[76].mxu0 %v11605_v19  ;;  %v5458_v19 = vld [vmem:[#allocation3 + $0x18] sm:$0xff] }
 0x3e4   : > { %4321 = vmatprep.mubr.bf16.mxu1 %v7992_v14  ;;  %5286 = vmatprep.mubr.bf16.mxu0 %v7992_v14 }
 0x3eb   : > { %4322 = vmatmul.mubr.bf16.gmra.mrb[48].mxu1 %v9539_v59  ;;  %5287 = vmatmul.mubr.bf16.gmra.mrb[80].mxu0 %v9539_v59  ;;  %v1951_v59 = vsub.s32 3, %v11618_v39 }
 0x3ec   : > { %4331 = vmatprep.mubr.bf16.mxu1 %v7992_v14  ;;  %5296 = vmatprep.mubr.bf16.mxu0 %v7992_v14 }
 0x3ed   : > { %v10855_v50 = vrot.slane %v1935_v49, %v1951_v59  ;;  %v5466_v59 = vld [vmem:[#allocation3 + $0x58] sm:$0xff] }
 0x3f3   : > { %4332 = vmatmul.mubr.bf16.gmra.mrb[52].mxu1 %v9585_v32  ;;  %5297 = vmatmul.mubr.bf16.gmra.mrb[84].mxu0 %v9585_v32 }
 0x3f4   : > { %4341 = vmatprep.mubr.bf16.mxu1 %v7992_v14  ;;  %5306 = vmatprep.mubr.bf16.mxu0 %v7992_v14 }
 0x3fb   : > { %4342 = vmatmul.mubr.bf16.gmra.mrb[56].mxu1 %v9570_v46  ;;  %5307 = vmatmul.mubr.bf16.gmra.mrb[88].mxu0 %v9570_v46  ;;  %v10851_v46 = vrot.slane %v1935_v49, %v1947_v42 }
 0x3fc   : > { %4351 = vmatprep.mubr.bf16.mxu1 %v7992_v14  ;;  %5316 = vmatprep.mubr.bf16.mxu0 %v7992_v14  ;;  %v5465_v14 = vld [vmem:[#allocation3 + $0x50] sm:$0xff] }
 0x403   : > { %4352 = vmatmul.mubr.bf16.gmra.mrb[60].mxu1 %v11617_v61  ;;  %5317 = vmatmul.mubr.bf16.gmra.mrb[92].mxu0 %v11617_v61 }
 0x45e   : > { %v4203_v32 = vpop.f32.mrb[0].mxu1  ;;  %v5168_v5 = vpop.f32.mrb[32].mxu0 }
 0x45f   : > { %v6725_v43 = vadd.f32 %v4203_v32, %v10849_v45  ;;  %v6789_v31 = vadd.f32 %v5168_v5, %v10851_v46  ;;  %v4205_v11 = vpop.f32.mrb[1].mxu1  ;;  %v5170_v21 = vpop.f32.mrb[33].mxu0 }
 0x460   : > { %v6726_v0 = vadd.f32 %v4205_v11, %v10853_v29  ;;  %v6790_v25 = vadd.f32 %v5170_v21, %v10855_v50  ;;  %v4207_v34 = vpop.f32.mrb[2].mxu1  ;;  %v5172_v40 = vpop.f32.mrb[34].mxu0 }
 0x461   : > { %v5327_v57 = vmax.f32 %v6725_v43, 0.0  ;;  %v5329_v20 = vmax.f32 %v6789_v31, 0.0  ;;  %v6727_v35 = vadd.f32 %v4207_v34, %v10849_v45  ;;  %v6791_v6 = vadd.f32 %v5172_v40, %v10851_v46  ;;  %v4209_v60 = vpop.f32.mrb[3].mxu1  ;;  %v5174_v10 = vpop.f32.mrb[35].mxu0 }
 0x462   : > { %v5328_v8 = vmax.f32 %v6726_v0, 0.0  ;;  %v5330_v52 = vmax.f32 %v6790_v25, 0.0  ;;  %v6728_v16 = vadd.f32 %v4209_v60, %v10853_v29  ;;  %v6792_v47 = vadd.f32 %v5174_v10, %v10855_v50  ;;  %v5467_v0 = vld [vmem:[#allocation3 + $0x60] sm:$0xff]  ;;  %v5469_v25 = vld [vmem:[#allocation3 + $0x70] sm:$0xff] }
 0x463   : > { %v5331_v18 = vmax.f32 %v6727_v35, 0.0  ;;  %v5333_v24 = vmax.f32 %v6791_v6, 0.0  ;;  %v5583_v51 = vmul.f32 %v5455_v62, %v5327_v57  ;;  %v5585_v17 = vmul.f32 %v5457_v9, %v5329_v20  ;;  %v5468_v35 = vld [vmem:[#allocation3 + $0x68] sm:$0xff]  ;;  %v5470_v6 = vld [vmem:[#allocation3 + $0x78] sm:$0xff] }
 0x464   : > { %v5332_v28 = vmax.f32 %v6728_v16, 0.0  ;;  %v5334_v27 = vmax.f32 %v6792_v47, 0.0  ;;  %v5584_v23 = vmul.f32 %v5456_v41, %v5328_v8  ;;  %v5586_v58 = vmul.f32 %v5458_v19, %v5330_v52 }
 0x465   : > { %v5587_v26 = vmul.f32 %v5459_v36, %v5331_v18  ;;  %v5589_v63 = vmul.f32 %v5461_v22, %v5333_v24 }
 0x466   : > { %v5588_v54 = vmul.f32 %v5460_v56, %v5332_v28  ;;  %v5590_v4 = vmul.f32 %v5462_v55, %v5334_v27  ;;  %v4213_v2 = vpop.f32.mrb[4].mxu1  ;;  %v5178_v15 = vpop.f32.mrb[36].mxu0 }
 0x467   : > { %v5711_v12 = vadd.f32 %v5587_v26, %v5583_v51  ;;  %v5785_v44 = vadd.f32 %v5589_v63, %v5585_v17  ;;  %v6729_v30 = vadd.f32 %v4213_v2, %v10849_v45  ;;  %v6793_v38 = vadd.f32 %v5178_v15, %v10851_v46  ;;  %v4215_v1 = vpop.f32.mrb[5].mxu1  ;;  %v5180_v53 = vpop.f32.mrb[37].mxu0 }
 0x468   : > { %v5748_v37 = vadd.f32 %v5588_v54, %v5584_v23  ;;  %v5822_v48 = vadd.f32 %v5590_v4, %v5586_v58  ;;  %v6730_v33 = vadd.f32 %v4215_v1, %v10853_v29  ;;  %v6794_v61 = vadd.f32 %v5180_v53, %v10855_v50  ;;  %v4217_v39 = vpop.f32.mrb[6].mxu1  ;;  %v5182_v3 = vpop.f32.mrb[38].mxu0  ;;  %v5471_v54 = vld [vmem:[#allocation3 + $0x80] sm:$0xff]  ;;  %v5473_v4 = vld [vmem:[#allocation3 + $0x90] sm:$0xff]  ;;  %v5472_v1 = vld [vmem:[#allocation3 + $0x88] sm:$0xff] }
 0x469   : > { %v5335_v42 = vmax.f32 %v6729_v30, 0.0  ;;  %v5337_v49 = vmax.f32 %v6793_v38, 0.0  ;;  %v6731_v32 = vadd.f32 %v4217_v39, %v10849_v45  ;;  %v6795_v5 = vadd.f32 %v5182_v3, %v10851_v46  ;;  %v4219_v43 = vpop.f32.mrb[7].mxu1  ;;  %v5184_v31 = vpop.f32.mrb[39].mxu0  ;;  %v5474_v53 = vld [vmem:[#allocation3 + $0x98] sm:$0xff]  ;;  %v5475_v39 = vld [vmem:[#allocation3 + $0xa0] sm:$0xff] }
 0x46a   : > { %v5336_v11 = vmax.f32 %v6730_v33, 0.0  ;;  %v5338_v21 = vmax.f32 %v6794_v61, 0.0  ;;  %v6732_v34 = vadd.f32 %v4219_v43, %v10853_v29  ;;  %v6796_v40 = vadd.f32 %v5184_v31, %v10855_v50  ;;  %v5477_v3 = vld [vmem:[#allocation3 + $0xb0] sm:$0xff]  ;;  %v5476_v43 = vld [vmem:[#allocation3 + $0xa8] sm:$0xff]  ;;  %v5478_v31 = vld [vmem:[#allocation3 + $0xb8] sm:$0xff] }
 0x46b   : > { %v5591_v57 = vmul.f32 %v5463_v13, %v5335_v42  ;;  %v5593_v62 = vmul.f32 %v5465_v14, %v5337_v49  ;;  %v5339_v20 = vmax.f32 %v6731_v32, 0.0  ;;  %v5341_v9 = vmax.f32 %v6795_v5, 0.0 }
 0x46c   : > { %v5592_v60 = vmul.f32 %v5464_v7, %v5336_v11  ;;  %v5594_v10 = vmul.f32 %v5466_v59, %v5338_v21  ;;  %v5340_v8 = vmax.f32 %v6732_v34, 0.0  ;;  %v5342_v41 = vmax.f32 %v6796_v40, 0.0 }
 0x46d   : > { %v5712_v52 = vadd.f32 %v5711_v12, %v5591_v57  ;;  %v5786_v36 = vadd.f32 %v5785_v44, %v5593_v62  ;;  %v5595_v22 = vmul.f32 %v5467_v0, %v5339_v20  ;;  %v5597_v16 = vmul.f32 %v5469_v25, %v5341_v9 }
 0x46e   : > { %v5749_v47 = vadd.f32 %v5748_v37, %v5592_v60  ;;  %v5823_v19 = vadd.f32 %v5822_v48, %v5594_v10  ;;  %v5596_v18 = vmul.f32 %v5468_v35, %v5340_v8  ;;  %v5598_v24 = vmul.f32 %v5470_v6, %v5342_v41  ;;  %v4223_v56 = vpop.f32.mrb[8].mxu1  ;;  %v5188_v55 = vpop.f32.mrb[40].mxu0 }
 0x46f   : > { %v5713_v28 = vadd.f32 %v5712_v52, %v5595_v22  ;;  %v5787_v27 = vadd.f32 %v5786_v36, %v5597_v16  ;;  %v6733_v51 = vadd.f32 %v4223_v56, %v10849_v45  ;;  %v6797_v17 = vadd.f32 %v5188_v55, %v10851_v46  ;;  %v4225_v26 = vpop.f32.mrb[9].mxu1  ;;  %v5190_v63 = vpop.f32.mrb[41].mxu0 }
 0x470   : > { %v5750_v23 = vadd.f32 %v5749_v47, %v5596_v18  ;;  %v5824_v58 = vadd.f32 %v5823_v19, %v5598_v24  ;;  %v6734_v2 = vadd.f32 %v4225_v26, %v10853_v29  ;;  %v6798_v15 = vadd.f32 %v5190_v63, %v10855_v50  ;;  %v4227_v12 = vpop.f32.mrb[10].mxu1  ;;  %v5192_v44 = vpop.f32.mrb[42].mxu0  ;;  %v5479_v18 = vld [vmem:[#allocation3 + $0xc0] sm:$0xff]  ;;  %v5481_v24 = vld [vmem:[#allocation3 + $0xd0] sm:$0xff]  ;;  %v5480_v26 = vld [vmem:[#allocation3 + $0xc8] sm:$0xff] }
 0x471   : > { %v5343_v30 = vmax.f32 %v6733_v51, 0.0  ;;  %v5345_v38 = vmax.f32 %v6797_v17, 0.0  ;;  %v6735_v37 = vadd.f32 %v4227_v12, %v10849_v45  ;;  %v6799_v48 = vadd.f32 %v5192_v44, %v10851_v46  ;;  %v4229_v13 = vpop.f32.mrb[11].mxu1  ;;  %v5194_v14 = vpop.f32.mrb[43].mxu0  ;;  %v5482_v63 = vld [vmem:[#allocation3 + $0xd8] sm:$0xff]  ;;  %v5483_v12 = vld [vmem:[#allocation3 + $0xe0] sm:$0xff] }
 0x472   : > { %v5344_v33 = vmax.f32 %v6734_v2, 0.0  ;;  %v5346_v61 = vmax.f32 %v6798_v15, 0.0  ;;  %v6736_v42 = vadd.f32 %v4229_v13, %v10853_v29  ;;  %v6800_v49 = vadd.f32 %v5194_v14, %v10855_v50  ;;  %v5485_v44 = vld [vmem:[#allocation3 + $0xf0] sm:$0xff]  ;;  %v5484_v13 = vld [vmem:[#allocation3 + $0xe8] sm:$0xff]  ;;  %v5486_v14 = vld [vmem:[#allocation3 + $0xf8] sm:$0xff] }
 0x473   : > { %v5599_v7 = vmul.f32 %v5471_v54, %v5343_v30  ;;  %v5601_v59 = vmul.f32 %v5473_v4, %v5345_v38  ;;  %v5347_v32 = vmax.f32 %v6735_v37, 0.0  ;;  %v5349_v5 = vmax.f32 %v6799_v48, 0.0 }
 0x474   : > { %v5600_v11 = vmul.f32 %v5472_v1, %v5344_v33  ;;  %v5602_v21 = vmul.f32 %v5474_v53, %v5346_v61  ;;  %v5348_v0 = vmax.f32 %v6736_v42, 0.0  ;;  %v5350_v25 = vmax.f32 %v6800_v49, 0.0 }
 0x475   : > { %v5714_v34 = vadd.f32 %v5713_v28, %v5599_v7  ;;  %v5788_v40 = vadd.f32 %v5787_v27, %v5601_v59  ;;  %v5603_v57 = vmul.f32 %v5475_v39, %v5347_v32  ;;  %v5605_v62 = vmul.f32 %v5477_v3, %v5349_v5 }
 0x476   : > { %v5751_v20 = vadd.f32 %v5750_v23, %v5600_v11  ;;  %v5825_v9 = vadd.f32 %v5824_v58, %v5602_v21  ;;  %v5604_v35 = vmul.f32 %v5476_v43, %v5348_v0  ;;  %v5606_v6 = vmul.f32 %v5478_v31, %v5350_v25  ;;  %v4233_v60 = vpop.f32.mrb[12].mxu1  ;;  %v5198_v10 = vpop.f32.mrb[44].mxu0 }
 0x477   : > { %v5715_v8 = vadd.f32 %v5714_v34, %v5603_v57  ;;  %v5789_v41 = vadd.f32 %v5788_v40, %v5605_v62  ;;  %v6737_v52 = vadd.f32 %v4233_v60, %v10849_v45  ;;  %v6801_v36 = vadd.f32 %v5198_v10, %v10851_v46  ;;  %v4235_v22 = vpop.f32.mrb[13].mxu1  ;;  %v5200_v16 = vpop.f32.mrb[45].mxu0 }
 0x478   : > { %v5752_v47 = vadd.f32 %v5751_v20, %v5604_v35  ;;  %v5826_v19 = vadd.f32 %v5825_v9, %v5606_v6  ;;  %v6738_v56 = vadd.f32 %v4235_v22, %v10853_v29  ;;  %v6802_v55 = vadd.f32 %v5200_v16, %v10855_v50  ;;  %v4237_v28 = vpop.f32.mrb[14].mxu1  ;;  %v5202_v27 = vpop.f32.mrb[46].mxu0  ;;  %v5487_v35 = vld [vmem:[#allocation3 + $0x100] sm:$0xff]  ;;  %v5489_v6 = vld [vmem:[#allocation3 + $0x110] sm:$0xff]  ;;  %v5488_v22 = vld [vmem:[#allocation3 + $0x108] sm:$0xff] }
 0x479   : > { %v5351_v51 = vmax.f32 %v6737_v52, 0.0  ;;  %v5353_v17 = vmax.f32 %v6801_v36, 0.0  ;;  %v6739_v23 = vadd.f32 %v4237_v28, %v10849_v45  ;;  %v6803_v58 = vadd.f32 %v5202_v27, %v10851_v46  ;;  %v4239_v54 = vpop.f32.mrb[15].mxu1  ;;  %v5204_v4 = vpop.f32.mrb[47].mxu0  ;;  %v5490_v16 = vld [vmem:[#allocation3 + $0x118] sm:$0xff]  ;;  %v5491_v28 = vld [vmem:[#allocation3 + $0x120] sm:$0xff] }
 0x47a   : > { %v5352_v2 = vmax.f32 %v6738_v56, 0.0  ;;  %v5354_v15 = vmax.f32 %v6802_v55, 0.0  ;;  %v6740_v30 = vadd.f32 %v4239_v54, %v10853_v29  ;;  %v6804_v38 = vadd.f32 %v5204_v4, %v10855_v50  ;;  %v5493_v27 = vld [vmem:[#allocation3 + $0x130] sm:$0xff]  ;;  %v5492_v54 = vld [vmem:[#allocation3 + $0x128] sm:$0xff]  ;;  %v5494_v4 = vld [vmem:[#allocation3 + $0x138] sm:$0xff] }
 0x47b   : > { %v5607_v1 = vmul.f32 %v5479_v18, %v5351_v51  ;;  %v5609_v53 = vmul.f32 %v5481_v24, %v5353_v17  ;;  %v5355_v37 = vmax.f32 %v6739_v23, 0.0  ;;  %v5357_v48 = vmax.f32 %v6803_v58, 0.0 }
 0x47c   : > { %v5608_v33 = vmul.f32 %v5480_v26, %v5352_v2  ;;  %v5610_v61 = vmul.f32 %v5482_v63, %v5354_v15  ;;  %v5356_v39 = vmax.f32 %v6740_v30, 0.0  ;;  %v5358_v3 = vmax.f32 %v6804_v38, 0.0 }
 0x47d   : > { %v5716_v42 = vadd.f32 %v5715_v8, %v5607_v1  ;;  %v5790_v49 = vadd.f32 %v5789_v41, %v5609_v53  ;;  %v5611_v7 = vmul.f32 %v5483_v12, %v5355_v37  ;;  %v5613_v59 = vmul.f32 %v5485_v44, %v5357_v48 }
 0x47e   : > { %v5753_v32 = vadd.f32 %v5752_v47, %v5608_v33  ;;  %v5827_v5 = vadd.f32 %v5826_v19, %v5610_v61  ;;  %v5612_v43 = vmul.f32 %v5484_v13, %v5356_v39  ;;  %v5614_v31 = vmul.f32 %v5486_v14, %v5358_v3  ;;  %v4243_v11 = vpop.f32.mrb[16].mxu1  ;;  %v5208_v21 = vpop.f32.mrb[48].mxu0 }
 0x47f   : > { %v5717_v0 = vadd.f32 %v5716_v42, %v5611_v7  ;;  %v5791_v25 = vadd.f32 %v5790_v49, %v5613_v59  ;;  %v6741_v34 = vadd.f32 %v4243_v11, %v10849_v45  ;;  %v6805_v40 = vadd.f32 %v5208_v21, %v10851_v46  ;;  %v4245_v57 = vpop.f32.mrb[17].mxu1  ;;  %v5210_v62 = vpop.f32.mrb[49].mxu0 }
 0x480   : > { %v5754_v20 = vadd.f32 %v5753_v32, %v5612_v43  ;;  %v5828_v9 = vadd.f32 %v5827_v5, %v5614_v31  ;;  %v6742_v60 = vadd.f32 %v4245_v57, %v10853_v29  ;;  %v6806_v10 = vadd.f32 %v5210_v62, %v10855_v50  ;;  %v4247_v8 = vpop.f32.mrb[18].mxu1  ;;  %v5212_v41 = vpop.f32.mrb[50].mxu0  ;;  %v5495_v43 = vld [vmem:[#allocation3 + $0x140] sm:$0xff]  ;;  %v5497_v31 = vld [vmem:[#allocation3 + $0x150] sm:$0xff]  ;;  %v5496_v57 = vld [vmem:[#allocation3 + $0x148] sm:$0xff] }
 0x481   : > { %v5359_v52 = vmax.f32 %v6741_v34, 0.0  ;;  %v5361_v36 = vmax.f32 %v6805_v40, 0.0  ;;  %v6743_v47 = vadd.f32 %v4247_v8, %v10849_v45  ;;  %v6807_v19 = vadd.f32 %v5212_v41, %v10851_v46  ;;  %v4249_v18 = vpop.f32.mrb[19].mxu1  ;;  %v5214_v24 = vpop.f32.mrb[51].mxu0  ;;  %v5498_v62 = vld [vmem:[#allocation3 + $0x158] sm:$0xff]  ;;  %v5499_v8 = vld [vmem:[#allocation3 + $0x160] sm:$0xff] }
 0x482   : > { %v5360_v56 = vmax.f32 %v6742_v60, 0.0  ;;  %v5362_v55 = vmax.f32 %v6806_v10, 0.0  ;;  %v6744_v51 = vadd.f32 %v4249_v18, %v10853_v29  ;;  %v6808_v17 = vadd.f32 %v5214_v24, %v10855_v50  ;;  %v5501_v41 = vld [vmem:[#allocation3 + $0x170] sm:$0xff]  ;;  %v5500_v18 = vld [vmem:[#allocation3 + $0x168] sm:$0xff]  ;;  %v5502_v24 = vld [vmem:[#allocation3 + $0x178] sm:$0xff] }
 0x483   : > { %v5615_v26 = vmul.f32 %v5487_v35, %v5359_v52  ;;  %v5617_v63 = vmul.f32 %v5489_v6, %v5361_v36  ;;  %v5363_v23 = vmax.f32 %v6743_v47, 0.0  ;;  %v5365_v58 = vmax.f32 %v6807_v19, 0.0 }
 0x484   : > { %v5616_v2 = vmul.f32 %v5488_v22, %v5360_v56  ;;  %v5618_v15 = vmul.f32 %v5490_v16, %v5362_v55  ;;  %v5364_v12 = vmax.f32 %v6744_v51, 0.0  ;;  %v5366_v44 = vmax.f32 %v6808_v17, 0.0 }
 0x485   : > { %v5718_v30 = vadd.f32 %v5717_v0, %v5615_v26  ;;  %v5792_v38 = vadd.f32 %v5791_v25, %v5617_v63  ;;  %v5619_v1 = vmul.f32 %v5491_v28, %v5363_v23  ;;  %v5621_v53 = vmul.f32 %v5493_v27, %v5365_v58 }
 0x486   : > { %v5755_v37 = vadd.f32 %v5754_v20, %v5616_v2  ;;  %v5829_v48 = vadd.f32 %v5828_v9, %v5618_v15  ;;  %v5620_v13 = vmul.f32 %v5492_v54, %v5364_v12  ;;  %v5622_v14 = vmul.f32 %v5494_v4, %v5366_v44  ;;  %v4253_v33 = vpop.f32.mrb[20].mxu1  ;;  %v5218_v61 = vpop.f32.mrb[52].mxu0 }
 0x487   : > { %v5719_v39 = vadd.f32 %v5718_v30, %v5619_v1  ;;  %v5793_v3 = vadd.f32 %v5792_v38, %v5621_v53  ;;  %v6745_v42 = vadd.f32 %v4253_v33, %v10849_v45  ;;  %v6809_v49 = vadd.f32 %v5218_v61, %v10851_v46  ;;  %v4255_v7 = vpop.f32.mrb[21].mxu1  ;;  %v5220_v59 = vpop.f32.mrb[53].mxu0 }
 0x488   : > { %v5756_v32 = vadd.f32 %v5755_v37, %v5620_v13  ;;  %v5830_v5 = vadd.f32 %v5829_v48, %v5622_v14  ;;  %v6746_v11 = vadd.f32 %v4255_v7, %v10853_v29  ;;  %v6810_v21 = vadd.f32 %v5220_v59, %v10855_v50  ;;  %v4257_v0 = vpop.f32.mrb[22].mxu1  ;;  %v5222_v25 = vpop.f32.mrb[54].mxu0  ;;  %v5503_v13 = vld [vmem:[#allocation3 + $0x180] sm:$0xff]  ;;  %v5505_v14 = vld [vmem:[#allocation3 + $0x190] sm:$0xff]  ;;  %v5504_v7 = vld [vmem:[#allocation3 + $0x188] sm:$0xff] }
 0x489   : > { %v5367_v34 = vmax.f32 %v6745_v42, 0.0  ;;  %v5369_v40 = vmax.f32 %v6809_v49, 0.0  ;;  %v6747_v20 = vadd.f32 %v4257_v0, %v10849_v45  ;;  %v6811_v9 = vadd.f32 %v5222_v25, %v10851_v46  ;;  %v4259_v35 = vpop.f32.mrb[23].mxu1  ;;  %v5224_v6 = vpop.f32.mrb[55].mxu0  ;;  %v5506_v59 = vld [vmem:[#allocation3 + $0x198] sm:$0xff]  ;;  %v5507_v0 = vld [vmem:[#allocation3 + $0x1a0] sm:$0xff] }
 0x48a   : > { %v5368_v60 = vmax.f32 %v6746_v11, 0.0  ;;  %v5370_v10 = vmax.f32 %v6810_v21, 0.0  ;;  %v6748_v52 = vadd.f32 %v4259_v35, %v10853_v29  ;;  %v6812_v36 = vadd.f32 %v5224_v6, %v10855_v50  ;;  %v5509_v25 = vld [vmem:[#allocation3 + $0x1b0] sm:$0xff]  ;;  %v5508_v35 = vld [vmem:[#allocation3 + $0x1a8] sm:$0xff]  ;;  %v5510_v6 = vld [vmem:[#allocation3 + $0x1b8] sm:$0xff] }
 0x48b   : > { %v5623_v22 = vmul.f32 %v5495_v43, %v5367_v34  ;;  %v5625_v16 = vmul.f32 %v5497_v31, %v5369_v40  ;;  %v5371_v47 = vmax.f32 %v6747_v20, 0.0  ;;  %v5373_v19 = vmax.f32 %v6811_v9, 0.0 }
 0x48c   : > { %v5624_v56 = vmul.f32 %v5496_v57, %v5368_v60  ;;  %v5626_v55 = vmul.f32 %v5498_v62, %v5370_v10  ;;  %v5372_v28 = vmax.f32 %v6748_v52, 0.0  ;;  %v5374_v27 = vmax.f32 %v6812_v36, 0.0 }
 0x48d   : > { %v5720_v51 = vadd.f32 %v5719_v39, %v5623_v22  ;;  %v5794_v17 = vadd.f32 %v5793_v3, %v5625_v16  ;;  %v5627_v26 = vmul.f32 %v5499_v8, %v5371_v47  ;;  %v5629_v63 = vmul.f32 %v5501_v41, %v5373_v19 }
 0x48e   : > { %v5757_v23 = vadd.f32 %v5756_v32, %v5624_v56  ;;  %v5831_v58 = vadd.f32 %v5830_v5, %v5626_v55  ;;  %v5628_v54 = vmul.f32 %v5500_v18, %v5372_v28  ;;  %v5630_v4 = vmul.f32 %v5502_v24, %v5374_v27  ;;  %v4263_v2 = vpop.f32.mrb[24].mxu1  ;;  %v5228_v15 = vpop.f32.mrb[56].mxu0 }
 0x48f   : > { %v5721_v12 = vadd.f32 %v5720_v51, %v5627_v26  ;;  %v5795_v44 = vadd.f32 %v5794_v17, %v5629_v63  ;;  %v6749_v30 = vadd.f32 %v4263_v2, %v10849_v45  ;;  %v6813_v38 = vadd.f32 %v5228_v15, %v10851_v46  ;;  %v4265_v1 = vpop.f32.mrb[25].mxu1  ;;  %v5230_v53 = vpop.f32.mrb[57].mxu0 }
 0x490   : > { %v5758_v37 = vadd.f32 %v5757_v23, %v5628_v54  ;;  %v5832_v48 = vadd.f32 %v5831_v58, %v5630_v4  ;;  %v6750_v33 = vadd.f32 %v4265_v1, %v10853_v29  ;;  %v6814_v61 = vadd.f32 %v5230_v53, %v10855_v50  ;;  %v4267_v39 = vpop.f32.mrb[26].mxu1  ;;  %v5232_v3 = vpop.f32.mrb[58].mxu0  ;;  %v5511_v54 = vld [vmem:[#allocation3 + $0x1c0] sm:$0xff]  ;;  %v5513_v4 = vld [vmem:[#allocation3 + $0x1d0] sm:$0xff]  ;;  %v5512_v1 = vld [vmem:[#allocation3 + $0x1c8] sm:$0xff] }
 0x491   : > { %v5375_v42 = vmax.f32 %v6749_v30, 0.0  ;;  %v5377_v49 = vmax.f32 %v6813_v38, 0.0  ;;  %v6751_v32 = vadd.f32 %v4267_v39, %v10849_v45  ;;  %v6815_v5 = vadd.f32 %v5232_v3, %v10851_v46  ;;  %v4269_v43 = vpop.f32.mrb[27].mxu1  ;;  %v5234_v31 = vpop.f32.mrb[59].mxu0  ;;  %v5514_v53 = vld [vmem:[#allocation3 + $0x1d8] sm:$0xff]  ;;  %v5515_v39 = vld [vmem:[#allocation3 + $0x1e0] sm:$0xff] }
 0x492   : > { %v5376_v11 = vmax.f32 %v6750_v33, 0.0  ;;  %v5378_v21 = vmax.f32 %v6814_v61, 0.0  ;;  %v6752_v34 = vadd.f32 %v4269_v43, %v10853_v29  ;;  %v6816_v40 = vadd.f32 %v5234_v31, %v10855_v50  ;;  %v5517_v3 = vld [vmem:[#allocation3 + $0x1f0] sm:$0xff]  ;;  %v5516_v43 = vld [vmem:[#allocation3 + $0x1e8] sm:$0xff]  ;;  %v5518_v31 = vld [vmem:[#allocation3 + $0x1f8] sm:$0xff] }
 0x493   : > { %v5631_v57 = vmul.f32 %v5503_v13, %v5375_v42  ;;  %v5633_v62 = vmul.f32 %v5505_v14, %v5377_v49  ;;  %v5379_v20 = vmax.f32 %v6751_v32, 0.0  ;;  %v5381_v9 = vmax.f32 %v6815_v5, 0.0 }
 0x494   : > { %v5632_v60 = vmul.f32 %v5504_v7, %v5376_v11  ;;  %v5634_v10 = vmul.f32 %v5506_v59, %v5378_v21  ;;  %v5380_v8 = vmax.f32 %v6752_v34, 0.0  ;;  %v5382_v41 = vmax.f32 %v6816_v40, 0.0 }
 0x495   : > { %v5722_v52 = vadd.f32 %v5721_v12, %v5631_v57  ;;  %v5796_v36 = vadd.f32 %v5795_v44, %v5633_v62  ;;  %v5635_v22 = vmul.f32 %v5507_v0, %v5379_v20  ;;  %v5637_v16 = vmul.f32 %v5509_v25, %v5381_v9 }
 0x496   : > { %v5759_v47 = vadd.f32 %v5758_v37, %v5632_v60  ;;  %v5833_v19 = vadd.f32 %v5832_v48, %v5634_v10  ;;  %v5636_v18 = vmul.f32 %v5508_v35, %v5380_v8  ;;  %v5638_v24 = vmul.f32 %v5510_v6, %v5382_v41  ;;  %v4273_v56 = vpop.f32.mrb[28].mxu1  ;;  %v5238_v55 = vpop.f32.mrb[60].mxu0 }
 0x497   : > { %v5723_v28 = vadd.f32 %v5722_v52, %v5635_v22  ;;  %v5797_v27 = vadd.f32 %v5796_v36, %v5637_v16  ;;  %v6753_v51 = vadd.f32 %v4273_v56, %v10849_v45  ;;  %v6817_v17 = vadd.f32 %v5238_v55, %v10851_v46  ;;  %v4275_v26 = vpop.f32.mrb[29].mxu1  ;;  %v5240_v63 = vpop.f32.mrb[61].mxu0 }
 0x498   : > { %v5760_v23 = vadd.f32 %v5759_v47, %v5636_v18  ;;  %v5834_v58 = vadd.f32 %v5833_v19, %v5638_v24  ;;  %v6754_v2 = vadd.f32 %v4275_v26, %v10853_v29  ;;  %v6818_v15 = vadd.f32 %v5240_v63, %v10855_v50  ;;  %v4277_v12 = vpop.f32.mrb[30].mxu1  ;;  %v5242_v44 = vpop.f32.mrb[62].mxu0  ;;  %v5519_v18 = vld [vmem:[#allocation3 + $0x200] sm:$0xff]  ;;  %v5521_v24 = vld [vmem:[#allocation3 + $0x210] sm:$0xff]  ;;  %v5520_v26 = vld [vmem:[#allocation3 + $0x208] sm:$0xff] }
 0x499   : > { %v5383_v30 = vmax.f32 %v6753_v51, 0.0  ;;  %v5385_v38 = vmax.f32 %v6817_v17, 0.0  ;;  %v6755_v37 = vadd.f32 %v4277_v12, %v10849_v45  ;;  %v6819_v48 = vadd.f32 %v5242_v44, %v10851_v46  ;;  %v4279_v13 = vpop.f32.mrb[31].mxu1  ;;  %v5244_v14 = vpop.f32.mrb[63].mxu0  ;;  %v5522_v63 = vld [vmem:[#allocation3 + $0x218] sm:$0xff]  ;;  %v5523_v12 = vld [vmem:[#allocation3 + $0x220] sm:$0xff] }
 0x49a   : > { %v5384_v33 = vmax.f32 %v6754_v2, 0.0  ;;  %v5386_v61 = vmax.f32 %v6818_v15, 0.0  ;;  %v6756_v42 = vadd.f32 %v4279_v13, %v10853_v29  ;;  %v6820_v49 = vadd.f32 %v5244_v14, %v10855_v50  ;;  %v5525_v44 = vld [vmem:[#allocation3 + $0x230] sm:$0xff]  ;;  %v5524_v13 = vld [vmem:[#allocation3 + $0x228] sm:$0xff]  ;;  %v5526_v14 = vld [vmem:[#allocation3 + $0x238] sm:$0xff] }
 0x49b   : > { %v5639_v7 = vmul.f32 %v5511_v54, %v5383_v30  ;;  %v5641_v59 = vmul.f32 %v5513_v4, %v5385_v38  ;;  %v5387_v32 = vmax.f32 %v6755_v37, 0.0  ;;  %v5389_v5 = vmax.f32 %v6819_v48, 0.0 }
 0x49c   : > { %v5640_v11 = vmul.f32 %v5512_v1, %v5384_v33  ;;  %v5642_v21 = vmul.f32 %v5514_v53, %v5386_v61  ;;  %v5388_v0 = vmax.f32 %v6756_v42, 0.0  ;;  %v5390_v25 = vmax.f32 %v6820_v49, 0.0 }
 0x49d   : > { %v5724_v34 = vadd.f32 %v5723_v28, %v5639_v7  ;;  %v5798_v40 = vadd.f32 %v5797_v27, %v5641_v59  ;;  %v5643_v57 = vmul.f32 %v5515_v39, %v5387_v32  ;;  %v5645_v62 = vmul.f32 %v5517_v3, %v5389_v5 }
 0x49e   : > { %v5761_v20 = vadd.f32 %v5760_v23, %v5640_v11  ;;  %v5835_v9 = vadd.f32 %v5834_v58, %v5642_v21  ;;  %v5644_v35 = vmul.f32 %v5516_v43, %v5388_v0  ;;  %v5646_v6 = vmul.f32 %v5518_v31, %v5390_v25  ;;  %v4283_v60 = vpop.f32.mrb[32].mxu1  ;;  %v5248_v10 = vpop.f32.mrb[64].mxu0 }
 0x49f   : > { %v5725_v8 = vadd.f32 %v5724_v34, %v5643_v57  ;;  %v5799_v41 = vadd.f32 %v5798_v40, %v5645_v62  ;;  %v6757_v52 = vadd.f32 %v4283_v60, %v10849_v45  ;;  %v6821_v36 = vadd.f32 %v5248_v10, %v10851_v46  ;;  %v4285_v22 = vpop.f32.mrb[33].mxu1  ;;  %v5250_v16 = vpop.f32.mrb[65].mxu0 }
 0x4a0   : > { %v5762_v47 = vadd.f32 %v5761_v20, %v5644_v35  ;;  %v5836_v19 = vadd.f32 %v5835_v9, %v5646_v6  ;;  %v6758_v56 = vadd.f32 %v4285_v22, %v10853_v29  ;;  %v6822_v55 = vadd.f32 %v5250_v16, %v10855_v50  ;;  %v4287_v28 = vpop.f32.mrb[34].mxu1  ;;  %v5252_v27 = vpop.f32.mrb[66].mxu0  ;;  %v5527_v35 = vld [vmem:[#allocation3 + $0x240] sm:$0xff]  ;;  %v5529_v6 = vld [vmem:[#allocation3 + $0x250] sm:$0xff]  ;;  %v5528_v22 = vld [vmem:[#allocation3 + $0x248] sm:$0xff] }
 0x4a1   : > { %v5391_v51 = vmax.f32 %v6757_v52, 0.0  ;;  %v5393_v17 = vmax.f32 %v6821_v36, 0.0  ;;  %v6759_v23 = vadd.f32 %v4287_v28, %v10849_v45  ;;  %v6823_v58 = vadd.f32 %v5252_v27, %v10851_v46  ;;  %v4289_v54 = vpop.f32.mrb[35].mxu1  ;;  %v5254_v4 = vpop.f32.mrb[67].mxu0  ;;  %v5530_v16 = vld [vmem:[#allocation3 + $0x258] sm:$0xff]  ;;  %v5531_v28 = vld [vmem:[#allocation3 + $0x260] sm:$0xff] }
 0x4a2   : > { %v5392_v2 = vmax.f32 %v6758_v56, 0.0  ;;  %v5394_v15 = vmax.f32 %v6822_v55, 0.0  ;;  %v6760_v30 = vadd.f32 %v4289_v54, %v10853_v29  ;;  %v6824_v38 = vadd.f32 %v5254_v4, %v10855_v50  ;;  %v5533_v27 = vld [vmem:[#allocation3 + $0x270] sm:$0xff]  ;;  %v5532_v54 = vld [vmem:[#allocation3 + $0x268] sm:$0xff]  ;;  %v5534_v4 = vld [vmem:[#allocation3 + $0x278] sm:$0xff] }
 0x4a3   : > { %v5647_v1 = vmul.f32 %v5519_v18, %v5391_v51  ;;  %v5649_v53 = vmul.f32 %v5521_v24, %v5393_v17  ;;  %v5395_v37 = vmax.f32 %v6759_v23, 0.0  ;;  %v5397_v48 = vmax.f32 %v6823_v58, 0.0 }
 0x4a4   : > { %v5648_v33 = vmul.f32 %v5520_v26, %v5392_v2  ;;  %v5650_v61 = vmul.f32 %v5522_v63, %v5394_v15  ;;  %v5396_v39 = vmax.f32 %v6760_v30, 0.0  ;;  %v5398_v3 = vmax.f32 %v6824_v38, 0.0 }
 0x4a5   : > { %v5726_v42 = vadd.f32 %v5725_v8, %v5647_v1  ;;  %v5800_v49 = vadd.f32 %v5799_v41, %v5649_v53  ;;  %v5651_v7 = vmul.f32 %v5523_v12, %v5395_v37  ;;  %v5653_v59 = vmul.f32 %v5525_v44, %v5397_v48 }
 0x4a6   : > { %v5763_v32 = vadd.f32 %v5762_v47, %v5648_v33  ;;  %v5837_v5 = vadd.f32 %v5836_v19, %v5650_v61  ;;  %v5652_v43 = vmul.f32 %v5524_v13, %v5396_v39  ;;  %v5654_v31 = vmul.f32 %v5526_v14, %v5398_v3  ;;  %v4293_v11 = vpop.f32.mrb[36].mxu1  ;;  %v5258_v21 = vpop.f32.mrb[68].mxu0 }
 0x4a7   : > { %v5727_v0 = vadd.f32 %v5726_v42, %v5651_v7  ;;  %v5801_v25 = vadd.f32 %v5800_v49, %v5653_v59  ;;  %v6761_v34 = vadd.f32 %v4293_v11, %v10849_v45  ;;  %v6825_v40 = vadd.f32 %v5258_v21, %v10851_v46  ;;  %v4295_v57 = vpop.f32.mrb[37].mxu1  ;;  %v5260_v62 = vpop.f32.mrb[69].mxu0 }
 0x4a8   : > { %v5764_v20 = vadd.f32 %v5763_v32, %v5652_v43  ;;  %v5838_v9 = vadd.f32 %v5837_v5, %v5654_v31  ;;  %v6762_v60 = vadd.f32 %v4295_v57, %v10853_v29  ;;  %v6826_v10 = vadd.f32 %v5260_v62, %v10855_v50  ;;  %v4297_v8 = vpop.f32.mrb[38].mxu1  ;;  %v5262_v41 = vpop.f32.mrb[70].mxu0  ;;  %v5535_v43 = vld [vmem:[#allocation3 + $0x280] sm:$0xff]  ;;  %v5537_v31 = vld [vmem:[#allocation3 + $0x290] sm:$0xff]  ;;  %v5536_v57 = vld [vmem:[#allocation3 + $0x288] sm:$0xff] }
 0x4a9   : > { %v5399_v52 = vmax.f32 %v6761_v34, 0.0  ;;  %v5401_v36 = vmax.f32 %v6825_v40, 0.0  ;;  %v6763_v47 = vadd.f32 %v4297_v8, %v10849_v45  ;;  %v6827_v19 = vadd.f32 %v5262_v41, %v10851_v46  ;;  %v4299_v18 = vpop.f32.mrb[39].mxu1  ;;  %v5264_v24 = vpop.f32.mrb[71].mxu0  ;;  %v5538_v62 = vld [vmem:[#allocation3 + $0x298] sm:$0xff]  ;;  %v5539_v8 = vld [vmem:[#allocation3 + $0x2a0] sm:$0xff] }
 0x4aa   : > { %v5400_v56 = vmax.f32 %v6762_v60, 0.0  ;;  %v5402_v55 = vmax.f32 %v6826_v10, 0.0  ;;  %v6764_v51 = vadd.f32 %v4299_v18, %v10853_v29  ;;  %v6828_v17 = vadd.f32 %v5264_v24, %v10855_v50  ;;  %v5541_v41 = vld [vmem:[#allocation3 + $0x2b0] sm:$0xff]  ;;  %v5540_v18 = vld [vmem:[#allocation3 + $0x2a8] sm:$0xff]  ;;  %v5542_v24 = vld [vmem:[#allocation3 + $0x2b8] sm:$0xff] }
 0x4ab   : > { %v5655_v26 = vmul.f32 %v5527_v35, %v5399_v52  ;;  %v5657_v63 = vmul.f32 %v5529_v6, %v5401_v36  ;;  %v5403_v23 = vmax.f32 %v6763_v47, 0.0  ;;  %v5405_v58 = vmax.f32 %v6827_v19, 0.0 }
 0x4ac   : > { %v5656_v2 = vmul.f32 %v5528_v22, %v5400_v56  ;;  %v5658_v15 = vmul.f32 %v5530_v16, %v5402_v55  ;;  %v5404_v12 = vmax.f32 %v6764_v51, 0.0  ;;  %v5406_v44 = vmax.f32 %v6828_v17, 0.0 }
 0x4ad   : > { %v5728_v30 = vadd.f32 %v5727_v0, %v5655_v26  ;;  %v5802_v38 = vadd.f32 %v5801_v25, %v5657_v63  ;;  %v5659_v1 = vmul.f32 %v5531_v28, %v5403_v23  ;;  %v5661_v53 = vmul.f32 %v5533_v27, %v5405_v58 }
 0x4ae   : > { %v5765_v37 = vadd.f32 %v5764_v20, %v5656_v2  ;;  %v5839_v48 = vadd.f32 %v5838_v9, %v5658_v15  ;;  %v5660_v13 = vmul.f32 %v5532_v54, %v5404_v12  ;;  %v5662_v14 = vmul.f32 %v5534_v4, %v5406_v44  ;;  %v4303_v33 = vpop.f32.mrb[40].mxu1  ;;  %v5268_v61 = vpop.f32.mrb[72].mxu0 }
 0x4af   : > { %v5729_v39 = vadd.f32 %v5728_v30, %v5659_v1  ;;  %v5803_v3 = vadd.f32 %v5802_v38, %v5661_v53  ;;  %v6765_v42 = vadd.f32 %v4303_v33, %v10849_v45  ;;  %v6829_v49 = vadd.f32 %v5268_v61, %v10851_v46  ;;  %v4305_v7 = vpop.f32.mrb[41].mxu1  ;;  %v5270_v59 = vpop.f32.mrb[73].mxu0 }
 0x4b0   : > { %v5766_v32 = vadd.f32 %v5765_v37, %v5660_v13  ;;  %v5840_v5 = vadd.f32 %v5839_v48, %v5662_v14  ;;  %v6766_v11 = vadd.f32 %v4305_v7, %v10853_v29  ;;  %v6830_v21 = vadd.f32 %v5270_v59, %v10855_v50  ;;  %v4307_v0 = vpop.f32.mrb[42].mxu1  ;;  %v5272_v25 = vpop.f32.mrb[74].mxu0  ;;  %v5543_v13 = vld [vmem:[#allocation3 + $0x2c0] sm:$0xff]  ;;  %v5545_v14 = vld [vmem:[#allocation3 + $0x2d0] sm:$0xff]  ;;  %v5544_v7 = vld [vmem:[#allocation3 + $0x2c8] sm:$0xff] }
 0x4b1   : > { %v5407_v34 = vmax.f32 %v6765_v42, 0.0  ;;  %v5409_v40 = vmax.f32 %v6829_v49, 0.0  ;;  %v6767_v20 = vadd.f32 %v4307_v0, %v10849_v45  ;;  %v6831_v9 = vadd.f32 %v5272_v25, %v10851_v46  ;;  %v4309_v35 = vpop.f32.mrb[43].mxu1  ;;  %v5274_v6 = vpop.f32.mrb[75].mxu0  ;;  %v5546_v59 = vld [vmem:[#allocation3 + $0x2d8] sm:$0xff]  ;;  %v5547_v0 = vld [vmem:[#allocation3 + $0x2e0] sm:$0xff] }
 0x4b2   : > { %v5408_v60 = vmax.f32 %v6766_v11, 0.0  ;;  %v5410_v10 = vmax.f32 %v6830_v21, 0.0  ;;  %v6768_v52 = vadd.f32 %v4309_v35, %v10853_v29  ;;  %v6832_v36 = vadd.f32 %v5274_v6, %v10855_v50  ;;  %v5549_v25 = vld [vmem:[#allocation3 + $0x2f0] sm:$0xff]  ;;  %v5548_v35 = vld [vmem:[#allocation3 + $0x2e8] sm:$0xff]  ;;  %v5550_v6 = vld [vmem:[#allocation3 + $0x2f8] sm:$0xff] }
 0x4b3   : > { %v5663_v22 = vmul.f32 %v5535_v43, %v5407_v34  ;;  %v5665_v16 = vmul.f32 %v5537_v31, %v5409_v40  ;;  %v5411_v47 = vmax.f32 %v6767_v20, 0.0  ;;  %v5413_v19 = vmax.f32 %v6831_v9, 0.0 }
 0x4b4   : > { %v5664_v56 = vmul.f32 %v5536_v57, %v5408_v60  ;;  %v5666_v55 = vmul.f32 %v5538_v62, %v5410_v10  ;;  %v5412_v28 = vmax.f32 %v6768_v52, 0.0  ;;  %v5414_v27 = vmax.f32 %v6832_v36, 0.0 }
 0x4b5   : > { %v5730_v51 = vadd.f32 %v5729_v39, %v5663_v22  ;;  %v5804_v17 = vadd.f32 %v5803_v3, %v5665_v16  ;;  %v5667_v26 = vmul.f32 %v5539_v8, %v5411_v47  ;;  %v5669_v63 = vmul.f32 %v5541_v41, %v5413_v19 }
 0x4b6   : > { %v5767_v23 = vadd.f32 %v5766_v32, %v5664_v56  ;;  %v5841_v58 = vadd.f32 %v5840_v5, %v5666_v55  ;;  %v5668_v54 = vmul.f32 %v5540_v18, %v5412_v28  ;;  %v5670_v4 = vmul.f32 %v5542_v24, %v5414_v27  ;;  %v4313_v2 = vpop.f32.mrb[44].mxu1  ;;  %v5278_v15 = vpop.f32.mrb[76].mxu0 }
 0x4b7   : > { %v5731_v12 = vadd.f32 %v5730_v51, %v5667_v26  ;;  %v5805_v44 = vadd.f32 %v5804_v17, %v5669_v63  ;;  %v6769_v30 = vadd.f32 %v4313_v2, %v10849_v45  ;;  %v6833_v38 = vadd.f32 %v5278_v15, %v10851_v46  ;;  %v4315_v1 = vpop.f32.mrb[45].mxu1  ;;  %v5280_v53 = vpop.f32.mrb[77].mxu0 }
 0x4b8   : > { %v5768_v37 = vadd.f32 %v5767_v23, %v5668_v54  ;;  %v5842_v48 = vadd.f32 %v5841_v58, %v5670_v4  ;;  %v6770_v33 = vadd.f32 %v4315_v1, %v10853_v29  ;;  %v6834_v61 = vadd.f32 %v5280_v53, %v10855_v50  ;;  %v4317_v39 = vpop.f32.mrb[46].mxu1  ;;  %v5282_v3 = vpop.f32.mrb[78].mxu0  ;;  %v5551_v54 = vld [vmem:[#allocation3 + $0x300] sm:$0xff]  ;;  %v5553_v4 = vld [vmem:[#allocation3 + $0x310] sm:$0xff]  ;;  %v5552_v1 = vld [vmem:[#allocation3 + $0x308] sm:$0xff] }
 0x4b9   : > { %v5415_v42 = vmax.f32 %v6769_v30, 0.0  ;;  %v5417_v49 = vmax.f32 %v6833_v38, 0.0  ;;  %v6771_v32 = vadd.f32 %v4317_v39, %v10849_v45  ;;  %v6835_v5 = vadd.f32 %v5282_v3, %v10851_v46  ;;  %v4319_v43 = vpop.f32.mrb[47].mxu1  ;;  %v5284_v31 = vpop.f32.mrb[79].mxu0  ;;  %v5554_v53 = vld [vmem:[#allocation3 + $0x318] sm:$0xff]  ;;  %v5555_v39 = vld [vmem:[#allocation3 + $0x320] sm:$0xff] }
 0x4ba   : > { %v5416_v11 = vmax.f32 %v6770_v33, 0.0  ;;  %v5418_v21 = vmax.f32 %v6834_v61, 0.0  ;;  %v6772_v34 = vadd.f32 %v4319_v43, %v10853_v29  ;;  %v6836_v40 = vadd.f32 %v5284_v31, %v10855_v50  ;;  %v5557_v3 = vld [vmem:[#allocation3 + $0x330] sm:$0xff]  ;;  %v5556_v43 = vld [vmem:[#allocation3 + $0x328] sm:$0xff]  ;;  %v5558_v31 = vld [vmem:[#allocation3 + $0x338] sm:$0xff] }
 0x4bb   : > { %v5671_v57 = vmul.f32 %v5543_v13, %v5415_v42  ;;  %v5673_v62 = vmul.f32 %v5545_v14, %v5417_v49  ;;  %v5419_v20 = vmax.f32 %v6771_v32, 0.0  ;;  %v5421_v9 = vmax.f32 %v6835_v5, 0.0 }
 0x4bc   : > { %v5672_v60 = vmul.f32 %v5544_v7, %v5416_v11  ;;  %v5674_v10 = vmul.f32 %v5546_v59, %v5418_v21  ;;  %v5420_v8 = vmax.f32 %v6772_v34, 0.0  ;;  %v5422_v41 = vmax.f32 %v6836_v40, 0.0 }
 0x4bd   : > { %v5732_v52 = vadd.f32 %v5731_v12, %v5671_v57  ;;  %v5806_v36 = vadd.f32 %v5805_v44, %v5673_v62  ;;  %v5675_v22 = vmul.f32 %v5547_v0, %v5419_v20  ;;  %v5677_v16 = vmul.f32 %v5549_v25, %v5421_v9 }
 0x4be   : > { %v5769_v47 = vadd.f32 %v5768_v37, %v5672_v60  ;;  %v5843_v19 = vadd.f32 %v5842_v48, %v5674_v10  ;;  %v5676_v18 = vmul.f32 %v5548_v35, %v5420_v8  ;;  %v5678_v24 = vmul.f32 %v5550_v6, %v5422_v41  ;;  %v4323_v56 = vpop.f32.mrb[48].mxu1  ;;  %v5288_v55 = vpop.f32.mrb[80].mxu0 }
 0x4bf   : > { %v5733_v28 = vadd.f32 %v5732_v52, %v5675_v22  ;;  %v5807_v27 = vadd.f32 %v5806_v36, %v5677_v16  ;;  %v6773_v51 = vadd.f32 %v4323_v56, %v10849_v45  ;;  %v6837_v17 = vadd.f32 %v5288_v55, %v10851_v46  ;;  %v4325_v26 = vpop.f32.mrb[49].mxu1  ;;  %v5290_v63 = vpop.f32.mrb[81].mxu0 }
 0x4c0   : > { %v5770_v23 = vadd.f32 %v5769_v47, %v5676_v18  ;;  %v5844_v58 = vadd.f32 %v5843_v19, %v5678_v24  ;;  %v6774_v2 = vadd.f32 %v4325_v26, %v10853_v29  ;;  %v6838_v15 = vadd.f32 %v5290_v63, %v10855_v50  ;;  %v4327_v12 = vpop.f32.mrb[50].mxu1  ;;  %v5292_v44 = vpop.f32.mrb[82].mxu0  ;;  %v5559_v18 = vld [vmem:[#allocation3 + $0x340] sm:$0xff]  ;;  %v5561_v24 = vld [vmem:[#allocation3 + $0x350] sm:$0xff]  ;;  %v5560_v26 = vld [vmem:[#allocation3 + $0x348] sm:$0xff] }
 0x4c1   : > { %v5423_v30 = vmax.f32 %v6773_v51, 0.0  ;;  %v5425_v38 = vmax.f32 %v6837_v17, 0.0  ;;  %v6775_v37 = vadd.f32 %v4327_v12, %v10849_v45  ;;  %v6839_v48 = vadd.f32 %v5292_v44, %v10851_v46  ;;  %v4329_v13 = vpop.f32.mrb[51].mxu1  ;;  %v5294_v14 = vpop.f32.mrb[83].mxu0  ;;  %v5562_v63 = vld [vmem:[#allocation3 + $0x358] sm:$0xff]  ;;  %v5563_v12 = vld [vmem:[#allocation3 + $0x360] sm:$0xff] }
 0x4c2   : > { %v5424_v33 = vmax.f32 %v6774_v2, 0.0  ;;  %v5426_v61 = vmax.f32 %v6838_v15, 0.0  ;;  %v6776_v42 = vadd.f32 %v4329_v13, %v10853_v29  ;;  %v6840_v49 = vadd.f32 %v5294_v14, %v10855_v50  ;;  %v5565_v44 = vld [vmem:[#allocation3 + $0x370] sm:$0xff]  ;;  %v5564_v13 = vld [vmem:[#allocation3 + $0x368] sm:$0xff]  ;;  %v5566_v14 = vld [vmem:[#allocation3 + $0x378] sm:$0xff] }
 0x4c3   : > { %v5679_v7 = vmul.f32 %v5551_v54, %v5423_v30  ;;  %v5681_v59 = vmul.f32 %v5553_v4, %v5425_v38  ;;  %v5427_v32 = vmax.f32 %v6775_v37, 0.0  ;;  %v5429_v5 = vmax.f32 %v6839_v48, 0.0 }
 0x4c4   : > { %v5680_v11 = vmul.f32 %v5552_v1, %v5424_v33  ;;  %v5682_v21 = vmul.f32 %v5554_v53, %v5426_v61  ;;  %v5428_v0 = vmax.f32 %v6776_v42, 0.0  ;;  %v5430_v25 = vmax.f32 %v6840_v49, 0.0 }
 0x4c5   : > { %v5734_v34 = vadd.f32 %v5733_v28, %v5679_v7  ;;  %v5808_v40 = vadd.f32 %v5807_v27, %v5681_v59  ;;  %v5683_v57 = vmul.f32 %v5555_v39, %v5427_v32  ;;  %v5685_v62 = vmul.f32 %v5557_v3, %v5429_v5 }
 0x4c6   : > { %v5771_v20 = vadd.f32 %v5770_v23, %v5680_v11  ;;  %v5845_v9 = vadd.f32 %v5844_v58, %v5682_v21  ;;  %v5684_v35 = vmul.f32 %v5556_v43, %v5428_v0  ;;  %v5686_v6 = vmul.f32 %v5558_v31, %v5430_v25  ;;  %v4333_v60 = vpop.f32.mrb[52].mxu1  ;;  %v5298_v10 = vpop.f32.mrb[84].mxu0 }
 0x4c7   : > { %v5735_v8 = vadd.f32 %v5734_v34, %v5683_v57  ;;  %v5809_v41 = vadd.f32 %v5808_v40, %v5685_v62  ;;  %v6777_v52 = vadd.f32 %v4333_v60, %v10849_v45  ;;  %v6841_v36 = vadd.f32 %v5298_v10, %v10851_v46  ;;  %v4335_v22 = vpop.f32.mrb[53].mxu1  ;;  %v5300_v16 = vpop.f32.mrb[85].mxu0 }
 0x4c8   : > { %v5772_v47 = vadd.f32 %v5771_v20, %v5684_v35  ;;  %v5846_v19 = vadd.f32 %v5845_v9, %v5686_v6  ;;  %v6778_v56 = vadd.f32 %v4335_v22, %v10853_v29  ;;  %v6842_v55 = vadd.f32 %v5300_v16, %v10855_v50  ;;  %v4337_v28 = vpop.f32.mrb[54].mxu1  ;;  %v5302_v27 = vpop.f32.mrb[86].mxu0  ;;  %v5567_v35 = vld [vmem:[#allocation3 + $0x380] sm:$0xff]  ;;  %v5569_v6 = vld [vmem:[#allocation3 + $0x390] sm:$0xff]  ;;  %v5568_v22 = vld [vmem:[#allocation3 + $0x388] sm:$0xff] }
 0x4c9   : > { %v5431_v51 = vmax.f32 %v6777_v52, 0.0  ;;  %v5433_v17 = vmax.f32 %v6841_v36, 0.0  ;;  %v6779_v23 = vadd.f32 %v4337_v28, %v10849_v45  ;;  %v6843_v58 = vadd.f32 %v5302_v27, %v10851_v46  ;;  %v4339_v54 = vpop.f32.mrb[55].mxu1  ;;  %v5304_v4 = vpop.f32.mrb[87].mxu0  ;;  %v5570_v16 = vld [vmem:[#allocation3 + $0x398] sm:$0xff]  ;;  %v5571_v28 = vld [vmem:[#allocation3 + $0x3a0] sm:$0xff] }
 0x4ca   : > { %v5432_v2 = vmax.f32 %v6778_v56, 0.0  ;;  %v5434_v15 = vmax.f32 %v6842_v55, 0.0  ;;  %v6780_v30 = vadd.f32 %v4339_v54, %v10853_v29  ;;  %v6844_v38 = vadd.f32 %v5304_v4, %v10855_v50  ;;  %v5573_v27 = vld [vmem:[#allocation3 + $0x3b0] sm:$0xff]  ;;  %v5572_v54 = vld [vmem:[#allocation3 + $0x3a8] sm:$0xff]  ;;  %v5574_v4 = vld [vmem:[#allocation3 + $0x3b8] sm:$0xff] }
 0x4cb   : > { %v5687_v1 = vmul.f32 %v5559_v18, %v5431_v51  ;;  %v5689_v53 = vmul.f32 %v5561_v24, %v5433_v17  ;;  %v5435_v37 = vmax.f32 %v6779_v23, 0.0  ;;  %v5437_v48 = vmax.f32 %v6843_v58, 0.0 }
 0x4cc   : > { %v5688_v33 = vmul.f32 %v5560_v26, %v5432_v2  ;;  %v5690_v61 = vmul.f32 %v5562_v63, %v5434_v15  ;;  %v5436_v39 = vmax.f32 %v6780_v30, 0.0  ;;  %v5438_v3 = vmax.f32 %v6844_v38, 0.0 }
 0x4cd   : > { %v5736_v42 = vadd.f32 %v5735_v8, %v5687_v1  ;;  %v5810_v49 = vadd.f32 %v5809_v41, %v5689_v53  ;;  %v5691_v7 = vmul.f32 %v5563_v12, %v5435_v37  ;;  %v5693_v59 = vmul.f32 %v5565_v44, %v5437_v48 }
 0x4ce   : > { %v5773_v32 = vadd.f32 %v5772_v47, %v5688_v33  ;;  %v5847_v5 = vadd.f32 %v5846_v19, %v5690_v61  ;;  %v5692_v43 = vmul.f32 %v5564_v13, %v5436_v39  ;;  %v5694_v31 = vmul.f32 %v5566_v14, %v5438_v3  ;;  %v4343_v11 = vpop.f32.mrb[56].mxu1  ;;  %v5308_v21 = vpop.f32.mrb[88].mxu0 }
 0x4cf   : > { %v5737_v0 = vadd.f32 %v5736_v42, %v5691_v7  ;;  %v5811_v25 = vadd.f32 %v5810_v49, %v5693_v59  ;;  %v6781_v34 = vadd.f32 %v4343_v11, %v10849_v45  ;;  %v6845_v40 = vadd.f32 %v5308_v21, %v10851_v46  ;;  %v4345_v57 = vpop.f32.mrb[57].mxu1  ;;  %v5310_v62 = vpop.f32.mrb[89].mxu0 }
 0x4d0   : > { %v5774_v20 = vadd.f32 %v5773_v32, %v5692_v43  ;;  %v5848_v9 = vadd.f32 %v5847_v5, %v5694_v31  ;;  %v6782_v60 = vadd.f32 %v4345_v57, %v10853_v29  ;;  %v6846_v10 = vadd.f32 %v5310_v62, %v10855_v50  ;;  %v4347_v8 = vpop.f32.mrb[58].mxu1  ;;  %v5312_v41 = vpop.f32.mrb[90].mxu0  ;;  %v5575_v43 = vld [vmem:[#allocation3 + $0x3c0] sm:$0xff]  ;;  %v5577_v31 = vld [vmem:[#allocation3 + $0x3d0] sm:$0xff]  ;;  %v5576_v57 = vld [vmem:[#allocation3 + $0x3c8] sm:$0xff] }
 0x4d1   : > { %v5439_v52 = vmax.f32 %v6781_v34, 0.0  ;;  %v5441_v36 = vmax.f32 %v6845_v40, 0.0  ;;  %v6783_v47 = vadd.f32 %v4347_v8, %v10849_v45  ;;  %v6847_v19 = vadd.f32 %v5312_v41, %v10851_v46  ;;  %v4349_v18 = vpop.f32.mrb[59].mxu1  ;;  %v5314_v24 = vpop.f32.mrb[91].mxu0  ;;  %v5578_v62 = vld [vmem:[#allocation3 + $0x3d8] sm:$0xff]  ;;  %v5579_v8 = vld [vmem:[#allocation3 + $0x3e0] sm:$0xff] }
 0x4d2   : > { %v5440_v56 = vmax.f32 %v6782_v60, 0.0  ;;  %v5442_v55 = vmax.f32 %v6846_v10, 0.0  ;;  %v6784_v51 = vadd.f32 %v4349_v18, %v10853_v29  ;;  %v6848_v17 = vadd.f32 %v5314_v24, %v10855_v50  ;;  %v5581_v41 = vld [vmem:[#allocation3 + $0x3f0] sm:$0xff]  ;;  %v5580_v18 = vld [vmem:[#allocation3 + $0x3e8] sm:$0xff]  ;;  %v5582_v24 = vld [vmem:[#allocation3 + $0x3f8] sm:$0xff] }
 0x4d3   : > { %v5695_v26 = vmul.f32 %v5567_v35, %v5439_v52  ;;  %v5697_v63 = vmul.f32 %v5569_v6, %v5441_v36  ;;  %v5443_v23 = vmax.f32 %v6783_v47, 0.0  ;;  %v5445_v58 = vmax.f32 %v6847_v19, 0.0 }
 0x4d4   : > { %v5696_v2 = vmul.f32 %v5568_v22, %v5440_v56  ;;  %v5698_v15 = vmul.f32 %v5570_v16, %v5442_v55  ;;  %v5444_v12 = vmax.f32 %v6784_v51, 0.0  ;;  %v5446_v44 = vmax.f32 %v6848_v17, 0.0 }
 0x4d5   : > { %v5738_v30 = vadd.f32 %v5737_v0, %v5695_v26  ;;  %v5812_v38 = vadd.f32 %v5811_v25, %v5697_v63  ;;  %v5699_v1 = vmul.f32 %v5571_v28, %v5443_v23  ;;  %v5701_v53 = vmul.f32 %v5573_v27, %v5445_v58 }
 0x4d6   : > { %v5775_v37 = vadd.f32 %v5774_v20, %v5696_v2  ;;  %v5849_v48 = vadd.f32 %v5848_v9, %v5698_v15  ;;  %v5700_v13 = vmul.f32 %v5572_v54, %v5444_v12  ;;  %v5702_v14 = vmul.f32 %v5574_v4, %v5446_v44  ;;  %v4353_v33 = vpop.f32.mrb[60].mxu1  ;;  %v5318_v61 = vpop.f32.mrb[92].mxu0 }
 0x4d7   : > { %v5739_v39 = vadd.f32 %v5738_v30, %v5699_v1  ;;  %v5813_v3 = vadd.f32 %v5812_v38, %v5701_v53  ;;  %v6785_v42 = vadd.f32 %v4353_v33, %v10849_v45  ;;  %v6849_v49 = vadd.f32 %v5318_v61, %v10851_v46  ;;  %v4355_v7 = vpop.f32.mrb[61].mxu1  ;;  %v5320_v59 = vpop.f32.mrb[93].mxu0 }
 0x4d8   : > { %v5776_v32 = vadd.f32 %v5775_v37, %v5700_v13  ;;  %v5850_v5 = vadd.f32 %v5849_v48, %v5702_v14  ;;  %v6786_v11 = vadd.f32 %v4355_v7, %v10853_v29  ;;  %v6850_v21 = vadd.f32 %v5320_v59, %v10855_v50  ;;  %v4357_v0 = vpop.f32.mrb[62].mxu1  ;;  %v5322_v25 = vpop.f32.mrb[94].mxu0 }
 0x4d9   : > { %v5447_v34 = vmax.f32 %v6785_v42, 0.0  ;;  %v5449_v40 = vmax.f32 %v6849_v49, 0.0  ;;  %v6787_v20 = vadd.f32 %v4357_v0, %v10849_v45  ;;  %v6851_v9 = vadd.f32 %v5322_v25, %v10851_v46  ;;  %v4359_v35 = vpop.f32.mrb[63].mxu1  ;;  %v5324_v6 = vpop.f32.mrb[95].mxu0  ;;  %v5864_v25 = vld [vmem:[%s11081_s6] sm:$0x1] }
 0x4da   : > { %v5448_v60 = vmax.f32 %v6786_v11, 0.0  ;;  %v5450_v10 = vmax.f32 %v6850_v21, 0.0  ;;  %v6788_v52 = vadd.f32 %v4359_v35, %v10853_v29  ;;  %v6852_v36 = vadd.f32 %v5324_v6, %v10855_v50 }
 0x4db   : > { %v5703_v22 = vmul.f32 %v5575_v43, %v5447_v34  ;;  %v5705_v16 = vmul.f32 %v5577_v31, %v5449_v40  ;;  %v5451_v47 = vmax.f32 %v6787_v20, 0.0  ;;  %v5453_v19 = vmax.f32 %v6851_v9, 0.0 }
 0x4dc   : > { %v5704_v56 = vmul.f32 %v5576_v57, %v5448_v60  ;;  %v5706_v45 = vmul.f32 %v5578_v62, %v5450_v10  ;;  %v5452_v55 = vmax.f32 %v6788_v52, 0.0  ;;  %v5454_v46 = vmax.f32 %v6852_v36, 0.0 }
 0x4dd   : > { %v5740_v28 = vadd.f32 %v5739_v39, %v5703_v22  ;;  %v5814_v27 = vadd.f32 %v5813_v3, %v5705_v16  ;;  %v5707_v51 = vmul.f32 %v5579_v8, %v5451_v47  ;;  %v5709_v17 = vmul.f32 %v5581_v41, %v5453_v19 }
 0x4de   : > { %v5777_v26 = vadd.f32 %v5776_v32, %v5704_v56  ;;  %v5851_v63 = vadd.f32 %v5850_v5, %v5706_v45  ;;  %v5708_v23 = vmul.f32 %v5580_v18, %v5452_v55  ;;  %v5710_v29 = vmul.f32 %v5582_v24, %v5454_v46 }
 0x4df   : > { %v5741_v58 = vadd.f32 %v5740_v28, %v5707_v51  ;;  %v5815_v50 = vadd.f32 %v5814_v27, %v5709_v17 }
 0x4e0   : > { %v5778_v54 = vadd.f32 %v5777_v26, %v5708_v23  ;;  %v5852_v4 = vadd.f32 %v5851_v63, %v5710_v29 }
 0x4e1   : > { %v5742_v2 = vrot.slane %v5741_v58, 4  ;;  %v5816_v15 = vrot.slane %v5815_v50, 4 }
 0x4e2   : > { %v5779_v12 = vrot.slane %v5778_v54, 4  ;;  %v5853_v44 = vrot.slane %v5852_v4, 4 }
 0x4e3   : > { %v5743_v30 = vadd.f32 %v5742_v2, %v5741_v58  ;;  %v5817_v38 = vadd.f32 %v5816_v15, %v5815_v50 }
 0x4e4   : > { %v5780_v1 = vadd.f32 %v5779_v12, %v5778_v54  ;;  %v5854_v53 = vadd.f32 %v5853_v44, %v5852_v4 }
 0x4e5   : > { %v5744_v37 = vrot.slane %v5743_v30, 2  ;;  %v5818_v48 = vrot.slane %v5817_v38, 2 }
 0x4e6   : > { %v5781_v13 = vrot.slane %v5780_v1, 2  ;;  %v5855_v14 = vrot.slane %v5854_v53, 2 }
 0x4e7   : > { %v5745_v33 = vadd.f32 %v5744_v37, %v5743_v30  ;;  %v5819_v61 = vadd.f32 %v5818_v48, %v5817_v38 }
 0x4e8   : > { %v5782_v39 = vadd.f32 %v5781_v13, %v5780_v1  ;;  %v5856_v3 = vadd.f32 %v5855_v14, %v5854_v53 }
 0x4e9   : > { %v5746_v42 = vrot.slane %v5745_v33, 1  ;;  %v5820_v7 = vrot.slane %v5819_v61, 1 }
 0x4ea   : > { %v5783_v49 = vrot.slane %v5782_v39, 1  ;;  %v5857_v5 = vrot.slane %v5856_v3, 1 }
 0x4eb   : > { %v5747_v59 = vadd.f32 %v5746_v42, %v5745_v33  ;;  %v5821_v43 = vadd.f32 %v5820_v7, %v5819_v61 }
 0x4ec   : > { %v5784_v32 = vadd.f32 %v5783_v49, %v5782_v39  ;;  %v5858_v11 = vadd.f32 %v5857_v5, %v5856_v3 }
 0x4ee   : > { %v5859_v31 = vadd.f32 %v5784_v32, %v5747_v59 }
 0x4f0   : > { %v5860_v21 = vadd.f32 %v5859_v31, %v5821_v43 }
 0x4f2   : > { %v5861_v0 = vadd.f32 %v5860_v21, %v5858_v11 }
 0x4f4   : > { %5862 = vadd.xlane.f32.xlu0 %v5861_v0 }
 0x581   : > { %v5863_v34 = vpop.xlane.xlu0 %5862 }
 0x582   : > { %v5865_v40 = vadd.f32 %v5864_v25, %v5863_v34 }
 0x584   : > { %v6330_v57 = vmul.f32 -1.442695, %v5865_v40  ;;  %5867 = vst.msk [vmem:[%s317_s22] sm:$0x1] %vm5866_vm13, %v5865_v40 }
 0x585   : > { %7901 = shalt.err (!%p7898_p7)
}
 0x586   : > { %s7902_s18 = scalar_lea.hbm %s10998_s25, 16  ;;  %s7906_s20 = scalar_lea.hbm %s11082_s7, 32 }
 0x587   : > { %p7903_p8 = scmp.ne.s32.totalorder %s10998_s25, %s7902_s18  ;;  %p7907_p1 = scmp.lt.u32.totalorder %s10998_s25, %s11082_s7 }
 0x588   : > { %p7908_p0 = scmp.lt.u32.totalorder %s7906_s20, %s7902_s18  ;;  %p7910_p6 = scmp.lt.u32.totalorder %s7902_s18, %s10998_s25 }
 0x589   : > { %p7904_p11 = pnand %p7903_p8, %p11619_p9 }
 0x58a   : > { %p7909_p5 = por %p7908_p0, %p7907_p1 }
 0x58b   : > { %p7905_p13 = pneg %p7904_p11 }
 0x58c   : > { %p7911_p10 = por %p7910_p6, %p7909_p5 }
 0x58e   : > { %p7912_p12 = pnand %p7911_p10, %p7905_p13 }
 0x590   : > { %7915 = shalt.err (!%p7912_p12)
}
 0x591   : > { %7369 = dma.vmem_to_hbm [thread:$0]  (%p11619_p9), %s11000_s23, 16, %s10998_s25, %s5876_s17   ;;  %7856 = vpow2.f32 %v6330_v57 }
 0x592   : > { %s323_s19 = scalar_lea.vmem [#allocation7], %s10986_s12  ;;  %s11031_s24 = scalar_lea.hbm %s11083_s8, %s6331_s21 }
 0x593   : > { %s5905_s13 = sshll.u32 %s323_s19, 4  ;;  %s5880_s23 = scalar_lea.sflag [#allocation8], %s10986_s12  ;;  %s11033_s13 = int_to_ptr.vmem [resolvable:$true] %s5905_s13 }
 0x594   : > { %s7916_s25 = scalar_lea.vmem %s11033_s13, 16  ;;  %s7994_s9 = smov [#allocation7]  }
 0x595   : > { %p7917_p2 = scmp.ne.s32.totalorder %s11033_s13, %s7916_s25  ;;  %s7920_s17 = sshll.u32 %s7994_s9, 4  ;;  %s7921_s17 = int_to_ptr.vmem [resolvable:$false] %s7920_s17 }
 0x596   : > { %s7922_s20 = scalar_lea.vmem %s7921_s17, 32  ;;  %p7923_p7 = scmp.lt.s32.totalorder %s11033_s13, %s7921_s17 }
 0x597   : > { %p7918_p3 = pnand %p7917_p2, %p11619_p9  ;;  %p7924_p8 = scmp.lt.s32.totalorder %s7922_s20, %s7916_s25 }
 0x599   : > { %p7919_p4 = pneg %p7918_p3  ;;  %p7925_p11 = por %p7924_p8, %p7923_p7 }
 0x59b   : > { %v7857_v62 = vpop.eup %7856  ;;  %p7926_p13 = pnand %p7925_p11, %p7919_p4 }
 0x59c   : > { %v5871_v20 = vadd.f32 1.0, %v7857_v62 }
 0x59e   : > { %7858 = vrcp.f32 %v5871_v20 }
 0x5a8   : > { %v7859_v9 = vpop.eup %7858 }
 0x5a9   : > { %5874 = vst.msk [vmem:[%s323_s19] sm:$0x1] %vm5866_vm13, %v7859_v9 }
 0x5aa   : > { %7929 = shalt.err (!%p7926_p13)
}
 0x5ab   : > { %s7930_s12 = scalar_lea.hbm %s11031_s24, 16  ;;  %s7934_s10 = scalar_lea.hbm %s11083_s8, 32 }
 0x5ac   : > { %p7931_p1 = scmp.ne.s32.totalorder %s11031_s24, %s7930_s12  ;;  %p7935_p6 = scmp.lt.u32.totalorder %s11031_s24, %s11083_s8 }
 0x5ad   : > { %p7936_p10 = scmp.lt.u32.totalorder %s7934_s10, %s7930_s12  ;;  %p7938_p2 = scmp.lt.u32.totalorder %s7930_s12, %s11031_s24 }
 0x5ae   : > { %p7932_p0 = pnand %p7931_p1, %p11619_p9 }
 0x5af   : > { %p7937_p12 = por %p7936_p10, %p7935_p6 }
 0x5b0   : > { %p7933_p5 = pneg %p7932_p0 }
 0x5b1   : > { %p7939_p3 = por %p7938_p2, %p7937_p12 }
 0x5b3   : > { %p7940_p4 = pnand %p7939_p3, %p7933_p5 }
 0x5b5   : > { %7943 = shalt.err (!%p7940_p4)
}
 0x5b6   : > { %7370 = dma.vmem_to_hbm [thread:$0]  (%p11619_p9), %s11033_s13, 16, %s11031_s24, %s5880_s23  }
 0x5b7 PF: > { %p7386_p7 = scmp.ge.s32.totalorder %s7986_s30, 2  ;;  %s5917_s22 = sand.u32 1, %s7974_s27  }
 0x5b8   : > { %p11620_p8 = scmp.ne.s32.totalorder %s11181_s16, 0  ;;  %s5918_s25 = scalar_lea.sflag [#allocation5], %s5917_s22 }
 0x5ba   : > { %p7378_p11 = pnand %p7386_p7, %p11620_p8 }
 0x5bc   : > { %7965 = dma.done.wait (!%p7378_p11), %s5918_s25, 16  }
 0x5bd   : > { %7967 = vsyncadd (!%p7378_p11), %s5918_s25, 4294967280  ;;  %s5926_s9 = scalar_lea.sflag [#allocation8], %s5917_s22 }
 0x5be   : > { %7969 = dma.done.wait (!%p7378_p11), %s5926_s9, 16  }
 0x5bf   : > { %7971 = vsyncadd (!%p7378_p11), %s5926_s9, 4294967280  ;;  %p23_p9 = scmp.ge.s32.totalorder %s8065_s11, 4   ;;  %s11621_s27 = smov %s7978_s28 }
 0x5c0   : > { %s11622_s28 = smov %s7982_s29  ;;  %s11623_s29 = smov %s8076_s14 }
 0x5c1   : > { %s11624_s30 = smov %s8065_s11  ;;  %25 = sbr.rel (!%p23_p9) target bundleno = 6 (0x6), region = 105 }
 0x5c8   :  { %5930 = vsyncpa [#allocation4], 1 }
 0x5c9   :  { %5932 = vsyncpa [#allocation4 + $0x1], 1 }
 0x5ca   :  { %5933 = vsyncpa [#allocation5], 1 }
 0x5cb   :  { %5935 = vsyncpa [#allocation5 + $0x1], 1 }
 0x5cc   :  { %5936 = vsyncpa [#allocation8], 1 }
 0x5cd   :  { %5938 = vsyncpa [#allocation8 + $0x1], 1 }

</bundles_post_ra>
